<compile_context>
chip_gen: v5e
topology: v5e:2x2
jax: 0.10.0
libtpu: 0.0.40
codegen_flags: <defaults>
</compile_context>

<pallas_src>
import functools

import jax
import jax.numpy as jnp
from jax.experimental import pallas as pl
from jax.experimental.pallas import tpu as pltpu

HIDDEN1 = 1024
HIDDEN2 = 512
HEAD_PAD = 128  # fused (action logits | value | zero-pad) lane width


def _round_up(x, m):
    return ((x + m - 1) // m) * m


def policy_kernel(x_ref, w1_ref, b1_ref, w2q_ref, s2_ref, b2_ref,
                  wh_ref, bh_ref, out_ref, *, action_space):
    # ----- affine1 + ReLU -> (TB, 1024); bf16 inputs, f32 accumulate -------
    x = x_ref[...].astype(jnp.bfloat16)
    h1 = jnp.dot(x, w1_ref[...], preferred_element_type=jnp.float32) + b1_ref[...]
    # cast-then-ReLU: ReLU commutes with the bf16 cast; packed-bf16 VPU on
    # v6e/v7x processes 2 elems/lane (negligible difference on v5e).
    h1 = jnp.maximum(h1.astype(jnp.bfloat16), 0.0)

    # ----- dequantize int8 w2 (per-output-channel scale) -------------------
    # Per-tile dequant (~150 VALU cycles) hides under the MXU-dominant
    # (TB,1024)x(1024,512) matmul and halves w2's HBM bytes (1 MiB -> 0.5 MiB),
    # the dominant weight traffic in the small-batch regime.
    # TODO(synk): dequant-once into persistent VMEM scratch under
    #   pl.when(program_id==0) is cheaper for many tiles but is unsafe when
    #   the "parallel" grid axis is sharded across v7x TensorCores.
    w2 = (w2q_ref[...].astype(jnp.float32) * s2_ref[...]).astype(jnp.bfloat16)

    # ----- affine2 + ReLU -> (TB, 512) --------------------------------------
    h2 = jnp.dot(h1, w2, preferred_element_type=jnp.float32) + b2_ref[...]
    h2 = jnp.maximum(h2.astype(jnp.bfloat16), 0.0)

    # ----- fused heads -> (TB, 128): [action logits | value | zero pad] -----
    fused = jnp.dot(h2, wh_ref[...], preferred_element_type=jnp.float32) + bh_ref[...]

    col = jax.lax.broadcasted_iota(jnp.int32, fused.shape, 1)
    is_action = col < action_space
    is_value = col == action_space

    # masked, numerically-stable softmax over the first `action_space` columns
    logits = jnp.where(is_action, fused, jnp.float32(-1e30))
    m = jnp.max(logits, axis=-1, keepdims=True)
    e = jnp.exp(logits - m)  # padded cols underflow to exactly 0
    probs = e / jnp.sum(e, axis=-1, keepdims=True)  # exact normalization

    # single lane-dense store: probs in cols [0, A), value in col A, 0 elsewhere
    out_ref[...] = jnp.where(is_action, probs,
                             jnp.where(is_value, fused, 0.0))


def policy_forward(x, params, action_space):
    """x: (B, S) float32. Returns (action_prob (B, A) f32, state_value (B, 1) f32)."""
    B, S = x.shape
    # value column (index == action_space) must fit inside the fused 128-lane head
    assert action_space <= HEAD_PAD - 2, "action_space too large for fused head"

    # Batch tiling:
    #   B <= 128 : one tile (weight-DMA / launch-latency dominated; splitting
    #              would only duplicate the per-core weight DMA).
    #   B  > 128 : >= 2 "parallel" tiles (both v7x TensorCores get work),
    #              capped at 256 rows to fill the 256-wide MXU on v6e/v7x.
    if B <= 128:
        TB = _round_up(max(B, 8), 8)
    else:
        TB = min(256, _round_up((B + 1) // 2, 8))
    Bp = _round_up(B, TB)
    if Bp != B:
        x = jnp.pad(x, ((0, Bp - B), (0, 0)))
    n_tiles = Bp // TB

    kernel = functools.partial(policy_kernel, action_space=action_space)

    out = pl.pallas_call(
        kernel,
        out_shape=jax.ShapeDtypeStruct((Bp, HEAD_PAD), jnp.float32),
        grid_spec=pltpu.PrefetchScalarGridSpec(
            num_scalar_prefetch=0,
            grid=(n_tiles,),
            in_specs=[
                pl.BlockSpec((TB, S), lambda i: (i, 0)),              # x tile
                pl.BlockSpec((S, HIDDEN1), lambda i: (0, 0)),         # w1 bf16 (resident)
                pl.BlockSpec((1, HIDDEN1), lambda i: (0, 0)),         # b1
                pl.BlockSpec((HIDDEN1, HIDDEN2), lambda i: (0, 0)),   # w2 int8 (resident)
                pl.BlockSpec((1, HIDDEN2), lambda i: (0, 0)),         # w2 per-col scale
                pl.BlockSpec((1, HIDDEN2), lambda i: (0, 0)),         # b2
                pl.BlockSpec((HIDDEN2, HEAD_PAD), lambda i: (0, 0)),  # fused head W
                pl.BlockSpec((1, HEAD_PAD), lambda i: (0, 0)),        # fused head b
            ],
            out_specs=pl.BlockSpec((TB, HEAD_PAD), lambda i: (i, 0)),
        ),
        compiler_params=pltpu.CompilerParams(
            dimension_semantics=("parallel",),
            vmem_limit_bytes=32 << 20,
        ),
    )(x, params["w1"], params["b1"], params["w2q"], params["s2"],
      params["b2"], params["wh"], params["bh"])

    probs = out[:B, :action_space]
    value = out[:B, action_space:action_space + 1]
    return probs, value


def _quantize_per_channel(w):
    """Symmetric per-output-channel int8 quantization of a (K, N) weight."""
    scale = jnp.max(jnp.abs(w), axis=0, keepdims=True) / 127.0
    scale = jnp.maximum(scale, 1e-12)
    q = jnp.clip(jnp.round(w / scale), -127, 127).astype(jnp.int8)
    return q, scale.astype(jnp.float32)


def init_params(key, state_space, action_space):
    """Deterministic synthetic init (uniform, Kaiming-like bound per layer).

    Weights are pre-transposed (in_features, out_features) so y = x @ W + b
    reproduces nn.Linear. The two heads are fused & zero-padded to HEAD_PAD
    lanes; w1/wh are bf16, w2 is int8 + per-channel f32 scale (HBM-bound)."""
    assert action_space <= HEAD_PAD - 2
    ks = jax.random.split(key, 8)

    def linear(kw, kb, fan_in, fan_out):
        bound = 1.0 / jnp.sqrt(fan_in)
        w = jax.random.uniform(kw, (fan_in, fan_out), jnp.float32, -bound, bound)
        b = jax.random.uniform(kb, (1, fan_out), jnp.float32, -bound, bound)
        return w, b

    w1, b1 = linear(ks[0], ks[1], state_space, HIDDEN1)
    w2, b2 = linear(ks[2], ks[3], HIDDEN1, HIDDEN2)
    wa, ba = linear(ks[4], ks[5], HIDDEN2, action_space)
    wv, bv = linear(ks[6], ks[7], HIDDEN2, 1)

    # Fuse action + value heads into one lane-dense (HIDDEN2, 128) weight.
    wh = jnp.zeros((HIDDEN2, HEAD_PAD), jnp.float32)
    wh = wh.at[:, :action_space].set(wa)
    wh = wh.at[:, action_space:action_space + 1].set(wv)
    bh = jnp.zeros((1, HEAD_PAD), jnp.float32)
    bh = bh.at[:, :action_space].set(ba)
    bh = bh.at[:, action_space:action_space + 1].set(bv)

    w2q, s2 = _quantize_per_channel(w2)

    return dict(
        w1=w1.astype(jnp.bfloat16), b1=b1,
        w2q=w2q, s2=s2, b2=b2,
        wh=wh.astype(jnp.bfloat16), bh=bh,
    )


def reference_forward(x, p, action_space):
    """Pure-JAX reference of the same (bf16 / int8-w2) math."""
    h1 = jnp.maximum(
        (jnp.dot(x.astype(jnp.bfloat16), p["w1"],
                 preferred_element_type=jnp.float32) + p["b1"]
         ).astype(jnp.bfloat16), 0.0)
    w2 = (p["w2q"].astype(jnp.float32) * p["s2"]).astype(jnp.bfloat16)
    h2 = jnp.maximum(
        (jnp.dot(h1, w2, preferred_element_type=jnp.float32) + p["b2"]
         ).astype(jnp.bfloat16), 0.0)
    fused = jnp.dot(h2, p["wh"], preferred_element_type=jnp.float32) + p["bh"]
    logits = fused[:, :action_space]
    probs = jax.nn.softmax(logits, axis=-1)
    value = fused[:, action_space:action_space + 1]
    return probs, value


if __name__ == "__main__":
    key = jax.random.PRNGKey(0)
    k_x, k_p = jax.random.split(key)

    batch = 4
    state_space = 16
    action_space = 6

    x = jax.random.normal(k_x, (batch, state_space), dtype=jnp.float32)
    params = init_params(k_p, state_space, action_space)

    probs, value = policy_forward(x, params, action_space)
    jax.block_until_ready((probs, value))

    # Correctness check against pure-JAX reference of the same math.
    ref_probs, ref_value = reference_forward(x, params, action_space)
    assert probs.shape == (batch, action_space)
    assert value.shape == (batch, 1)
    assert jnp.allclose(probs, ref_probs, atol=1e-2, rtol=1e-2)
    assert jnp.allclose(value, ref_value, atol=1e-2, rtol=1e-2)
    assert jnp.allclose(jnp.sum(probs, axis=-1), 1.0, atol=1e-4)

    print("KERNEL_OK")
</pallas_src>

<mosaic_0001>
module attributes {stable_mosaic.version = 11 : i64} {
  func.func @policy_kernel(%arg0: i32, %arg1: memref<8x16xf32, #tpu.memory_space<vmem>>, %arg2: memref<16x1024xbf16, #tpu.memory_space<vmem>>, %arg3: memref<1x1024xf32, #tpu.memory_space<vmem>>, %arg4: memref<1024x512xi8, #tpu.memory_space<vmem>>, %arg5: memref<1x512xf32, #tpu.memory_space<vmem>>, %arg6: memref<1x512xf32, #tpu.memory_space<vmem>>, %arg7: memref<512x128xbf16, #tpu.memory_space<vmem>>, %arg8: memref<1x128xf32, #tpu.memory_space<vmem>>, %arg9: memref<8x128xf32, #tpu.memory_space<vmem>>) attributes {dimension_semantics = [#tpu.dimension_semantics<parallel>], iteration_bounds = array<i64: 1>, scalar_prefetch = 0 : i64, scratch_operands = 0 : i64, tpu.core_type = #tpu.core_type<tc>, window_params = [{transform_indices = @transform_0, window_bounds = array<i64: 8, 16>}, {pipeline_mode = #tpu.pipeline_mode<synchronous>, transform_indices = @transform_1, window_bounds = array<i64: 16, 1024>}, {pipeline_mode = #tpu.pipeline_mode<synchronous>, transform_indices = @transform_2, window_bounds = array<i64: 1, 1024>}, {pipeline_mode = #tpu.pipeline_mode<synchronous>, transform_indices = @transform_3, window_bounds = array<i64: 1024, 512>}, {pipeline_mode = #tpu.pipeline_mode<synchronous>, transform_indices = @transform_4, window_bounds = array<i64: 1, 512>}, {pipeline_mode = #tpu.pipeline_mode<synchronous>, transform_indices = @transform_5, window_bounds = array<i64: 1, 512>}, {pipeline_mode = #tpu.pipeline_mode<synchronous>, transform_indices = @transform_6, window_bounds = array<i64: 512, 128>}, {pipeline_mode = #tpu.pipeline_mode<synchronous>, transform_indices = @transform_7, window_bounds = array<i64: 1, 128>}, {transform_indices = @transform_8, window_bounds = array<i64: 8, 128>}]} {
    %c0 = arith.constant 0 : index
    %c0_0 = arith.constant 0 : index
    %0 = vector.load %arg1[%c0, %c0_0] : memref<8x16xf32, #tpu.memory_space<vmem>>, vector<8x16xf32>
    %1 = arith.truncf %0 : vector<8x16xf32> to vector<8x16xbf16>
    %c0_1 = arith.constant 0 : index
    %c0_2 = arith.constant 0 : index
    %2 = vector.load %arg2[%c0_1, %c0_2] : memref<16x1024xbf16, #tpu.memory_space<vmem>>, vector<16x1024xbf16>
    %cst = arith.constant dense<0.000000e+00> : vector<8x1024xf32>
    %3 = tpu.matmul %1, %2, %cst {dimension_numbers = #tpu.dot_dimension_numbers<[1], [0], [0], [1], [0, 0, 1, 1], [], []>} : vector<8x16xbf16>, vector<16x1024xbf16>, vector<8x1024xf32> -> vector<8x1024xf32>
    %c0_3 = arith.constant 0 : index
    %c0_4 = arith.constant 0 : index
    %4 = vector.load %arg3[%c0_3, %c0_4] : memref<1x1024xf32, #tpu.memory_space<vmem>>, vector<1x1024xf32>
    %5 = vector.broadcast %4 : vector<1x1024xf32> to vector<8x1024xf32>
    %6 = arith.addf %3, %5 : vector<8x1024xf32>
    %7 = arith.truncf %6 : vector<8x1024xf32> to vector<8x1024xbf16>
    %cst_5 = arith.constant 0.000000e+00 : bf16
    %8 = vector.broadcast %cst_5 : bf16 to vector<8x1024xbf16>
    %9 = arith.maximumf %7, %8 : vector<8x1024xbf16>
    %c0_6 = arith.constant 0 : index
    %c0_7 = arith.constant 0 : index
    %10 = vector.load %arg4[%c0_6, %c0_7] : memref<1024x512xi8, #tpu.memory_space<vmem>>, vector<1024x512xi8>
    %11 = arith.sitofp %10 : vector<1024x512xi8> to vector<1024x512xf32>
    %c0_8 = arith.constant 0 : index
    %c0_9 = arith.constant 0 : index
    %12 = vector.load %arg5[%c0_8, %c0_9] : memref<1x512xf32, #tpu.memory_space<vmem>>, vector<1x512xf32>
    %13 = vector.broadcast %12 : vector<1x512xf32> to vector<1024x512xf32>
    %14 = arith.mulf %11, %13 : vector<1024x512xf32>
    %15 = arith.truncf %14 : vector<1024x512xf32> to vector<1024x512xbf16>
    %cst_10 = arith.constant dense<0.000000e+00> : vector<8x512xf32>
    %16 = tpu.matmul %9, %15, %cst_10 {dimension_numbers = #tpu.dot_dimension_numbers<[1], [0], [0], [1], [0, 0, 1, 1], [], []>} : vector<8x1024xbf16>, vector<1024x512xbf16>, vector<8x512xf32> -> vector<8x512xf32>
    %c0_11 = arith.constant 0 : index
    %c0_12 = arith.constant 0 : index
    %17 = vector.load %arg6[%c0_11, %c0_12] : memref<1x512xf32, #tpu.memory_space<vmem>>, vector<1x512xf32>
    %18 = vector.broadcast %17 : vector<1x512xf32> to vector<8x512xf32>
    %19 = arith.addf %16, %18 : vector<8x512xf32>
    %20 = arith.truncf %19 : vector<8x512xf32> to vector<8x512xbf16>
    %cst_13 = arith.constant 0.000000e+00 : bf16
    %21 = vector.broadcast %cst_13 : bf16 to vector<8x512xbf16>
    %22 = arith.maximumf %20, %21 : vector<8x512xbf16>
    %c0_14 = arith.constant 0 : index
    %c0_15 = arith.constant 0 : index
    %23 = vector.load %arg7[%c0_14, %c0_15] : memref<512x128xbf16, #tpu.memory_space<vmem>>, vector<512x128xbf16>
    %cst_16 = arith.constant dense<0.000000e+00> : vector<8x128xf32>
    %24 = tpu.matmul %22, %23, %cst_16 {dimension_numbers = #tpu.dot_dimension_numbers<[1], [0], [0], [1], [0, 0, 1, 1], [], []>} : vector<8x512xbf16>, vector<512x128xbf16>, vector<8x128xf32> -> vector<8x128xf32>
    %c0_17 = arith.constant 0 : index
    %c0_18 = arith.constant 0 : index
    %25 = vector.load %arg8[%c0_17, %c0_18] : memref<1x128xf32, #tpu.memory_space<vmem>>, vector<1x128xf32>
    %26 = vector.broadcast %25 : vector<1x128xf32> to vector<8x128xf32>
    %27 = arith.addf %24, %26 : vector<8x128xf32>
    %28 = tpu.iota {dimensions = array<i32: 1>} : vector<8x128xi32>
    %c6_i32 = arith.constant 6 : i32
    %29 = vector.broadcast %c6_i32 : i32 to vector<8x128xi32>
    %30 = arith.cmpi slt, %28, %29 : vector<8x128xi32>
    %c6_i32_19 = arith.constant 6 : i32
    %31 = vector.broadcast %c6_i32_19 : i32 to vector<8x128xi32>
    %32 = arith.cmpi eq, %28, %31 : vector<8x128xi32>
    %cst_20 = arith.constant -1.000000e+30 : f32
    %33 = vector.broadcast %cst_20 : f32 to vector<8x128xf32>
    %34 = arith.select %30, %27, %33 : vector<8x128xi1>, vector<8x128xf32>
    %cst_21 = arith.constant dense<0xFF800000> : vector<8xf32>
    %35 = vector.multi_reduction <maximumf>, %34, %cst_21 [1] : vector<8x128xf32> to vector<8xf32>
    %36 = vector.shape_cast %35 : vector<8xf32> to vector<8x1xf32>
    %37 = vector.broadcast %36 : vector<8x1xf32> to vector<8x128xf32>
    %38 = arith.subf %34, %37 : vector<8x128xf32>
    %39 = math.exp %38 : vector<8x128xf32>
    %cst_22 = arith.constant dense<0.000000e+00> : vector<8xf32>
    %40 = vector.multi_reduction <add>, %39, %cst_22 [1] : vector<8x128xf32> to vector<8xf32>
    %41 = vector.shape_cast %40 : vector<8xf32> to vector<8x1xf32>
    %42 = vector.broadcast %41 : vector<8x1xf32> to vector<8x128xf32>
    %43 = arith.divf %39, %42 : vector<8x128xf32>
    %cst_23 = arith.constant 0.000000e+00 : f32
    %44 = vector.broadcast %cst_23 : f32 to vector<8x128xf32>
    %45 = arith.select %32, %27, %44 : vector<8x128xi1>, vector<8x128xf32>
    %46 = arith.select %30, %43, %45 : vector<8x128xi1>, vector<8x128xf32>
    %c0_24 = arith.constant 0 : index
    %c0_25 = arith.constant 0 : index
    %47 = vector.load %arg9[%c0_24, %c0_25] : memref<8x128xf32, #tpu.memory_space<vmem>>, vector<8x128xf32>
    tpu.vector_store %arg9[%c0_24, %c0_25], %46 {strides = array<i32>} : memref<8x128xf32, #tpu.memory_space<vmem>>, vector<8x128xf32>,
    return
  }
  func.func @transform_0(%arg0: i32) -> (i32, i32) {
    %c0_i32 = arith.constant 0 : i32
    %c0_i32_0 = arith.constant 0 : i32
    return %arg0, %c0_i32 : i32, i32
  }
  func.func @transform_1(%arg0: i32) -> (i32, i32) {
    %c0_i32 = arith.constant 0 : i32
    %c0_i32_0 = arith.constant 0 : i32
    %c0_i32_1 = arith.constant 0 : i32
    return %c0_i32, %c0_i32_0 : i32, i32
  }
  func.func @transform_2(%arg0: i32) -> (i32, i32) {
    %c0_i32 = arith.constant 0 : i32
    %c0_i32_0 = arith.constant 0 : i32
    %c0_i32_1 = arith.constant 0 : i32
    return %c0_i32, %c0_i32_0 : i32, i32
  }
  func.func @transform_3(%arg0: i32) -> (i32, i32) {
    %c0_i32 = arith.constant 0 : i32
    %c0_i32_0 = arith.constant 0 : i32
    %c0_i32_1 = arith.constant 0 : i32
    return %c0_i32, %c0_i32_0 : i32, i32
  }
  func.func @transform_4(%arg0: i32) -> (i32, i32) {
    %c0_i32 = arith.constant 0 : i32
    %c0_i32_0 = arith.constant 0 : i32
    %c0_i32_1 = arith.constant 0 : i32
    return %c0_i32, %c0_i32_0 : i32, i32
  }
  func.func @transform_5(%arg0: i32) -> (i32, i32) {
    %c0_i32 = arith.constant 0 : i32
    %c0_i32_0 = arith.constant 0 : i32
    %c0_i32_1 = arith.constant 0 : i32
    return %c0_i32, %c0_i32_0 : i32, i32
  }
  func.func @transform_6(%arg0: i32) -> (i32, i32) {
    %c0_i32 = arith.constant 0 : i32
    %c0_i32_0 = arith.constant 0 : i32
    %c0_i32_1 = arith.constant 0 : i32
    return %c0_i32, %c0_i32_0 : i32, i32
  }
  func.func @transform_7(%arg0: i32) -> (i32, i32) {
    %c0_i32 = arith.constant 0 : i32
    %c0_i32_0 = arith.constant 0 : i32
    %c0_i32_1 = arith.constant 0 : i32
    return %c0_i32, %c0_i32_0 : i32, i32
  }
  func.func @transform_8(%arg0: i32) -> (i32, i32) {
    %c0_i32 = arith.constant 0 : i32
    %c0_i32_0 = arith.constant 0 : i32
    return %arg0, %c0_i32 : i32, i32
  }
}

</mosaic_0001>

<bundles_post_ra>
// kernel: tpu_custom_call.1
= control target key start
LH: loop header
LB: loop body
LE: loop exit
PB: predicated region body
PF: predicated region fallthrough
CT: control target
= control target key end

     0   :  { %13 = vsyncpa [#allocation3], 0  ;;  %s4699_s0 = inlined_call_operand.hbm [shape: f32[8,16], index: 0, kind: input, shape index: {}]   ;;  %s4700_s1 = inlined_call_operand.hbm [shape: bf16[16,1024], index: 1, kind: input, shape index: {}]   ;;  %s4701_s2 = inlined_call_operand.hbm [shape: f32[1,1024], index: 2, kind: input, shape index: {}]   ;;  %s4702_s3 = inlined_call_operand.hbm [shape: s8[1024,512], index: 3, kind: input, shape index: {}]   ;;  %s4703_s4 = inlined_call_operand.hbm [shape: f32[1,512], index: 4, kind: input, shape index: {}]   ;;  %s4704_s5 = inlined_call_operand.vmem [shape: f32[1,512], index: 5, kind: input, shape index: {}]   ;;  %s4705_s6 = inlined_call_operand.hbm [shape: bf16[512,128], index: 6, kind: input, shape index: {}]   ;;  %s4706_s7 = inlined_call_operand.vmem [shape: f32[1,128], index: 7, kind: input, shape index: {}]   ;;  %s4707_s8 = inlined_call_operand.hbm [shape: f32[8,128], index: 8, kind: output, shape index: {}]  }
   0x1   :  { %14 = vsyncpa [#allocation6], 0 }
   0x2   :  { %15 = vsyncpa [#allocation9], 0 }
   0x3   :  { %16 = vsyncpa [#allocation12], 0  ;;  %s33_s29 = sshll.u32 %s4700_s1, 4  ;;  %s34_s29 = int_to_ptr.hbm [resolvable:$true] %s33_s29 }
   0x4   :  { %17 = vsyncpa [#allocation4], 0  ;;  %s3461_s30 = smov [#allocation5]   ;;  %s57_s12 = sshll.u32 %s4702_s3, 4  ;;  %s58_s12 = int_to_ptr.hbm [resolvable:$true] %s57_s12 }
   0x5   :  { %s35_s9 = sshll.u32 %s3461_s30, 4  ;;  %s3462_s13 = smov 512   ;;  %s36_s9 = int_to_ptr.vmem [resolvable:$true] %s35_s9 }
   0x6   :  { %s3463_s14 = smov 32   ;;  %s3464_s15 = smov [#allocation8]  }
   0x7   :  { %41 = dma.hbm_to_vmem [thread:$0]  %s34_s29, 1024, %s36_s9, [#allocation6], %s3462_s13, %s3462_s13, %s3463_s14  }
   0x8   :  { %s59_s16 = sshll.u32 %s3464_s15, 4  ;;  %s23_s19 = sshll.u32 %s4699_s0, 4  ;;  %s60_s16 = int_to_ptr.vmem [resolvable:$true] %s59_s16  ;;  %s24_s19 = int_to_ptr.hbm [resolvable:$true] %s23_s19 }
   0x9   :  { %65 = dma.hbm_to_vmem [thread:$0]  %s58_s12, 16384, %s60_s16, [#allocation9], %s3462_s13, %s3462_s13, %s3463_s14  }
   0xa   :  { %s47_s21 = sshll.u32 %s4701_s2, 4  ;;  %s3465_s22 = smov [#allocation2]   ;;  %s48_s21 = int_to_ptr.hbm [resolvable:$true] %s47_s21 }
   0xb   :  { %s25_s23 = sshll.u32 %s3465_s22, 4  ;;  %s3466_s3 = smov [#allocation7]   ;;  %s26_s23 = int_to_ptr.vmem [resolvable:$true] %s25_s23 }
   0xc   :  { %28 = dma.hbm_to_vmem [thread:$0]  %s24_s19, 128, %s26_s23, [#allocation3]  }
   0xd   :  { %s49_s24 = sshll.u32 %s3466_s3, 4  ;;  %s71_s27 = sshll.u32 %s4703_s4, 4  ;;  %s50_s24 = int_to_ptr.vmem [resolvable:$true] %s49_s24  ;;  %s72_s27 = int_to_ptr.hbm [resolvable:$true] %s71_s27 }
   0xe   :  { %52 = dma.hbm_to_vmem [thread:$0]  %s48_s21, 128, %s50_s24, [#allocation6]  }
   0xf   :  { %s83_s29 = sshll.u32 %s4705_s6, 4  ;;  %s3467_s30 = smov [#allocation10]   ;;  %s84_s29 = int_to_ptr.hbm [resolvable:$true] %s83_s29 }
  0x10   :  { %s73_s2 = sshll.u32 %s3467_s30, 4  ;;  %s3468_s9 = smov [#allocation11]   ;;  %s74_s2 = int_to_ptr.vmem [resolvable:$true] %s73_s2 }
  0x11   :  { %76 = dma.hbm_to_vmem [thread:$0]  %s72_s27, 64, %s74_s2, [#allocation9]  }
  0x12   :  { %s85_s10 = sshll.u32 %s3468_s9, 4  ;;  %s3469_s11 = smov 64   ;;  %s86_s10 = int_to_ptr.vmem [resolvable:$true] %s85_s10 }
  0x13   :  { %s3470_s12 = smov 4  }
  0x14   :  { %91 = dma.hbm_to_vmem [thread:$0]  %s84_s29, 4096, %s86_s10, [#allocation12], %s3469_s11, %s3469_s11, %s3470_s12  }
  0x15   :  { %3451 = dma.done.wait [#allocation3], 128  }
  0x16   :  { %3452 = vsyncadd [#allocation3], 4294967168 }
  0x17   :  { %3453 = dma.done.wait [#allocation6], 1152  }
  0x18   :  { %3454 = vsyncadd [#allocation6], 4294966144 }
  0x19   :  { %3455 = dma.done.wait [#allocation9], 16448  }
  0x1a   :  { %3456 = vsyncadd [#allocation9], 4294950848 }
  0x1b   :  { %3457 = dma.done.wait [#allocation12], 4096  }
  0x1c   :  { %3458 = vsyncadd [#allocation12], 4294963200  ;;  %v3057_v0 = vld [vmem:[#allocation5] sm:$0xf]  ;;  %v3223_v2 = vld [vmem:[#allocation5 + $0x4] sm:$0xf] }
  0x1d   :  { %v3227_v1 = vld [vmem:[#allocation5 + $0x1c] sm:$0xf0]  ;;  %v3059_v4 = vld [vmem:[#allocation5 + $0x20] sm:$0xf0]  ;;  %v3065_v5 = vld [vmem:[#allocation5 + $0x8] sm:$0xf] }
  0x1e   :  { %v3058_v3 = vor.u32 %v3227_v1, %v3057_v0  ;;  %v3228_v6 = vld [vmem:[#allocation5 + $0x24] sm:$0xf0]  ;;  %v3062_v7 = vor.u32 %v3223_v2, %v3059_v4  ;;  %v3224_v9 = vld [vmem:[#allocation5 + $0xc] sm:$0xf]  ;;  %v119_v11 = vld [vmem:[#allocation2] sm:$0xff]  ;;  %vm187_vm0 = vcmask 130048  }
  0x1f   :  { %v3066_v8 = vor.u32 %v3228_v6, %v3065_v5  ;;  %v3067_v10 = vld [vmem:[#allocation5 + $0x28] sm:$0xf0]  ;;  %v3535_v13 = vpack.c.bf16 %v119_v11, %v119_v11  ;;  %v3073_v14 = vld [vmem:[#allocation5 + $0x10] sm:$0xf]  ;;  %v3225_v16 = vld [vmem:[#allocation5 + $0x14] sm:$0xf] }
  0x20   :  { %198 = vmatpush.bf16.msra.mxu0 %v3058_v3  ;;  %v3070_v12 = vor.u32 %v3224_v9, %v3067_v10  ;;  %v3229_v15 = vld [vmem:[#allocation5 + $0x2c] sm:$0xf0]  ;;  %211 = vmatpush.bf16.msra.mxu1 %v3062_v7  ;;  %v3075_v18 = vld [vmem:[#allocation5 + $0x30] sm:$0xf0]  ;;  %v3081_v19 = vld [vmem:[#allocation5 + $0x18] sm:$0xf] }
  0x21   :  { %224 = vmatpush.bf16.msra.mxu2 %v3066_v8  ;;  %v3074_v17 = vor.u32 %v3229_v15, %v3073_v14  ;;  %v3230_v20 = vld [vmem:[#allocation5 + $0x34] sm:$0xf0]  ;;  %v3078_v21 = vor.u32 %v3225_v16, %v3075_v18  ;;  %v3226_v23 = vld [vmem:[#allocation5 + $0x1c] sm:$0xf]  ;;  %v335_v25 = vld [vmem:[#allocation8 + $0x60] sm:$0xff]  ;;  %s3042_s19 = sshll.u32 %s4707_s8, 4  ;;  %s3043_s19 = int_to_ptr.hbm [resolvable:$true] %s3042_s19 }
  0x22   :  { %237 = vmatpush.bf16.msra.mxu3 %v3070_v12  ;;  %v3082_v22 = vor.u32 %v3230_v20, %v3081_v19  ;;  %v3083_v24 = vld [vmem:[#allocation5 + $0x38] sm:$0xf0]  ;;  %v507_v27 = vunpack.c.2.s8 %v335_v25  ;;  %v511_v28 = vunpack.c.3.s8 %v335_v25  ;;  %v1475_v29 = vld [vmem:[#allocation10] sm:$0xf]  ;;  %v499_v31 = vunpack.c.0.s8 %v335_v25 }
  0x23   :  { %3087 = vmatmul.msk.bf16.vlgmr.msra.gmra.mxu0 %vm187_vm0, %v3535_v13  ;;  %v3086_v26 = vor.u32 %v3226_v23, %v3083_v24  ;;  %v351_v30 = vld [vmem:[#allocation8 + $0xe0] sm:$0xff]  ;;  %3088 = vmatmul.msk.bf16.vlgmr.msra.gmra.mxu1 %vm187_vm0, %v3535_v13  ;;  %v3543_v32 = vperm.slane %v1475_v29, 0  ;;  %v503_v35 = vunpack.c.1.s8 %v335_v25 }
  0x24   :  { %3089 = vmatmul.msk.bf16.vlgmr.msra.gmra.mxu2 %vm187_vm0, %v3535_v13  ;;  %v571_v33 = vunpack.c.2.s8 %v351_v30  ;;  %v575_v34 = vunpack.c.3.s8 %v351_v30  ;;  %250 = vmatpush.bf16.msrb.mxu0 %v3074_v17  ;;  %v1019_v36 = vcvt.s32.f32 %v507_v27  ;;  %v1023_v37 = vcvt.s32.f32 %v511_v28  ;;  %v367_v44 = vld [vmem:[#allocation8 + $0x160] sm:$0xff] }
  0x25   :  { %3090 = vmatmul.msk.bf16.vlgmr.msra.gmra.mxu3 %vm187_vm0, %v3535_v13  ;;  %v1011_v38 = vcvt.s32.f32 %v499_v31  ;;  %v563_v39 = vunpack.c.0.s8 %v351_v30  ;;  %263 = vmatpush.bf16.msrb.mxu1 %v3078_v21  ;;  %v1015_v42 = vcvt.s32.f32 %v503_v35  ;;  %v567_v43 = vunpack.c.1.s8 %v351_v30  ;;  %v383_v49 = vld [vmem:[#allocation8 + $0x1e0] sm:$0xff] }
  0x26   :  { %276 = vmatpush.bf16.msrb.mxu2 %v3082_v22  ;;  %v1083_v40 = vcvt.s32.f32 %v571_v33  ;;  %v1087_v41 = vcvt.s32.f32 %v575_v34  ;;  %289 = vmatpush.bf16.msrb.mxu3 %v3086_v26  ;;  %v1541_v45 = vmul.f32 %v3543_v32, %v1019_v36  ;;  %v1545_v46 = vmul.f32 %v3543_v32, %v1023_v37  ;;  %v3553_v54 = vld [vmem:[#allocation8 + $0x40] sm:$0xff] }
  0x27   :  { %v1533_v47 = vmul.f32 %v3543_v32, %v1011_v38  ;;  %v1075_v48 = vcvt.s32.f32 %v563_v39  ;;  %v1537_v52 = vmul.f32 %v3543_v32, %v1015_v42  ;;  %v1079_v53 = vcvt.s32.f32 %v567_v43  ;;  %v3556_v59 = vld [vmem:[#allocation8 + $0xc0] sm:$0xff] }
  0x28   :  { %v1605_v50 = vmul.f32 %v3543_v32, %v1083_v40  ;;  %v1609_v51 = vmul.f32 %v3543_v32, %v1087_v41  ;;  %v2025_v55 = vpack.c.bf16 %v1545_v46, %v1541_v45  ;;  %v635_v57 = vunpack.c.2.s8 %v367_v44  ;;  %v3576_v38 = vld [vmem:[#allocation8 + $0x140] sm:$0xff] }
  0x29   :  { %v1597_v56 = vmul.f32 %v3543_v32, %v1075_v48  ;;  %v639_v58 = vunpack.c.3.s8 %v367_v44  ;;  %v2021_v61 = vpack.c.bf16 %v1537_v52, %v1533_v47  ;;  %v1601_v62 = vmul.f32 %v3543_v32, %v1079_v53  ;;  %v379_v47 = vld [vmem:[#allocation8 + $0x1c0] sm:$0xff] }
  0x2a   :  { %v2057_v60 = vpack.c.bf16 %v1609_v51, %v1605_v50  ;;  %v699_v63 = vunpack.c.2.s8 %v383_v49  ;;  %2263 = vmatpush.bf16.msra.mxu0 %v2025_v55  ;;  %v1147_v0 = vcvt.s32.f32 %v635_v57  ;;  %v703_v2 = vunpack.c.3.s8 %v383_v49  ;;  %v327_v52 = vld [vmem:[#allocation8 + $0x20] sm:$0xff] }
  0x2b   :  { %v1151_v1 = vcvt.s32.f32 %v639_v58  ;;  %v491_v3 = vunpack.c.2.s8 %v3553_v54  ;;  %v2053_v4 = vpack.c.bf16 %v1601_v62, %v1597_v56  ;;  %v495_v6 = vunpack.c.3.s8 %v3553_v54 }
  0x2c   :  { %2276 = vmatpush.bf16.msra.mxu1 %v2057_v60  ;;  %v1211_v5 = vcvt.s32.f32 %v699_v63  ;;  %v555_v7 = vunpack.c.2.s8 %v3556_v59  ;;  %v1669_v8 = vmul.f32 %v3543_v32, %v1147_v0  ;;  %v1215_v10 = vcvt.s32.f32 %v703_v2  ;;  %v343_v60 = vld [vmem:[#allocation8 + $0xa0] sm:$0xff] }
  0x2d   :  { %v1673_v9 = vmul.f32 %v3543_v32, %v1151_v1  ;;  %v1003_v11 = vcvt.s32.f32 %v491_v3  ;;  %v1007_v14 = vcvt.s32.f32 %v495_v6  ;;  %v559_v15 = vunpack.c.3.s8 %v3556_v59 }
  0x2e   :  { %v1733_v12 = vmul.f32 %v3543_v32, %v1211_v5  ;;  %v1067_v16 = vcvt.s32.f32 %v555_v7  ;;  %2264 = vmatpush.bf16.msra.mxu0 %v2021_v61  ;;  %v1737_v18 = vmul.f32 %v3543_v32, %v1215_v10  ;;  %v627_v20 = vunpack.c.0.s8 %v367_v44 }
  0x2f   :  { %v2089_v17 = vpack.c.bf16 %v1673_v9, %v1669_v8  ;;  %v1525_v19 = vmul.f32 %v3543_v32, %v1003_v11  ;;  %v1529_v21 = vmul.f32 %v3543_v32, %v1007_v14  ;;  %v1071_v22 = vcvt.s32.f32 %v559_v15 }
  0x30   :  { %2277 = vmatpush.bf16.msra.mxu1 %v2053_v4  ;;  %v1589_v23 = vmul.f32 %v3543_v32, %v1067_v16  ;;  %v631_v24 = vunpack.c.1.s8 %v367_v44  ;;  %v2121_v25 = vpack.c.bf16 %v1737_v18, %v1733_v12  ;;  %v1139_v26 = vcvt.s32.f32 %v627_v20 }
  0x31   :  { %2289 = vmatpush.bf16.msra.mxu2 %v2089_v17  ;;  %v691_v27 = vunpack.c.0.s8 %v383_v49  ;;  %v695_v28 = vunpack.c.1.s8 %v383_v49  ;;  %v2017_v29 = vpack.c.bf16 %v1529_v21, %v1525_v19  ;;  %v1593_v30 = vmul.f32 %v3543_v32, %v1071_v22 }
  0x32   :  { %v1143_v31 = vcvt.s32.f32 %v631_v24  ;;  %v483_v33 = vunpack.c.0.s8 %v3553_v54  ;;  %2302 = vmatpush.bf16.msra.mxu3 %v2121_v25  ;;  %v1661_v34 = vmul.f32 %v3543_v32, %v1139_v26  ;;  %v487_v37 = vunpack.c.1.s8 %v3553_v54 }
  0x33   :  { %3091 = vmatmul.msk.bf16.vlgmr.msrb.gmra.mxu0 %vm187_vm0, %v3535_v13  ;;  %v1203_v35 = vcvt.s32.f32 %v691_v27  ;;  %v1207_v36 = vcvt.s32.f32 %v695_v28  ;;  %3092 = vmatmul.msk.bf16.vlgmr.msrb.gmra.mxu1 %vm187_vm0, %v3535_v13  ;;  %v2049_v39 = vpack.c.bf16 %v1593_v30, %v1589_v23  ;;  %v547_v42 = vunpack.c.0.s8 %v3556_v59 }
  0x34   :  { %3093 = vmatmul.msk.bf16.vlgmr.msrb.gmra.mxu2 %vm187_vm0, %v3535_v13  ;;  %v1665_v40 = vmul.f32 %v3543_v32, %v1143_v31  ;;  %v995_v41 = vcvt.s32.f32 %v483_v33  ;;  %2265 = vmatpush.bf16.msra.mxu0 %v2017_v29  ;;  %v999_v45 = vcvt.s32.f32 %v487_v37  ;;  %v551_v46 = vunpack.c.1.s8 %v3556_v59 }
  0x35   :  { %3094 = vmatmul.msk.bf16.vlgmr.msrb.gmra.mxu3 %vm187_vm0, %v3535_v13  ;;  %v1725_v43 = vmul.f32 %v3543_v32, %v1203_v35  ;;  %v1729_v44 = vmul.f32 %v3543_v32, %v1207_v36  ;;  %2278 = vmatpush.bf16.msra.mxu1 %v2049_v39  ;;  %v1059_v50 = vcvt.s32.f32 %v547_v42  ;;  %v619_v51 = vunpack.c.2.s8 %v3576_v38  ;;  %v359_v35 = vld [vmem:[#allocation8 + $0x120] sm:$0xff] }
  0x36   :  { %v2085_v48 = vpack.c.bf16 %v1665_v40, %v1661_v34  ;;  %v1517_v49 = vmul.f32 %v3543_v32, %v995_v41  ;;  %v1521_v13 = vmul.f32 %v3543_v32, %v999_v45  ;;  %v1063_v54 = vcvt.s32.f32 %v551_v46 }
  0x37   :  { %v2117_v53 = vpack.c.bf16 %v1729_v44, %v1725_v43  ;;  %v623_v55 = vunpack.c.3.s8 %v3576_v38  ;;  %v1581_v56 = vmul.f32 %v3543_v32, %v1059_v50  ;;  %v1131_v57 = vcvt.s32.f32 %v619_v51  ;;  %v375_v44 = vld [vmem:[#allocation8 + $0x1a0] sm:$0xff] }
  0x38   :  { %2290 = vmatpush.bf16.msra.mxu2 %v2085_v48  ;;  %v683_v58 = vunpack.c.2.s8 %v379_v47  ;;  %v687_v59 = vunpack.c.3.s8 %v379_v47  ;;  %v2013_v61 = vpack.c.bf16 %v1521_v13, %v1517_v49  ;;  %v1585_v62 = vmul.f32 %v3543_v32, %v1063_v54  ;;  %v323_v49 = vld [vmem:[#allocation8] sm:$0xff] }
  0x39   :  { %2303 = vmatpush.bf16.msra.mxu3 %v2117_v53  ;;  %v1135_v63 = vcvt.s32.f32 %v623_v55  ;;  %v475_v0 = vunpack.c.2.s8 %v327_v52  ;;  %v1653_v1 = vmul.f32 %v3543_v32, %v1131_v57  ;;  %v479_v4 = vunpack.c.3.s8 %v327_v52  ;;  %v339_v57 = vld [vmem:[#allocation8 + $0x80] sm:$0xff] }
  0x3a   :  { %v1195_v2 = vcvt.s32.f32 %v683_v58  ;;  %v1199_v3 = vcvt.s32.f32 %v687_v59  ;;  %2266 = vmatpush.bf16.msra.mxu0 %v2013_v61  ;;  %v2045_v5 = vpack.c.bf16 %v1585_v62, %v1581_v56  ;;  %v539_v8 = vunpack.c.2.s8 %v343_v60 }
  0x3b   :  { %v1657_v6 = vmul.f32 %v3543_v32, %v1135_v63  ;;  %v987_v7 = vcvt.s32.f32 %v475_v0  ;;  %v991_v11 = vcvt.s32.f32 %v479_v4  ;;  %v543_v12 = vunpack.c.3.s8 %v343_v60 }
  0x3c   :  { %v1717_v9 = vmul.f32 %v3543_v32, %v1195_v2  ;;  %v1721_v10 = vmul.f32 %v3543_v32, %v1199_v3  ;;  %2279 = vmatpush.bf16.msra.mxu1 %v2045_v5  ;;  %v1051_v16 = vcvt.s32.f32 %v539_v8  ;;  %v611_v17 = vunpack.c.0.s8 %v3576_v38 }
  0x3d   :  { %v2081_v14 = vpack.c.bf16 %v1657_v6, %v1653_v1  ;;  %v1509_v15 = vmul.f32 %v3543_v32, %v987_v7  ;;  %v1513_v19 = vmul.f32 %v3543_v32, %v991_v11  ;;  %v1055_v20 = vcvt.s32.f32 %v543_v12 }
  0x3e   :  { %v2113_v18 = vpack.c.bf16 %v1721_v10, %v1717_v9  ;;  %v615_v21 = vunpack.c.1.s8 %v3576_v38  ;;  %v1573_v22 = vmul.f32 %v3543_v32, %v1051_v16  ;;  %v1123_v23 = vcvt.s32.f32 %v611_v17 }
  0x3f   :  { %2291 = vmatpush.bf16.msra.mxu2 %v2081_v14  ;;  %v675_v24 = vunpack.c.0.s8 %v379_v47  ;;  %v679_v25 = vunpack.c.1.s8 %v379_v47  ;;  %v2009_v26 = vpack.c.bf16 %v1513_v19, %v1509_v15  ;;  %v1577_v27 = vmul.f32 %v3543_v32, %v1055_v20 }
  0x40   :  { %2304 = vmatpush.bf16.msra.mxu3 %v2113_v18  ;;  %v1127_v28 = vcvt.s32.f32 %v615_v21  ;;  %v467_v29 = vunpack.c.0.s8 %v327_v52  ;;  %v1645_v30 = vmul.f32 %v3543_v32, %v1123_v23  ;;  %v471_v34 = vunpack.c.1.s8 %v327_v52 }
  0x41   :  { %v1187_v31 = vcvt.s32.f32 %v675_v24  ;;  %v1191_v33 = vcvt.s32.f32 %v679_v25  ;;  %2267 = vmatpush.bf16.msra.mxu0 %v2009_v26  ;;  %v2041_v36 = vpack.c.bf16 %v1577_v27, %v1573_v22  ;;  %v531_v39 = vunpack.c.0.s8 %v343_v60 }
  0x42   :  { %v1649_v37 = vmul.f32 %v3543_v32, %v1127_v28  ;;  %v979_v38 = vcvt.s32.f32 %v467_v29  ;;  %v983_v42 = vcvt.s32.f32 %v471_v34  ;;  %v535_v43 = vunpack.c.1.s8 %v343_v60 }
  0x43   :  { %v1709_v40 = vmul.f32 %v3543_v32, %v1187_v31  ;;  %v1713_v41 = vmul.f32 %v3543_v32, %v1191_v33  ;;  %2280 = vmatpush.bf16.msra.mxu1 %v2041_v36  ;;  %v1043_v47 = vcvt.s32.f32 %v531_v39  ;;  %v603_v48 = vunpack.c.2.s8 %v359_v35  ;;  %v399_v31 = vld [vmem:[#allocation8 + $0x260] sm:$0xff] }
  0x44   :  { %v2077_v45 = vpack.c.bf16 %v1649_v37, %v1645_v30  ;;  %v1501_v46 = vmul.f32 %v3543_v32, %v979_v38  ;;  %v1505_v51 = vmul.f32 %v3543_v32, %v983_v42  ;;  %v1047_v52 = vcvt.s32.f32 %v535_v43 }
  0x45   :  { %v2109_v50 = vpack.c.bf16 %v1713_v41, %v1709_v40  ;;  %v607_v53 = vunpack.c.3.s8 %v359_v35  ;;  %v1565_v13 = vmul.f32 %v3543_v32, %v1043_v47  ;;  %v1115_v54 = vcvt.s32.f32 %v603_v48  ;;  %v415_v41 = vld [vmem:[#allocation8 + $0x2e0] sm:$0xff] }
  0x46   :  { %2292 = vmatpush.bf16.msra.mxu2 %v2077_v45  ;;  %v667_v55 = vunpack.c.2.s8 %v375_v44  ;;  %v671_v56 = vunpack.c.3.s8 %v375_v44  ;;  %v2005_v58 = vpack.c.bf16 %v1505_v51, %v1501_v46  ;;  %v1569_v59 = vmul.f32 %v3543_v32, %v1047_v52  ;;  %v355_v46 = vld [vmem:[#allocation8 + $0x100] sm:$0xff] }
  0x47   :  { %2305 = vmatpush.bf16.msra.mxu3 %v2109_v50  ;;  %v1119_v60 = vcvt.s32.f32 %v607_v53  ;;  %v459_v61 = vunpack.c.2.s8 %v323_v49  ;;  %v1637_v62 = vmul.f32 %v3543_v32, %v1115_v54  ;;  %v463_v1 = vunpack.c.3.s8 %v323_v49  ;;  %v371_v54 = vld [vmem:[#allocation8 + $0x180] sm:$0xff] }
  0x48   :  { %v1179_v63 = vcvt.s32.f32 %v667_v55  ;;  %v1183_v0 = vcvt.s32.f32 %v671_v56  ;;  %2268 = vmatpush.bf16.msra.mxu0 %v2005_v58  ;;  %v2037_v2 = vpack.c.bf16 %v1569_v59, %v1565_v13  ;;  %v523_v5 = vunpack.c.2.s8 %v339_v57 }
  0x49   :  { %v1641_v3 = vmul.f32 %v3543_v32, %v1119_v60  ;;  %v971_v4 = vcvt.s32.f32 %v459_v61  ;;  %v975_v8 = vcvt.s32.f32 %v463_v1  ;;  %v527_v9 = vunpack.c.3.s8 %v339_v57 }
  0x4a   :  { %v1701_v6 = vmul.f32 %v3543_v32, %v1179_v63  ;;  %v1705_v7 = vmul.f32 %v3543_v32, %v1183_v0  ;;  %2281 = vmatpush.bf16.msra.mxu1 %v2037_v2  ;;  %v1035_v12 = vcvt.s32.f32 %v523_v5  ;;  %v595_v14 = vunpack.c.0.s8 %v359_v35 }
  0x4b   :  { %v2073_v10 = vpack.c.bf16 %v1641_v3, %v1637_v62  ;;  %v1493_v11 = vmul.f32 %v3543_v32, %v971_v4  ;;  %v1497_v16 = vmul.f32 %v3543_v32, %v975_v8  ;;  %v1039_v17 = vcvt.s32.f32 %v527_v9 }
  0x4c   :  { %v2105_v15 = vpack.c.bf16 %v1705_v7, %v1701_v6  ;;  %v599_v18 = vunpack.c.1.s8 %v359_v35  ;;  %v1557_v19 = vmul.f32 %v3543_v32, %v1035_v12  ;;  %v1107_v20 = vcvt.s32.f32 %v595_v14 }
  0x4d   :  { %2293 = vmatpush.bf16.msra.mxu2 %v2073_v10  ;;  %v659_v21 = vunpack.c.0.s8 %v375_v44  ;;  %v663_v22 = vunpack.c.1.s8 %v375_v44  ;;  %v2001_v23 = vpack.c.bf16 %v1497_v16, %v1493_v11  ;;  %v1561_v24 = vmul.f32 %v3543_v32, %v1039_v17 }
  0x4e   :  { %2306 = vmatpush.bf16.msra.mxu3 %v2105_v15  ;;  %v1111_v25 = vcvt.s32.f32 %v599_v18  ;;  %v451_v26 = vunpack.c.0.s8 %v323_v49  ;;  %v1629_v27 = vmul.f32 %v3543_v32, %v1107_v20  ;;  %v455_v30 = vunpack.c.1.s8 %v323_v49 }
  0x4f   :  { %v1171_v28 = vcvt.s32.f32 %v659_v21  ;;  %v1175_v29 = vcvt.s32.f32 %v663_v22  ;;  %2269 = vmatpush.bf16.msra.mxu0 %v2001_v23  ;;  %v2033_v33 = vpack.c.bf16 %v1561_v24, %v1557_v19  ;;  %v515_v36 = vunpack.c.0.s8 %v339_v57 }
  0x50   :  { %v1633_v34 = vmul.f32 %v3543_v32, %v1111_v25  ;;  %v963_v35 = vcvt.s32.f32 %v451_v26  ;;  %v967_v39 = vcvt.s32.f32 %v455_v30  ;;  %v519_v40 = vunpack.c.1.s8 %v339_v57 }
  0x51   :  { %v1693_v37 = vmul.f32 %v3543_v32, %v1171_v28  ;;  %v1697_v38 = vmul.f32 %v3543_v32, %v1175_v29  ;;  %2282 = vmatpush.bf16.msra.mxu1 %v2033_v33  ;;  %v1027_v44 = vcvt.s32.f32 %v515_v36  ;;  %v763_v45 = vunpack.c.2.s8 %v399_v31  ;;  %v431_v28 = vld [vmem:[#allocation8 + $0x360] sm:$0xff] }
  0x52   :  { %v2069_v42 = vpack.c.bf16 %v1633_v34, %v1629_v27  ;;  %v1485_v43 = vmul.f32 %v3543_v32, %v963_v35  ;;  %v1489_v48 = vmul.f32 %v3543_v32, %v967_v39  ;;  %v1031_v49 = vcvt.s32.f32 %v519_v40 }
  0x53   :  { %v2101_v47 = vpack.c.bf16 %v1697_v38, %v1693_v37  ;;  %v767_v50 = vunpack.c.3.s8 %v399_v31  ;;  %v1549_v51 = vmul.f32 %v3543_v32, %v1027_v44  ;;  %v1275_v52 = vcvt.s32.f32 %v763_v45  ;;  %v447_v38 = vld [vmem:[#allocation8 + $0x3e0] sm:$0xff] }
  0x54   :  { %2294 = vmatpush.bf16.msra.mxu2 %v2069_v42  ;;  %v827_v53 = vunpack.c.2.s8 %v415_v41  ;;  %v831_v13 = vunpack.c.3.s8 %v415_v41  ;;  %v1997_v55 = vpack.c.bf16 %v1489_v48, %v1485_v43  ;;  %v1553_v56 = vmul.f32 %v3543_v32, %v1031_v49  ;;  %v395_v43 = vld [vmem:[#allocation8 + $0x240] sm:$0xff] }
  0x55   :  { %2307 = vmatpush.bf16.msra.mxu3 %v2101_v47  ;;  %v1279_v57 = vcvt.s32.f32 %v767_v50  ;;  %v587_v58 = vunpack.c.2.s8 %v355_v46  ;;  %v1797_v59 = vmul.f32 %v3543_v32, %v1275_v52  ;;  %v591_v62 = vunpack.c.3.s8 %v355_v46  ;;  %v411_v52 = vld [vmem:[#allocation8 + $0x2c0] sm:$0xff] }
  0x56   :  { %v1339_v60 = vcvt.s32.f32 %v827_v53  ;;  %v1343_v61 = vcvt.s32.f32 %v831_v13  ;;  %2270 = vmatpush.bf16.msra.mxu0 %v1997_v55  ;;  %v2029_v63 = vpack.c.bf16 %v1553_v56, %v1549_v51  ;;  %v651_v2 = vunpack.c.2.s8 %v371_v54 }
  0x57   :  { %v1801_v0 = vmul.f32 %v3543_v32, %v1279_v57  ;;  %v1099_v1 = vcvt.s32.f32 %v587_v58  ;;  %v1103_v5 = vcvt.s32.f32 %v591_v62  ;;  %v655_v6 = vunpack.c.3.s8 %v371_v54 }
  0x58   :  { %v1861_v3 = vmul.f32 %v3543_v32, %v1339_v60  ;;  %v1865_v4 = vmul.f32 %v3543_v32, %v1343_v61  ;;  %2283 = vmatpush.bf16.msra.mxu1 %v2029_v63  ;;  %v1163_v9 = vcvt.s32.f32 %v651_v2  ;;  %v755_v10 = vunpack.c.0.s8 %v399_v31 }
  0x59   :  { %v2153_v7 = vpack.c.bf16 %v1801_v0, %v1797_v59  ;;  %v1621_v8 = vmul.f32 %v3543_v32, %v1099_v1  ;;  %v1625_v12 = vmul.f32 %v3543_v32, %v1103_v5  ;;  %v1167_v14 = vcvt.s32.f32 %v655_v6 }
  0x5a   :  { %v2185_v11 = vpack.c.bf16 %v1865_v4, %v1861_v3  ;;  %v759_v15 = vunpack.c.1.s8 %v399_v31  ;;  %v1685_v16 = vmul.f32 %v3543_v32, %v1163_v9  ;;  %v1267_v17 = vcvt.s32.f32 %v755_v10 }
  0x5b   :  { %2315 = vmatpush.bf16.msrb.mxu0 %v2153_v7  ;;  %v819_v18 = vunpack.c.0.s8 %v415_v41  ;;  %v823_v19 = vunpack.c.1.s8 %v415_v41  ;;  %v2065_v20 = vpack.c.bf16 %v1625_v12, %v1621_v8  ;;  %v1689_v21 = vmul.f32 %v3543_v32, %v1167_v14 }
  0x5c   :  { %2328 = vmatpush.bf16.msrb.mxu1 %v2185_v11  ;;  %v1271_v22 = vcvt.s32.f32 %v759_v15  ;;  %v579_v23 = vunpack.c.0.s8 %v355_v46  ;;  %v1789_v24 = vmul.f32 %v3543_v32, %v1267_v17  ;;  %v583_v27 = vunpack.c.1.s8 %v355_v46 }
  0x5d   :  { %v1331_v25 = vcvt.s32.f32 %v819_v18  ;;  %v1335_v26 = vcvt.s32.f32 %v823_v19  ;;  %2295 = vmatpush.bf16.msra.mxu2 %v2065_v20  ;;  %v2097_v29 = vpack.c.bf16 %v1689_v21, %v1685_v16  ;;  %v643_v33 = vunpack.c.0.s8 %v371_v54 }
  0x5e   :  { %v1793_v30 = vmul.f32 %v3543_v32, %v1271_v22  ;;  %v1091_v31 = vcvt.s32.f32 %v579_v23  ;;  %v1095_v36 = vcvt.s32.f32 %v583_v27  ;;  %v647_v37 = vunpack.c.1.s8 %v371_v54 }
  0x5f   :  { %v1853_v34 = vmul.f32 %v3543_v32, %v1331_v25  ;;  %v1857_v35 = vmul.f32 %v3543_v32, %v1335_v26  ;;  %2308 = vmatpush.bf16.msra.mxu3 %v2097_v29  ;;  %v1155_v41 = vcvt.s32.f32 %v643_v33  ;;  %v891_v42 = vunpack.c.2.s8 %v431_v28  ;;  %v427_v25 = vld [vmem:[#allocation8 + $0x340] sm:$0xff] }
  0x60   :  { %v2149_v39 = vpack.c.bf16 %v1793_v30, %v1789_v24  ;;  %v1613_v40 = vmul.f32 %v3543_v32, %v1091_v31  ;;  %v1617_v45 = vmul.f32 %v3543_v32, %v1095_v36  ;;  %v1159_v46 = vcvt.s32.f32 %v647_v37 }
  0x61   :  { %v2181_v44 = vpack.c.bf16 %v1857_v35, %v1853_v34  ;;  %v895_v47 = vunpack.c.3.s8 %v431_v28  ;;  %v1677_v48 = vmul.f32 %v3543_v32, %v1155_v41  ;;  %v1403_v49 = vcvt.s32.f32 %v891_v42  ;;  %v443_v35 = vld [vmem:[#allocation8 + $0x3c0] sm:$0xff] }
  0x62   :  { %2316 = vmatpush.bf16.msrb.mxu0 %v2149_v39  ;;  %v955_v50 = vunpack.c.2.s8 %v447_v38  ;;  %v959_v51 = vunpack.c.3.s8 %v447_v38  ;;  %v2061_v53 = vpack.c.bf16 %v1617_v45, %v1613_v40  ;;  %v1681_v13 = vmul.f32 %v3543_v32, %v1159_v46  ;;  %v391_v40 = vld [vmem:[#allocation8 + $0x220] sm:$0xff] }
  0x63   :  { %2329 = vmatpush.bf16.msrb.mxu1 %v2181_v44  ;;  %v1407_v54 = vcvt.s32.f32 %v895_v47  ;;  %v747_v55 = vunpack.c.2.s8 %v395_v43  ;;  %v1925_v56 = vmul.f32 %v3543_v32, %v1403_v49  ;;  %v751_v59 = vunpack.c.3.s8 %v395_v43  ;;  %v407_v49 = vld [vmem:[#allocation8 + $0x2a0] sm:$0xff] }
  0x64   :  { %v1467_v57 = vcvt.s32.f32 %v955_v50  ;;  %v1471_v58 = vcvt.s32.f32 %v959_v51  ;;  %2296 = vmatpush.bf16.msra.mxu2 %v2061_v53  ;;  %v2093_v60 = vpack.c.bf16 %v1681_v13, %v1677_v48  ;;  %v811_v63 = vunpack.c.2.s8 %v411_v52 }
  0x65   :  { %v1929_v61 = vmul.f32 %v3543_v32, %v1407_v54  ;;  %v1259_v62 = vcvt.s32.f32 %v747_v55  ;;  %v1263_v2 = vcvt.s32.f32 %v751_v59  ;;  %v815_v3 = vunpack.c.3.s8 %v411_v52 }
  0x66   :  { %v1989_v0 = vmul.f32 %v3543_v32, %v1467_v57  ;;  %v1993_v1 = vmul.f32 %v3543_v32, %v1471_v58  ;;  %2309 = vmatpush.bf16.msra.mxu3 %v2093_v60  ;;  %v1323_v6 = vcvt.s32.f32 %v811_v63  ;;  %v883_v7 = vunpack.c.0.s8 %v431_v28 }
  0x67   :  { %v2217_v4 = vpack.c.bf16 %v1929_v61, %v1925_v56  ;;  %v1781_v5 = vmul.f32 %v3543_v32, %v1259_v62  ;;  %v1785_v9 = vmul.f32 %v3543_v32, %v1263_v2  ;;  %v1327_v10 = vcvt.s32.f32 %v815_v3 }
  0x68   :  { %v2249_v8 = vpack.c.bf16 %v1993_v1, %v1989_v0  ;;  %v887_v11 = vunpack.c.1.s8 %v431_v28  ;;  %v1845_v12 = vmul.f32 %v3543_v32, %v1323_v6  ;;  %v1395_v14 = vcvt.s32.f32 %v883_v7 }
  0x69   :  { %2341 = vmatpush.bf16.msrb.mxu2 %v2217_v4  ;;  %v947_v15 = vunpack.c.0.s8 %v447_v38  ;;  %v951_v16 = vunpack.c.1.s8 %v447_v38  ;;  %v2145_v17 = vpack.c.bf16 %v1785_v9, %v1781_v5  ;;  %v1849_v18 = vmul.f32 %v3543_v32, %v1327_v10 }
  0x6a   :  { %2354 = vmatpush.bf16.msrb.mxu3 %v2249_v8  ;;  %v1399_v19 = vcvt.s32.f32 %v887_v11  ;;  %v739_v20 = vunpack.c.0.s8 %v395_v43  ;;  %v1917_v21 = vmul.f32 %v3543_v32, %v1395_v14  ;;  %v743_v24 = vunpack.c.1.s8 %v395_v43 }
  0x6b   :  { %v1459_v22 = vcvt.s32.f32 %v947_v15  ;;  %v1463_v23 = vcvt.s32.f32 %v951_v16  ;;  %2317 = vmatpush.bf16.msrb.mxu0 %v2145_v17  ;;  %v2177_v26 = vpack.c.bf16 %v1849_v18, %v1845_v12  ;;  %v803_v29 = vunpack.c.0.s8 %v411_v52 }
  0x6c   :  { %v1921_v27 = vmul.f32 %v3543_v32, %v1399_v19  ;;  %v1251_v28 = vcvt.s32.f32 %v739_v20  ;;  %v1255_v33 = vcvt.s32.f32 %v743_v24  ;;  %v807_v34 = vunpack.c.1.s8 %v411_v52 }
  0x6d   :  { %v1981_v30 = vmul.f32 %v3543_v32, %v1459_v22  ;;  %v1985_v31 = vmul.f32 %v3543_v32, %v1463_v23  ;;  %2330 = vmatpush.bf16.msrb.mxu1 %v2177_v26  ;;  %v1315_v38 = vcvt.s32.f32 %v803_v29  ;;  %v875_v39 = vunpack.c.2.s8 %v427_v25  ;;  %v3670_v22 = vld [vmem:[#allocation7] sm:$0xff] }
  0x6e   :  { %v2213_v36 = vpack.c.bf16 %v1921_v27, %v1917_v21  ;;  %v1773_v37 = vmul.f32 %v3543_v32, %v1251_v28  ;;  %v1777_v42 = vmul.f32 %v3543_v32, %v1255_v33  ;;  %v1319_v43 = vcvt.s32.f32 %v807_v34  ;;  %v423_v27 = vld [vmem:[#allocation8 + $0x320] sm:$0xff] }
  0x6f   :  { %v2245_v41 = vpack.c.bf16 %v1985_v31, %v1981_v30  ;;  %v879_v44 = vunpack.c.3.s8 %v427_v25  ;;  %v1837_v45 = vmul.f32 %v3543_v32, %v1315_v38  ;;  %v1387_v46 = vcvt.s32.f32 %v875_v39  ;;  %v439_v33 = vld [vmem:[#allocation8 + $0x3a0] sm:$0xff] }
  0x70   :  { %2342 = vmatpush.bf16.msrb.mxu2 %v2213_v36  ;;  %v939_v47 = vunpack.c.2.s8 %v443_v35  ;;  %v943_v48 = vunpack.c.3.s8 %v443_v35  ;;  %v2141_v50 = vpack.c.bf16 %v1777_v42, %v1773_v37  ;;  %v1841_v51 = vmul.f32 %v3543_v32, %v1319_v43  ;;  %v3677_v38 = vld [vmem:[#allocation8 + $0x200] sm:$0xff] }
  0x71   :  { %2355 = vmatpush.bf16.msrb.mxu3 %v2245_v41  ;;  %v1391_v52 = vcvt.s32.f32 %v879_v44  ;;  %v731_v53 = vunpack.c.2.s8 %v391_v40  ;;  %v1909_v13 = vmul.f32 %v3543_v32, %v1387_v46  ;;  %v735_v56 = vunpack.c.3.s8 %v391_v40 }
  0x72   :  { %v1451_v54 = vcvt.s32.f32 %v939_v47  ;;  %v1455_v55 = vcvt.s32.f32 %v943_v48  ;;  %2318 = vmatpush.bf16.msrb.mxu0 %v2141_v50  ;;  %v2173_v57 = vpack.c.bf16 %v1841_v51, %v1837_v45  ;;  %v795_v60 = vunpack.c.2.s8 %v407_v49 }
  0x73   :  { %v1913_v58 = vmul.f32 %v3543_v32, %v1391_v52  ;;  %v1243_v59 = vcvt.s32.f32 %v731_v53  ;;  %v1247_v63 = vcvt.s32.f32 %v735_v56  ;;  %v799_v0 = vunpack.c.3.s8 %v407_v49 }
  0x74   :  { %v1973_v61 = vmul.f32 %v3543_v32, %v1451_v54  ;;  %v1977_v62 = vmul.f32 %v3543_v32, %v1455_v55  ;;  %2331 = vmatpush.bf16.msrb.mxu1 %v2173_v57  ;;  %v1307_v3 = vcvt.s32.f32 %v795_v60  ;;  %v867_v4 = vunpack.c.0.s8 %v427_v25  ;;  %v403_v54 = vld [vmem:[#allocation8 + $0x280] sm:$0xff] }
  0x75   :  { %v2209_v1 = vpack.c.bf16 %v1913_v58, %v1909_v13  ;;  %v1765_v2 = vmul.f32 %v3543_v32, %v1243_v59  ;;  %v1769_v6 = vmul.f32 %v3543_v32, %v1247_v63  ;;  %v1311_v7 = vcvt.s32.f32 %v799_v0 }
  0x76   :  { %v2241_v5 = vpack.c.bf16 %v1977_v62, %v1973_v61  ;;  %v871_v8 = vunpack.c.1.s8 %v427_v25  ;;  %v1829_v9 = vmul.f32 %v3543_v32, %v1307_v3  ;;  %v1379_v10 = vcvt.s32.f32 %v867_v4 }
  0x77   :  { %2343 = vmatpush.bf16.msrb.mxu2 %v2209_v1  ;;  %v931_v11 = vunpack.c.0.s8 %v443_v35  ;;  %v935_v12 = vunpack.c.1.s8 %v443_v35  ;;  %v2137_v14 = vpack.c.bf16 %v1769_v6, %v1765_v2  ;;  %v1833_v15 = vmul.f32 %v3543_v32, %v1311_v7 }
  0x78   :  { %2356 = vmatpush.bf16.msrb.mxu3 %v2241_v5  ;;  %v1383_v16 = vcvt.s32.f32 %v871_v8  ;;  %v723_v17 = vunpack.c.0.s8 %v391_v40  ;;  %v1901_v18 = vmul.f32 %v3543_v32, %v1379_v10  ;;  %v727_v21 = vunpack.c.1.s8 %v391_v40 }
  0x79   :  { %v1443_v19 = vcvt.s32.f32 %v931_v11  ;;  %v1447_v20 = vcvt.s32.f32 %v935_v12  ;;  %2319 = vmatpush.bf16.msrb.mxu0 %v2137_v14  ;;  %v2169_v23 = vpack.c.bf16 %v1833_v15, %v1829_v9  ;;  %v787_v26 = vunpack.c.0.s8 %v407_v49 }
  0x7a   :  { %v1905_v24 = vmul.f32 %v3543_v32, %v1383_v16  ;;  %v1235_v25 = vcvt.s32.f32 %v723_v17  ;;  %v1239_v30 = vcvt.s32.f32 %v727_v21  ;;  %v791_v31 = vunpack.c.1.s8 %v407_v49 }
  0x7b   :  { %v1965_v28 = vmul.f32 %v3543_v32, %v1443_v19  ;;  %v1969_v29 = vmul.f32 %v3543_v32, %v1447_v20  ;;  %2332 = vmatpush.bf16.msrb.mxu1 %v2169_v23  ;;  %v1299_v36 = vcvt.s32.f32 %v787_v26  ;;  %v131_v37 = vperm.slane %v3670_v22, 0 }
  0x7c   :  { %v2205_v34 = vpack.c.bf16 %v1905_v24, %v1901_v18  ;;  %v1757_v35 = vmul.f32 %v3543_v32, %v1235_v25  ;;  %v1761_v40 = vmul.f32 %v3543_v32, %v1239_v30  ;;  %v1303_v41 = vcvt.s32.f32 %v791_v31  ;;  %v336_v25 = vld [vmem:[#allocation8 + $0x68] sm:$0xff] }
  0x7d   :  { %v2237_v39 = vpack.c.bf16 %v1969_v29, %v1965_v28  ;;  %v859_v42 = vunpack.c.2.s8 %v423_v27  ;;  %v1821_v43 = vmul.f32 %v3543_v32, %v1299_v36  ;;  %v863_v44 = vunpack.c.3.s8 %v423_v27 }
  0x7e   :  { %2344 = vmatpush.bf16.msrb.mxu2 %v2205_v34  ;;  %v923_v45 = vunpack.c.2.s8 %v439_v33  ;;  %v927_v46 = vunpack.c.3.s8 %v439_v33  ;;  %v2133_v47 = vpack.c.bf16 %v1761_v40, %v1757_v35  ;;  %v1825_v48 = vmul.f32 %v3543_v32, %v1303_v41  ;;  %v352_v41 = vld [vmem:[#allocation8 + $0xe8] sm:$0xff] }
  0x7f   :  { %2357 = vmatpush.bf16.msrb.mxu3 %v2237_v39  ;;  %v1371_v49 = vcvt.s32.f32 %v859_v42  ;;  %v715_v50 = vunpack.c.2.s8 %v3677_v38  ;;  %v1375_v51 = vcvt.s32.f32 %v863_v44  ;;  %v719_v13 = vunpack.c.3.s8 %v3677_v38  ;;  %v3701_v42 = vld [vmem:[#allocation8 + $0x300] sm:$0xff] }
  0x80   :  { %v1435_v52 = vcvt.s32.f32 %v923_v45  ;;  %v1439_v53 = vcvt.s32.f32 %v927_v46  ;;  %2320 = vmatpush.bf16.msrb.mxu0 %v2133_v47  ;;  %v2165_v55 = vpack.c.bf16 %v1825_v48, %v1821_v43  ;;  %v132_v56 = vperm.slane %v3670_v22, 1 }
  0x81   :  { %v1893_v57 = vmul.f32 %v3543_v32, %v1371_v49  ;;  %v1227_v58 = vcvt.s32.f32 %v715_v50  ;;  %v1897_v59 = vmul.f32 %v3543_v32, %v1375_v51  ;;  %v1231_v62 = vcvt.s32.f32 %v719_v13 }
  0x82   :  { %v1957_v60 = vmul.f32 %v3543_v32, %v1435_v52  ;;  %v1961_v61 = vmul.f32 %v3543_v32, %v1439_v53  ;;  %2333 = vmatpush.bf16.msrb.mxu1 %v2165_v55  ;;  %v779_v0 = vunpack.c.2.s8 %v403_v54  ;;  %v783_v1 = vunpack.c.3.s8 %v403_v54 }
  0x83   :  { %v1749_v63 = vmul.f32 %v3543_v32, %v1227_v58  ;;  %v851_v2 = vunpack.c.0.s8 %v423_v27  ;;  %v2201_v3 = vpack.c.bf16 %v1897_v59, %v1893_v57  ;;  %v1753_v5 = vmul.f32 %v3543_v32, %v1231_v62 }
  0x84   :  { %v2233_v4 = vpack.c.bf16 %v1961_v61, %v1957_v60  ;;  %v855_v6 = vunpack.c.1.s8 %v423_v27  ;;  %v1291_v7 = vcvt.s32.f32 %v779_v0  ;;  %v1295_v8 = vcvt.s32.f32 %v783_v1 }
  0x85   :  { %v1363_v9 = vcvt.s32.f32 %v851_v2  ;;  %v915_v10 = vunpack.c.0.s8 %v439_v33  ;;  %2345 = vmatpush.bf16.msrb.mxu2 %v2201_v3  ;;  %v2129_v11 = vpack.c.bf16 %v1753_v5, %v1749_v63  ;;  %v919_v14 = vunpack.c.1.s8 %v439_v33 }
  0x86   :  { %2358 = vmatpush.bf16.msrb.mxu3 %v2233_v4  ;;  %v1367_v12 = vcvt.s32.f32 %v855_v6  ;;  %v133_v15 = vperm.slane %v3670_v22, 2  ;;  %v1813_v16 = vmul.f32 %v3543_v32, %v1291_v7  ;;  %v1817_v17 = vmul.f32 %v3543_v32, %v1295_v8 }
  0x87   :  { %v1885_v18 = vmul.f32 %v3543_v32, %v1363_v9  ;;  %v1427_v19 = vcvt.s32.f32 %v915_v10  ;;  %2321 = vmatpush.bf16.msrb.mxu0 %v2129_v11  ;;  %v1431_v21 = vcvt.s32.f32 %v919_v14  ;;  %v134_v23 = vperm.slane %v3670_v22, 3 }
  0x88   :  { %v1889_v20 = vmul.f32 %v3543_v32, %v1367_v12  ;;  %v707_v24 = vunpack.c.0.s8 %v3677_v38  ;;  %v2161_v26 = vpack.c.bf16 %v1817_v17, %v1813_v16  ;;  %v711_v28 = vunpack.c.1.s8 %v3677_v38  ;;  %v3279_v38 = vld [vmem:[#allocation10] sm:$0xf] }
  0x89   :  { %v1949_v27 = vmul.f32 %v3543_v32, %v1427_v19  ;;  %v771_v29 = vunpack.c.0.s8 %v403_v54  ;;  %v1953_v31 = vmul.f32 %v3543_v32, %v1431_v21  ;;  %v775_v34 = vunpack.c.1.s8 %v403_v54  ;;  %v435_v54 = vld [vmem:[#allocation8 + $0x380] sm:$0xff] }
  0x8a   :  { %v2197_v30 = vpack.c.bf16 %v1889_v20, %v1885_v18  ;;  %v1219_v33 = vcvt.s32.f32 %v707_v24  ;;  %2334 = vmatpush.bf16.msrb.mxu1 %v2161_v26  ;;  %v1223_v35 = vcvt.s32.f32 %v711_v28  ;;  %v508_v39 = vunpack.c.2.s8 %v336_v25 }
  0x8b   :  { %v1283_v36 = vcvt.s32.f32 %v771_v29  ;;  %v512_v40 = vunpack.c.3.s8 %v336_v25  ;;  %v2229_v43 = vpack.c.bf16 %v1953_v31, %v1949_v27  ;;  %v1287_v45 = vcvt.s32.f32 %v775_v34 }
  0x8c   :  { %2346 = vmatpush.bf16.msrb.mxu2 %v2197_v30  ;;  %v1741_v44 = vmul.f32 %v3543_v32, %v1219_v33  ;;  %v3704_v46 = vperm.slane %v3279_v38, 1  ;;  %v1745_v47 = vmul.f32 %v3543_v32, %v1223_v35  ;;  %v1020_v49 = vcvt.s32.f32 %v508_v39 }
  0x8d   :  { %v1805_v48 = vmul.f32 %v3543_v32, %v1283_v36  ;;  %v1024_v50 = vcvt.s32.f32 %v512_v40  ;;  %2359 = vmatpush.bf16.msrb.mxu3 %v2229_v43  ;;  %v1809_v51 = vmul.f32 %v3543_v32, %v1287_v45  ;;  %v572_v52 = vunpack.c.2.s8 %v352_v41  ;;  %v3747_v40 = vld [vmem:[#allocation8 + $0x1e8] sm:$0xff] }
  0x8e   :  { %v576_v53 = vunpack.c.3.s8 %v352_v41  ;;  %v843_v13 = vunpack.c.2.s8 %v3701_v42  ;;  %v2125_v55 = vpack.c.bf16 %v1745_v47, %v1741_v44  ;;  %v3711_v57 = vmul.f32 %v3704_v46, %v1020_v49 }
  0x8f   :  { %v3714_v58 = vmul.f32 %v3704_v46, %v1024_v50  ;;  %v847_v59 = vunpack.c.3.s8 %v3701_v42  ;;  %v2157_v60 = vpack.c.bf16 %v1809_v51, %v1805_v48  ;;  %v1084_v61 = vcvt.s32.f32 %v572_v52 }
  0x90   :  { %v1088_v62 = vcvt.s32.f32 %v576_v53  ;;  %v1355_v63 = vcvt.s32.f32 %v843_v13  ;;  %2322 = vmatpush.bf16.msrb.mxu0 %v2125_v55  ;;  %v907_v2 = vunpack.c.2.s8 %v435_v54  ;;  %v911_v3 = vunpack.c.3.s8 %v435_v54 }
  0x91   :  { %v2026_v0 = vpack.c.bf16 %v3714_v58, %v3711_v57  ;;  %v1359_v1 = vcvt.s32.f32 %v847_v59  ;;  %2335 = vmatpush.bf16.msrb.mxu1 %v2157_v60  ;;  %v3720_v4 = vmul.f32 %v3704_v46, %v1084_v61  ;;  %v500_v7 = vunpack.c.0.s8 %v336_v25  ;;  %v3764_v60 = vld [vmem:[#allocation8 + $0xc8] sm:$0xff] }
  0x92   :  { %v3723_v5 = vmul.f32 %v3704_v46, %v1088_v62  ;;  %v1877_v6 = vmul.f32 %v3543_v32, %v1355_v63  ;;  %v1419_v9 = vcvt.s32.f32 %v907_v2  ;;  %v1423_v10 = vcvt.s32.f32 %v911_v3 }
  0x93   :  { %v1881_v8 = vmul.f32 %v3543_v32, %v1359_v1  ;;  %v504_v11 = vunpack.c.1.s8 %v336_v25  ;;  %v1012_v14 = vcvt.s32.f32 %v500_v7  ;;  %v564_v16 = vunpack.c.0.s8 %v352_v41  ;;  %v3735_v25 = vld [vmem:[#allocation8 + $0x168] sm:$0xff] }
  0x94   :  { %v2058_v12 = vpack.c.bf16 %v3723_v5, %v3720_v4  ;;  %v568_v17 = vunpack.c.1.s8 %v352_v41  ;;  %v1941_v19 = vmul.f32 %v3543_v32, %v1419_v9  ;;  %v1945_v20 = vmul.f32 %v3543_v32, %v1423_v10 }
  0x95   :  { %v2193_v18 = vpack.c.bf16 %v1881_v8, %v1877_v6  ;;  %v1016_v21 = vcvt.s32.f32 %v504_v11  ;;  %v3732_v24 = vmul.f32 %v3704_v46, %v1012_v14  ;;  %v1076_v26 = vcvt.s32.f32 %v564_v16 }
  0x96   :  { %v1080_v27 = vcvt.s32.f32 %v568_v17  ;;  %v835_v28 = vunpack.c.0.s8 %v3701_v42  ;;  %v2225_v29 = vpack.c.bf16 %v1945_v20, %v1941_v19  ;;  %v839_v31 = vunpack.c.1.s8 %v3701_v42  ;;  %v3752_v42 = vld [vmem:[#allocation8 + $0x48] sm:$0xff] }
  0x97   :  { %2347 = vmatpush.bf16.msrb.mxu2 %v2193_v18  ;;  %v3738_v30 = vmul.f32 %v3704_v46, %v1016_v21  ;;  %v899_v33 = vunpack.c.0.s8 %v435_v54  ;;  %v3742_v34 = vmul.f32 %v3704_v46, %v1076_v26  ;;  %v903_v39 = vunpack.c.1.s8 %v435_v54 }
  0x98   :  { %v3745_v35 = vmul.f32 %v3704_v46, %v1080_v27  ;;  %v1347_v36 = vcvt.s32.f32 %v835_v28  ;;  %2360 = vmatpush.bf16.msrb.mxu3 %v2225_v29  ;;  %v1351_v43 = vcvt.s32.f32 %v839_v31  ;;  %v636_v45 = vunpack.c.2.s8 %v3735_v25 }
  0x99   :  { %v2022_v41 = vpack.c.bf16 %v3738_v30, %v3732_v24  ;;  %v1411_v44 = vcvt.s32.f32 %v899_v33  ;;  %v1415_v48 = vcvt.s32.f32 %v903_v39  ;;  %v640_v49 = vunpack.c.3.s8 %v3735_v25  ;;  %v3864_v24 = vld [vmem:[#allocation8 + $0xa8] sm:$0xff] }
  0x9a   :  { %v2054_v38 = vpack.c.bf16 %v3745_v35, %v3742_v34  ;;  %v1869_v47 = vmul.f32 %v3543_v32, %v1347_v36  ;;  %v1873_v50 = vmul.f32 %v3543_v32, %v1351_v43  ;;  %v1148_v52 = vcvt.s32.f32 %v636_v45 }
  0x9b   :  { %v1933_v51 = vmul.f32 %v3543_v32, %v1411_v44  ;;  %v700_v53 = vunpack.c.2.s8 %v3747_v40  ;;  %v1937_v13 = vmul.f32 %v3543_v32, %v1415_v48  ;;  %v1152_v54 = vcvt.s32.f32 %v640_v49 }
  0x9c   :  { %v704_v55 = vunpack.c.3.s8 %v3747_v40  ;;  %v492_v59 = vunpack.c.2.s8 %v3752_v42  ;;  %v2189_v61 = vpack.c.bf16 %v1873_v50, %v1869_v47  ;;  %v3767_v62 = vmul.f32 %v3704_v46, %v1148_v52 }
  0x9d   :  { %v1212_v63 = vcvt.s32.f32 %v700_v53  ;;  %v496_v1 = vunpack.c.3.s8 %v3752_v42  ;;  %v2221_v2 = vpack.c.bf16 %v1937_v13, %v1933_v51  ;;  %v3771_v3 = vmul.f32 %v3704_v46, %v1152_v54 }
  0x9e   :  { %v1216_v6 = vcvt.s32.f32 %v704_v55  ;;  %v1004_v32 = vcvt.s32.f32 %v492_v59  ;;  %2348 = vmatpush.bf16.msrb.mxu2 %v2189_v61  ;;  %v556_v9 = vunpack.c.2.s8 %v3764_v60  ;;  %v560_v10 = vunpack.c.3.s8 %v3764_v60 }
  0x9f   :  { %v3774_v7 = vmul.f32 %v3704_v46, %v1212_v63  ;;  %v1008_v8 = vcvt.s32.f32 %v496_v1  ;;  %2361 = vmatpush.bf16.msrb.mxu3 %v2221_v2  ;;  %v2090_v14 = vpack.c.bf16 %v3771_v3, %v3767_v62  ;;  %v135_v18 = vperm.slane %v3670_v22, 4 }
  0xa0   :  { %v200_v11 = vpop.f32.mrf.mxu0  ;;  %v3781_v16 = vmul.f32 %v3704_v46, %v1216_v6  ;;  %v3784_v17 = vmul.f32 %v3704_v46, %v1004_v32  ;;  %v213_v20 = vpop.f32.mrf.mxu1  ;;  %v1068_v26 = vcvt.s32.f32 %v556_v9  ;;  %v1072_v27 = vcvt.s32.f32 %v560_v10 }
  0xa1   :  { %v201_v19 = vadd.f32 %v200_v11, %v131_v37  ;;  %v3790_v21 = vmul.f32 %v3704_v46, %v1008_v8  ;;  %v214_v28 = vadd.f32 %v213_v20, %v132_v56  ;;  %v136_v31 = vperm.slane %v3670_v22, 5  ;;  %v3833_v8 = vld [vmem:[#allocation8 + $0x148] sm:$0xff] }
  0xa2   :  { %v2122_v29 = vpack.c.bf16 %v3781_v16, %v3774_v7  ;;  %v628_v33 = vunpack.c.0.s8 %v3735_v25  ;;  %v3801_v39 = vmul.f32 %v3704_v46, %v1068_v26  ;;  %v3804_v43 = vmul.f32 %v3704_v46, %v1072_v27  ;;  %v3843_v20 = vld [vmem:[#allocation8 + $0x1c8] sm:$0xff] }
  0xa3   :  { %v307_v36 = vmax.f32 %v201_v19, 0.0  ;;  %v2018_v37 = vpack.c.bf16 %v3790_v21, %v3784_v17  ;;  %v308_v44 = vmax.f32 %v214_v28, 0.0  ;;  %v632_v56 = vunpack.c.1.s8 %v3735_v25 }
  0xa4   :  { %v1140_v45 = vcvt.s32.f32 %v628_v33  ;;  %v692_v47 = vunpack.c.0.s8 %v3747_v40  ;;  %v2050_v49 = vpack.c.bf16 %v3804_v43, %v3801_v39  ;;  %v696_v50 = vunpack.c.1.s8 %v3747_v40 }
  0xa5   :  { %v3808_v48 = vpack.c.bf16 %v307_v36, %v307_v36  ;;  %v484_v51 = vunpack.c.0.s8 %v3752_v42  ;;  %v3814_v52 = vpack.c.bf16 %v308_v44, %v308_v44  ;;  %v1144_v53 = vcvt.s32.f32 %v632_v56  ;;  %v3856_v36 = vld [vmem:[#allocation8 + $0x28] sm:$0xff] }
  0xa6   :  { %v3817_v13 = vmul.f32 %v3704_v46, %v1140_v45  ;;  %v1204_v54 = vcvt.s32.f32 %v692_v47  ;;  %v1208_v55 = vcvt.s32.f32 %v696_v50  ;;  %v488_v59 = vunpack.c.1.s8 %v3752_v42 }
  0xa7   :  { %v226_v25 = vpop.f32.mrf.mxu2  ;;  %2271 = vmatmul.bf16.vlgmr.msra.gmra.mxu0 %v3808_v48  ;;  %v996_v61 = vcvt.s32.f32 %v484_v51  ;;  %v548_v63 = vunpack.c.0.s8 %v3764_v60  ;;  %2284 = vmatmul.bf16.vlgmr.msra.gmra.mxu1 %v3814_v52  ;;  %v1666_v6 = vmul.f32 %v3704_v46, %v1144_v53  ;;  %v552_v42 = vunpack.c.1.s8 %v3764_v60 }
  0xa8   :  { %v227_v40 = vadd.f32 %v226_v25, %v133_v15  ;;  %v239_v1 = vpop.f32.mrf.mxu3  ;;  %2367 = vmatpush.bf16.msra.mxu0 %v2026_v0  ;;  %v202_v2 = vpop.f32.mrf.mxu0  ;;  %v3830_v32 = vmul.f32 %v3704_v46, %v1204_v54  ;;  %2380 = vmatpush.bf16.msra.mxu1 %v2058_v12  ;;  %v1730_v57 = vmul.f32 %v3704_v46, %v1208_v55  ;;  %v1000_v58 = vcvt.s32.f32 %v488_v59 }
  0xa9   :  { %v240_v15 = vadd.f32 %v239_v1, %v134_v23  ;;  %v215_v9 = vpop.f32.mrf.mxu1  ;;  %v1518_v0 = vmul.f32 %v3704_v46, %v996_v61  ;;  %v2086_v11 = vpack.c.bf16 %v1666_v6, %v3817_v13  ;;  %v1060_v19 = vcvt.s32.f32 %v548_v63 }
  0xaa   :  { %v309_v10 = vmax.f32 %v227_v40, 0.0  ;;  %v1064_v60 = vcvt.s32.f32 %v552_v42  ;;  %v2118_v23 = vpack.c.bf16 %v1730_v57, %v3830_v32  ;;  %v1522_v27 = vmul.f32 %v3704_v46, %v1000_v58 }
  0xab   :  { %v310_v26 = vmax.f32 %v240_v15, 0.0  ;;  %v620_v4 = vunpack.c.2.s8 %v3833_v8  ;;  %v1582_v12 = vmul.f32 %v3704_v46, %v1060_v19  ;;  %v624_v33 = vunpack.c.3.s8 %v3833_v8 }
  0xac   :  { %v3848_v5 = vpack.c.bf16 %v309_v10, %v309_v10  ;;  %2368 = vmatpush.bf16.msra.mxu0 %v2022_v41  ;;  %v1586_v28 = vmul.f32 %v3704_v46, %v1064_v60  ;;  %2381 = vmatpush.bf16.msra.mxu1 %v2054_v38  ;;  %v2014_v56 = vpack.c.bf16 %v1522_v27, %v1518_v0  ;;  %v684_v47 = vunpack.c.2.s8 %v3843_v20 }
  0xad   :  { %v3858_v44 = vpack.c.bf16 %v310_v26, %v310_v26  ;;  %v1132_v45 = vcvt.s32.f32 %v620_v4  ;;  %v1136_v41 = vcvt.s32.f32 %v624_v33  ;;  %v688_v50 = vunpack.c.3.s8 %v3843_v20 }
  0xae   :  { %2297 = vmatmul.bf16.vlgmr.msra.gmra.mxu2 %v3848_v5  ;;  %v2046_v30 = vpack.c.bf16 %v1586_v28, %v1582_v12  ;;  %v137_v51 = vperm.slane %v3670_v22, 6  ;;  %v1196_v38 = vcvt.s32.f32 %v684_v47  ;;  %v138_v53 = vperm.slane %v3670_v22, 7 }
  0xaf   :  { %2310 = vmatmul.bf16.vlgmr.msra.gmra.mxu3 %v3858_v44  ;;  %2393 = vmatpush.bf16.msra.mxu2 %v2090_v14  ;;  %v228_v34 = vpop.f32.mrf.mxu2  ;;  %v1654_v35 = vmul.f32 %v3704_v46, %v1132_v45  ;;  %v476_v13 = vunpack.c.2.s8 %v3856_v36  ;;  %v1658_v62 = vmul.f32 %v3704_v46, %v1136_v41  ;;  %v1200_v3 = vcvt.s32.f32 %v688_v50 }
  0xb0   :  { %2406 = vmatpush.bf16.msra.mxu3 %v2122_v29  ;;  %v241_v54 = vpop.f32.mrf.mxu3  ;;  %2369 = vmatpush.bf16.msra.mxu0 %v2018_v37  ;;  %v252_v25 = vpop.f32.mrf.mxu0  ;;  %v480_v14 = vunpack.c.3.s8 %v3856_v36  ;;  %v540_v55 = vunpack.c.2.s8 %v3864_v24  ;;  %v1718_v29 = vmul.f32 %v3704_v46, %v1196_v38  ;;  %v544_v21 = vunpack.c.3.s8 %v3864_v24 }
  0xb1   :  { %2382 = vmatpush.bf16.msra.mxu1 %v2050_v49  ;;  %v253_v7 = vadd.f32 %v252_v25, %v135_v18  ;;  %v265_v16 = vpop.f32.mrf.mxu1  ;;  %v988_v17 = vcvt.s32.f32 %v476_v13  ;;  %v2082_v59 = vpack.c.bf16 %v1658_v62, %v1654_v35  ;;  %v1722_v61 = vmul.f32 %v3704_v46, %v1200_v3  ;;  %v3921_v3 = vld [vmem:[#allocation8 + $0x8] sm:$0xff] }
  0xb2   :  { %v266_v37 = vadd.f32 %v265_v16, %v136_v31  ;;  %v992_v63 = vcvt.s32.f32 %v480_v14  ;;  %v1052_v43 = vcvt.s32.f32 %v540_v55  ;;  %v1056_v49 = vcvt.s32.f32 %v544_v21 }
  0xb3   :  { %v311_v40 = vmax.f32 %v253_v7, 0.0  ;;  %2394 = vmatpush.bf16.msra.mxu2 %v2086_v11  ;;  %v1510_v39 = vmul.f32 %v3704_v46, %v988_v17  ;;  %v2114_v1 = vpack.c.bf16 %v1722_v61, %v1718_v29  ;;  %v612_v6 = vunpack.c.0.s8 %v3833_v8  ;;  %v3925_v29 = vld [vmem:[#allocation8 + $0x88] sm:$0xff] }
  0xb4   :  { %v312_v18 = vmax.f32 %v266_v37, 0.0  ;;  %2407 = vmatpush.bf16.msra.mxu3 %v2118_v23  ;;  %2370 = vmatpush.bf16.msra.mxu0 %v2014_v56  ;;  %v1514_v2 = vmul.f32 %v3704_v46, %v992_v63  ;;  %v1574_v31 = vmul.f32 %v3704_v46, %v1052_v43  ;;  %v1578_v32 = vmul.f32 %v3704_v46, %v1056_v49 }
  0xb5   :  { %v3898_v22 = vpack.c.bf16 %v311_v40, %v311_v40  ;;  %2383 = vmatpush.bf16.msra.mxu1 %v2046_v30  ;;  %v616_v42 = vunpack.c.1.s8 %v3833_v8  ;;  %v1124_v57 = vcvt.s32.f32 %v612_v6  ;;  %v676_v58 = vunpack.c.0.s8 %v3843_v20 }
  0xb6   :  { %v3903_v15 = vpack.c.bf16 %v312_v18, %v312_v18  ;;  %v2010_v9 = vpack.c.bf16 %v1514_v2, %v1510_v39  ;;  %v2042_v10 = vpack.c.bf16 %v1578_v32, %v1574_v31  ;;  %v680_v19 = vunpack.c.1.s8 %v3843_v20 }
  0xb7   :  { %2395 = vmatpush.bf16.msra.mxu2 %v2082_v59  ;;  %v278_v0 = vpop.f32.mrf.mxu2  ;;  %2323 = vmatmul.bf16.vlgmr.msrb.gmra.mxu0 %v3898_v22  ;;  %v1128_v11 = vcvt.s32.f32 %v616_v42  ;;  %v468_v60 = vunpack.c.0.s8 %v3856_v36  ;;  %v1646_v8 = vmul.f32 %v3704_v46, %v1124_v57  ;;  %v1188_v27 = vcvt.s32.f32 %v676_v58 }
  0xb8   :  { %2408 = vmatpush.bf16.msra.mxu3 %v2114_v1  ;;  %v279_v26 = vadd.f32 %v278_v0, %v137_v51  ;;  %v291_v23 = vpop.f32.mrf.mxu3  ;;  %2336 = vmatmul.bf16.vlgmr.msrb.gmra.mxu1 %v3903_v15  ;;  %v472_v4 = vunpack.c.1.s8 %v3856_v36  ;;  %v254_v12 = vpop.f32.mrf.mxu0  ;;  %v1192_v56 = vcvt.s32.f32 %v680_v19  ;;  %v532_v50 = vunpack.c.0.s8 %v3864_v24  ;;  %v360_v51 = vld [vmem:[#allocation8 + $0x128] sm:$0xff] }
  0xb9   :  { %v292_v28 = vadd.f32 %v291_v23, %v138_v53  ;;  %2371 = vmatpush.bf16.msra.mxu0 %v2010_v9  ;;  %2384 = vmatpush.bf16.msra.mxu1 %v2042_v10  ;;  %v1650_v33 = vmul.f32 %v3704_v46, %v1128_v11  ;;  %v980_v20 = vcvt.s32.f32 %v468_v60  ;;  %v267_v45 = vpop.f32.mrf.mxu1  ;;  %v1710_v30 = vmul.f32 %v3704_v46, %v1188_v27  ;;  %v376_v53 = vld [vmem:[#allocation8 + $0x1a8] sm:$0xff] }
  0xba   :  { %v313_v47 = vmax.f32 %v279_v26, 0.0  ;;  %v984_v41 = vcvt.s32.f32 %v472_v4  ;;  %v1714_v36 = vmul.f32 %v3704_v46, %v1192_v56  ;;  %v536_v25 = vunpack.c.1.s8 %v3864_v24 }
  0xbb   :  { %v314_v34 = vmax.f32 %v292_v28, 0.0  ;;  %v2078_v35 = vpack.c.bf16 %v1650_v33, %v1646_v8  ;;  %v1502_v38 = vmul.f32 %v3704_v46, %v980_v20  ;;  %v1044_v62 = vcvt.s32.f32 %v532_v50 }
  0xbc   :  { %v3917_v13 = vpack.c.bf16 %v313_v47, %v313_v47  ;;  %v1506_v54 = vmul.f32 %v3704_v46, %v984_v41  ;;  %v2110_v55 = vpack.c.bf16 %v1714_v36, %v1710_v30  ;;  %v604_v7 = vunpack.c.2.s8 %v360_v51 }
  0xbd   :  { %v3923_v14 = vpack.c.bf16 %v314_v34, %v314_v34  ;;  %2396 = vmatpush.bf16.msra.mxu2 %v2078_v35  ;;  %v608_v16 = vunpack.c.3.s8 %v360_v51  ;;  %v1048_v21 = vcvt.s32.f32 %v536_v25  ;;  %v1566_v37 = vmul.f32 %v3704_v46, %v1044_v62  ;;  %v3945_v35 = vld [vmem:[#allocation8 + $0x268] sm:$0xff] }
  0xbe   :  { %v2006_v17 = vpack.c.bf16 %v1506_v54, %v1502_v38  ;;  %2349 = vmatmul.bf16.vlgmr.msrb.gmra.mxu2 %v3917_v13  ;;  %v668_v59 = vunpack.c.2.s8 %v376_v53  ;;  %2409 = vmatpush.bf16.msra.mxu3 %v2110_v55  ;;  %v1116_v24 = vcvt.s32.f32 %v604_v7  ;;  %v672_v63 = vunpack.c.3.s8 %v376_v53  ;;  %v416_v7 = vld [vmem:[#allocation8 + $0x2e8] sm:$0xff] }
  0xbf   :  { %v1120_v61 = vcvt.s32.f32 %v608_v16  ;;  %v460_v40 = vunpack.c.2.s8 %v3921_v3  ;;  %v280_v39 = vpop.f32.mrf.mxu2  ;;  %v1570_v43 = vmul.f32 %v3704_v46, %v1048_v21  ;;  %2362 = vmatmul.bf16.vlgmr.msrb.gmra.mxu3 %v3923_v14  ;;  %v464_v18 = vunpack.c.3.s8 %v3921_v3 }
  0xc0   :  { %2372 = vmatpush.bf16.msra.mxu0 %v2006_v17  ;;  %v1180_v49 = vcvt.s32.f32 %v668_v59  ;;  %v524_v1 = vunpack.c.2.s8 %v3925_v29  ;;  %v293_v2 = vpop.f32.mrf.mxu3  ;;  %v1638_v6 = vmul.f32 %v3704_v46, %v1116_v24  ;;  %v1184_v32 = vcvt.s32.f32 %v672_v63 }
  0xc1   :  { %v1642_v31 = vmul.f32 %v3704_v46, %v1120_v61  ;;  %v972_v42 = vcvt.s32.f32 %v460_v40  ;;  %v2038_v9 = vpack.c.bf16 %v1570_v43, %v1566_v37  ;;  %v976_v58 = vcvt.s32.f32 %v464_v18  ;;  %v3954_v37 = vld [vmem:[#allocation8 + $0x108] sm:$0xff] }
  0xc2   :  { %v1702_v57 = vmul.f32 %v3704_v46, %v1180_v49  ;;  %v528_v0 = vunpack.c.3.s8 %v3925_v29  ;;  %v1706_v11 = vmul.f32 %v3704_v46, %v1184_v32  ;;  %v1036_v60 = vcvt.s32.f32 %v524_v1  ;;  %v3960_v18 = vld [vmem:[#allocation8 + $0x188] sm:$0xff] }
  0xc3   :  { %v2074_v10 = vpack.c.bf16 %v1642_v31, %v1638_v6  ;;  %v1494_v19 = vmul.f32 %v3704_v46, %v972_v42  ;;  %2385 = vmatpush.bf16.msra.mxu1 %v2038_v9  ;;  %v1498_v26 = vmul.f32 %v3704_v46, %v976_v58  ;;  %v596_v8 = vunpack.c.0.s8 %v360_v51 }
  0xc4   :  { %v1040_v23 = vcvt.s32.f32 %v528_v0  ;;  %v600_v27 = vunpack.c.1.s8 %v360_v51  ;;  %v2106_v4 = vpack.c.bf16 %v1706_v11, %v1702_v57  ;;  %v1558_v12 = vmul.f32 %v3704_v46, %v1036_v60 }
  0xc5   :  { %2397 = vmatpush.bf16.msra.mxu2 %v2074_v10  ;;  %v660_v28 = vunpack.c.0.s8 %v376_v53  ;;  %v664_v33 = vunpack.c.1.s8 %v376_v53  ;;  %v2002_v56 = vpack.c.bf16 %v1498_v26, %v1494_v19  ;;  %v1108_v45 = vcvt.s32.f32 %v596_v8 }
  0xc6   :  { %v1562_v20 = vmul.f32 %v3704_v46, %v1040_v23  ;;  %v1112_v47 = vcvt.s32.f32 %v600_v27  ;;  %2410 = vmatpush.bf16.msra.mxu3 %v2106_v4  ;;  %v452_v50 = vunpack.c.0.s8 %v3921_v3  ;;  %v456_v34 = vunpack.c.1.s8 %v3921_v3 }
  0xc7   :  { %v1172_v30 = vcvt.s32.f32 %v660_v28  ;;  %v1176_v41 = vcvt.s32.f32 %v664_v33  ;;  %2373 = vmatpush.bf16.msra.mxu0 %v2002_v56  ;;  %v1630_v36 = vmul.f32 %v3704_v46, %v1108_v45  ;;  %v516_v53 = vunpack.c.0.s8 %v3925_v29 }
  0xc8   :  { %v2034_v51 = vpack.c.bf16 %v1562_v20, %v1558_v12  ;;  %v1634_v38 = vmul.f32 %v3704_v46, %v1112_v47  ;;  %v964_v62 = vcvt.s32.f32 %v452_v50  ;;  %v968_v55 = vcvt.s32.f32 %v456_v34 }
  0xc9   :  { %v1694_v54 = vmul.f32 %v3704_v46, %v1172_v30  ;;  %v1698_v25 = vmul.f32 %v3704_v46, %v1176_v41  ;;  %v520_v3 = vunpack.c.1.s8 %v3925_v29  ;;  %v1028_v17 = vcvt.s32.f32 %v516_v53 }
  0xca   :  { %2386 = vmatpush.bf16.msra.mxu1 %v2034_v51  ;;  %v2070_v16 = vpack.c.bf16 %v1634_v38, %v1630_v36  ;;  %v764_v21 = vunpack.c.2.s8 %v3945_v35  ;;  %v1486_v24 = vmul.f32 %v3704_v46, %v964_v62  ;;  %v1490_v61 = vmul.f32 %v3704_v46, %v968_v55 }
  0xcb   :  { %v2102_v59 = vpack.c.bf16 %v1698_v25, %v1694_v54  ;;  %v768_v63 = vunpack.c.3.s8 %v3945_v35  ;;  %v1032_v40 = vcvt.s32.f32 %v520_v3  ;;  %v1550_v39 = vmul.f32 %v3704_v46, %v1028_v17  ;;  %v3980_v25 = vld [vmem:[#allocation8 + $0x368] sm:$0xff] }
  0xcc   :  { %2398 = vmatpush.bf16.msra.mxu2 %v2070_v16  ;;  %v1276_v43 = vcvt.s32.f32 %v764_v21  ;;  %v828_v49 = vunpack.c.2.s8 %v416_v7  ;;  %v1998_v29 = vpack.c.bf16 %v1490_v61, %v1486_v24  ;;  %v832_v2 = vunpack.c.3.s8 %v416_v7 }
  0xcd   :  { %2411 = vmatpush.bf16.msra.mxu3 %v2102_v59  ;;  %v1280_v1 = vcvt.s32.f32 %v768_v63  ;;  %v588_v6 = vunpack.c.2.s8 %v3954_v37  ;;  %v1554_v31 = vmul.f32 %v3704_v46, %v1032_v40  ;;  %v592_v9 = vunpack.c.3.s8 %v3954_v37  ;;  %v448_v59 = vld [vmem:[#allocation8 + $0x3e8] sm:$0xff] }
  0xce   :  { %v1798_v32 = vmul.f32 %v3704_v46, %v1276_v43  ;;  %v1340_v42 = vcvt.s32.f32 %v828_v49  ;;  %2374 = vmatpush.bf16.msra.mxu0 %v1998_v29  ;;  %v1344_v58 = vcvt.s32.f32 %v832_v2  ;;  %v652_v10 = vunpack.c.2.s8 %v3960_v18  ;;  %v3990_v40 = vld [vmem:[#allocation8 + $0x248] sm:$0xff] }
  0xcf   :  { %v1802_v57 = vmul.f32 %v3704_v46, %v1280_v1  ;;  %v1100_v0 = vcvt.s32.f32 %v588_v6  ;;  %v2030_v11 = vpack.c.bf16 %v1554_v31, %v1550_v39  ;;  %v1104_v60 = vcvt.s32.f32 %v592_v9 }
  0xd0   :  { %v1862_v19 = vmul.f32 %v3704_v46, %v1340_v42  ;;  %v656_v26 = vunpack.c.3.s8 %v3960_v18  ;;  %v1866_v8 = vmul.f32 %v3704_v46, %v1344_v58  ;;  %v1164_v4 = vcvt.s32.f32 %v652_v10 }
  0xd1   :  { %v2154_v23 = vpack.c.bf16 %v1802_v57, %v1798_v32  ;;  %v1622_v27 = vmul.f32 %v3704_v46, %v1100_v0  ;;  %2387 = vmatpush.bf16.msra.mxu1 %v2030_v11  ;;  %v1626_v12 = vmul.f32 %v3704_v46, %v1104_v60  ;;  %2375 = vmatmul.bf16.vlgmr.msra.gmra.mxu0 %v3808_v48  ;;  %v756_v33 = vunpack.c.0.s8 %v3945_v35  ;;  %v3996_v32 = vld [vmem:[#allocation8 + $0x2c8] sm:$0xff] }
  0xd2   :  { %v1168_v28 = vcvt.s32.f32 %v656_v26  ;;  %v760_v56 = vunpack.c.1.s8 %v3945_v35  ;;  %v2186_v20 = vpack.c.bf16 %v1866_v8, %v1862_v19  ;;  %v1686_v45 = vmul.f32 %v3704_v46, %v1164_v4 }
  0xd3   :  { %2419 = vmatpush.bf16.msrb.mxu0 %v2154_v23  ;;  %v820_v47 = vunpack.c.0.s8 %v416_v7  ;;  %v824_v30 = vunpack.c.1.s8 %v416_v7  ;;  %v2066_v41 = vpack.c.bf16 %v1626_v12, %v1622_v27  ;;  %v1268_v34 = vcvt.s32.f32 %v756_v33 }
  0xd4   :  { %v1690_v50 = vmul.f32 %v3704_v46, %v1168_v28  ;;  %v1272_v51 = vcvt.s32.f32 %v760_v56  ;;  %v580_v53 = vunpack.c.0.s8 %v3954_v37  ;;  %v584_v54 = vunpack.c.1.s8 %v3954_v37  ;;  %2388 = vmatmul.bf16.vlgmr.msra.gmra.mxu1 %v3814_v52 }
  0xd5   :  { %2432 = vmatpush.bf16.msrb.mxu1 %v2186_v20  ;;  %v1332_v36 = vcvt.s32.f32 %v820_v47  ;;  %v1336_v38 = vcvt.s32.f32 %v824_v30  ;;  %2399 = vmatpush.bf16.msra.mxu2 %v2066_v41  ;;  %v1790_v62 = vmul.f32 %v3704_v46, %v1268_v34  ;;  %v644_v7 = vunpack.c.0.s8 %v3960_v18 }
  0xd6   :  { %v2098_v35 = vpack.c.bf16 %v1690_v50, %v1686_v45  ;;  %v1794_v55 = vmul.f32 %v3704_v46, %v1272_v51  ;;  %v1092_v17 = vcvt.s32.f32 %v580_v53  ;;  %v1096_v21 = vcvt.s32.f32 %v584_v54 }
  0xd7   :  { %v1854_v16 = vmul.f32 %v3704_v46, %v1332_v36  ;;  %v1858_v3 = vmul.f32 %v3704_v46, %v1336_v38  ;;  %v648_v24 = vunpack.c.1.s8 %v3960_v18  ;;  %v1156_v61 = vcvt.s32.f32 %v644_v7 }
  0xd8   :  { %2412 = vmatpush.bf16.msra.mxu3 %v2098_v35  ;;  %v2150_v37 = vpack.c.bf16 %v1794_v55, %v1790_v62  ;;  %v892_v63 = vunpack.c.2.s8 %v3980_v25  ;;  %v1614_v43 = vmul.f32 %v3704_v46, %v1092_v17  ;;  %v1618_v49 = vmul.f32 %v3704_v46, %v1096_v21 }
  0xd9   :  { %v2182_v39 = vpack.c.bf16 %v1858_v3, %v1854_v16  ;;  %v896_v29 = vunpack.c.3.s8 %v3980_v25  ;;  %v1160_v1 = vcvt.s32.f32 %v648_v24  ;;  %v1678_v2 = vmul.f32 %v3704_v46, %v1156_v61  ;;  %v4016_v3 = vld [vmem:[#allocation8 + $0x348] sm:$0xff] }
  0xda   :  { %2420 = vmatpush.bf16.msrb.mxu0 %v2150_v37  ;;  %v1404_v6 = vcvt.s32.f32 %v892_v63  ;;  %v956_v31 = vunpack.c.2.s8 %v448_v59  ;;  %v2062_v18 = vpack.c.bf16 %v1618_v49, %v1614_v43  ;;  %v960_v9 = vunpack.c.3.s8 %v448_v59 }
  0xdb   :  { %2433 = vmatpush.bf16.msrb.mxu1 %v2182_v39  ;;  %v1408_v42 = vcvt.s32.f32 %v896_v29  ;;  %v748_v57 = vunpack.c.2.s8 %v3990_v40  ;;  %v1682_v58 = vmul.f32 %v3704_v46, %v1160_v1  ;;  %v752_v11 = vunpack.c.3.s8 %v3990_v40  ;;  %v444_v39 = vld [vmem:[#allocation8 + $0x3c8] sm:$0xff] }
  0xdc   :  { %v1926_v0 = vmul.f32 %v3704_v46, %v1404_v6  ;;  %v1468_v10 = vcvt.s32.f32 %v956_v31  ;;  %2400 = vmatpush.bf16.msra.mxu2 %v2062_v18  ;;  %v1472_v60 = vcvt.s32.f32 %v960_v9  ;;  %v812_v23 = vunpack.c.2.s8 %v3996_v32  ;;  %v392_v1 = vld [vmem:[#allocation8 + $0x228] sm:$0xff] }
  0xdd   :  { %v1930_v19 = vmul.f32 %v3704_v46, %v1408_v42  ;;  %v1260_v26 = vcvt.s32.f32 %v748_v57  ;;  %v2094_v8 = vpack.c.bf16 %v1682_v58, %v1678_v2  ;;  %v1264_v4 = vcvt.s32.f32 %v752_v11 }
  0xde   :  { %v1990_v27 = vmul.f32 %v3704_v46, %v1468_v10  ;;  %v816_v12 = vunpack.c.3.s8 %v3996_v32  ;;  %v1994_v33 = vmul.f32 %v3704_v46, %v1472_v60  ;;  %v1324_v20 = vcvt.s32.f32 %v812_v23 }
  0xdf   :  { %v2218_v28 = vpack.c.bf16 %v1930_v19, %v1926_v0  ;;  %v1782_v56 = vmul.f32 %v3704_v46, %v1260_v26  ;;  %2413 = vmatpush.bf16.msra.mxu3 %v2094_v8  ;;  %v1786_v45 = vmul.f32 %v3704_v46, %v1264_v4  ;;  %2401 = vmatmul.bf16.vlgmr.msra.gmra.mxu2 %v3848_v5  ;;  %v884_v30 = vunpack.c.0.s8 %v3980_v25  ;;  %v4030_v0 = vld [vmem:[#allocation8 + $0x2a8] sm:$0xff] }
  0xe0   :  { %v1328_v47 = vcvt.s32.f32 %v816_v12  ;;  %v888_v41 = vunpack.c.1.s8 %v3980_v25  ;;  %v2250_v50 = vpack.c.bf16 %v1994_v33, %v1990_v27  ;;  %v1846_v34 = vmul.f32 %v3704_v46, %v1324_v20 }
  0xe1   :  { %2445 = vmatpush.bf16.msrb.mxu2 %v2218_v28  ;;  %v948_v51 = vunpack.c.0.s8 %v448_v59  ;;  %v952_v36 = vunpack.c.1.s8 %v448_v59  ;;  %v2146_v38 = vpack.c.bf16 %v1786_v45, %v1782_v56  ;;  %v1396_v54 = vcvt.s32.f32 %v884_v30 }
  0xe2   :  { %v1850_v53 = vmul.f32 %v3704_v46, %v1328_v47  ;;  %v1400_v35 = vcvt.s32.f32 %v888_v41  ;;  %v740_v7 = vunpack.c.0.s8 %v3990_v40  ;;  %v744_v16 = vunpack.c.1.s8 %v3990_v40  ;;  %2414 = vmatmul.bf16.vlgmr.msra.gmra.mxu3 %v3858_v44 }
  0xe3   :  { %2458 = vmatpush.bf16.msrb.mxu3 %v2250_v50  ;;  %v1460_v62 = vcvt.s32.f32 %v948_v51  ;;  %v1464_v55 = vcvt.s32.f32 %v952_v36  ;;  %2421 = vmatpush.bf16.msrb.mxu0 %v2146_v38  ;;  %v1918_v17 = vmul.f32 %v3704_v46, %v1396_v54  ;;  %v804_v59 = vunpack.c.0.s8 %v3996_v32 }
  0xe4   :  { %v2178_v25 = vpack.c.bf16 %v1850_v53, %v1846_v34  ;;  %v1922_v21 = vmul.f32 %v3704_v46, %v1400_v35  ;;  %v1252_v61 = vcvt.s32.f32 %v740_v7  ;;  %v1256_v63 = vcvt.s32.f32 %v744_v16 }
  0xe5   :  { %v1982_v37 = vmul.f32 %v3704_v46, %v1460_v62  ;;  %v1986_v24 = vmul.f32 %v3704_v46, %v1464_v55  ;;  %v808_v43 = vunpack.c.1.s8 %v3996_v32  ;;  %v1316_v49 = vcvt.s32.f32 %v804_v59 }
  0xe6   :  { %2434 = vmatpush.bf16.msrb.mxu1 %v2178_v25  ;;  %v2214_v40 = vpack.c.bf16 %v1922_v21, %v1918_v17  ;;  %v876_v29 = vunpack.c.2.s8 %v4016_v3  ;;  %v1774_v6 = vmul.f32 %v3704_v46, %v1252_v61  ;;  %v1778_v31 = vmul.f32 %v3704_v46, %v1256_v63 }
  0xe7   :  { %v2246_v2 = vpack.c.bf16 %v1986_v24, %v1982_v37  ;;  %v880_v18 = vunpack.c.3.s8 %v4016_v3  ;;  %v1320_v42 = vcvt.s32.f32 %v808_v43  ;;  %v1838_v9 = vmul.f32 %v3704_v46, %v1316_v49  ;;  %v424_v24 = vld [vmem:[#allocation8 + $0x328] sm:$0xff] }
  0xe8   :  { %2446 = vmatpush.bf16.msrb.mxu2 %v2214_v40  ;;  %v1388_v57 = vcvt.s32.f32 %v876_v29  ;;  %v940_v58 = vunpack.c.2.s8 %v444_v39  ;;  %v2142_v32 = vpack.c.bf16 %v1778_v31, %v1774_v6  ;;  %v944_v11 = vunpack.c.3.s8 %v444_v39 }
  0xe9   :  { %2459 = vmatpush.bf16.msrb.mxu3 %v2246_v2  ;;  %v1392_v10 = vcvt.s32.f32 %v880_v18  ;;  %v732_v19 = vunpack.c.2.s8 %v392_v1  ;;  %v1842_v60 = vmul.f32 %v3704_v46, %v1320_v42  ;;  %v736_v8 = vunpack.c.3.s8 %v392_v1  ;;  %v440_v2 = vld [vmem:[#allocation8 + $0x3a8] sm:$0xff] }
  0xea   :  { %v1910_v26 = vmul.f32 %v3704_v46, %v1388_v57  ;;  %v1452_v23 = vcvt.s32.f32 %v940_v58  ;;  %2422 = vmatpush.bf16.msrb.mxu0 %v2142_v32  ;;  %v1456_v4 = vcvt.s32.f32 %v944_v11  ;;  %v796_v28 = vunpack.c.2.s8 %v4030_v0  ;;  %v388_v42 = vld [vmem:[#allocation8 + $0x208] sm:$0xff] }
  0xeb   :  { %v1914_v27 = vmul.f32 %v3704_v46, %v1392_v10  ;;  %v1244_v12 = vcvt.s32.f32 %v732_v19  ;;  %v2174_v33 = vpack.c.bf16 %v1842_v60, %v1838_v9  ;;  %v1248_v20 = vcvt.s32.f32 %v736_v8 }
  0xec   :  { %v1974_v56 = vmul.f32 %v3704_v46, %v1452_v23  ;;  %v800_v45 = vunpack.c.3.s8 %v4030_v0  ;;  %v1978_v30 = vmul.f32 %v3704_v46, %v1456_v4  ;;  %v1308_v50 = vcvt.s32.f32 %v796_v28 }
  0xed   :  { %v2210_v47 = vpack.c.bf16 %v1914_v27, %v1910_v26  ;;  %v1766_v41 = vmul.f32 %v3704_v46, %v1244_v12  ;;  %2435 = vmatpush.bf16.msrb.mxu1 %v2174_v33  ;;  %v1770_v34 = vmul.f32 %v3704_v46, %v1248_v20  ;;  %v868_v36 = vunpack.c.0.s8 %v4016_v3  ;;  %v4054_v26 = vld [vmem:[#allocation8 + $0x288] sm:$0xff] }
  0xee   :  { %v1312_v51 = vcvt.s32.f32 %v800_v45  ;;  %v872_v38 = vunpack.c.1.s8 %v4016_v3  ;;  %v2242_v53 = vpack.c.bf16 %v1978_v30, %v1974_v56  ;;  %v1830_v54 = vmul.f32 %v3704_v46, %v1308_v50 }
  0xef   :  { %2447 = vmatpush.bf16.msrb.mxu2 %v2210_v47  ;;  %v932_v35 = vunpack.c.0.s8 %v444_v39  ;;  %v936_v62 = vunpack.c.1.s8 %v444_v39  ;;  %v2138_v55 = vpack.c.bf16 %v1770_v34, %v1766_v41  ;;  %v1380_v16 = vcvt.s32.f32 %v868_v36 }
  0xf0   :  { %v1834_v7 = vmul.f32 %v3704_v46, %v1312_v51  ;;  %v1384_v25 = vcvt.s32.f32 %v872_v38  ;;  %2460 = vmatpush.bf16.msrb.mxu3 %v2242_v53  ;;  %v724_v59 = vunpack.c.0.s8 %v392_v1  ;;  %v728_v37 = vunpack.c.1.s8 %v392_v1 }
  0xf1   :  { %v1444_v17 = vcvt.s32.f32 %v932_v35  ;;  %v1448_v21 = vcvt.s32.f32 %v936_v62  ;;  %2423 = vmatpush.bf16.msrb.mxu0 %v2138_v55  ;;  %v1902_v3 = vmul.f32 %v3704_v46, %v1380_v16  ;;  %v788_v40 = vunpack.c.0.s8 %v4030_v0 }
  0xf2   :  { %v2170_v61 = vpack.c.bf16 %v1834_v7, %v1830_v54  ;;  %v1906_v63 = vmul.f32 %v3704_v46, %v1384_v25  ;;  %v1236_v49 = vcvt.s32.f32 %v724_v59  ;;  %v1240_v29 = vcvt.s32.f32 %v728_v37 }
  0xf3   :  { %v1966_v39 = vmul.f32 %v3704_v46, %v1444_v17  ;;  %v1970_v43 = vmul.f32 %v3704_v46, %v1448_v21  ;;  %v792_v1 = vunpack.c.1.s8 %v4030_v0  ;;  %v1300_v31 = vcvt.s32.f32 %v788_v40 }
  0xf4   :  { %2436 = vmatpush.bf16.msrb.mxu1 %v2170_v61  ;;  %v2206_v6 = vpack.c.bf16 %v1906_v63, %v1902_v3  ;;  %v860_v18 = vunpack.c.2.s8 %v424_v24  ;;  %v1758_v57 = vmul.f32 %v3704_v46, %v1236_v49  ;;  %v1762_v58 = vmul.f32 %v3704_v46, %v1240_v29 }
  0xf5   :  { %v2238_v9 = vpack.c.bf16 %v1970_v43, %v1966_v39  ;;  %v864_v32 = vunpack.c.3.s8 %v424_v24  ;;  %v1304_v10 = vcvt.s32.f32 %v792_v1  ;;  %v1822_v11 = vmul.f32 %v3704_v46, %v1300_v31  ;;  %v4067_v43 = vld [vmem:[#allocation8 + $0x70] sm:$0xff] }
  0xf6   :  { %2448 = vmatpush.bf16.msrb.mxu2 %v2206_v6  ;;  %v1372_v19 = vcvt.s32.f32 %v860_v18  ;;  %v924_v60 = vunpack.c.2.s8 %v440_v2  ;;  %v2134_v23 = vpack.c.bf16 %v1762_v58, %v1758_v57  ;;  %v928_v8 = vunpack.c.3.s8 %v440_v2 }
  0xf7   :  { %2461 = vmatpush.bf16.msrb.mxu3 %v2238_v9  ;;  %v1376_v0 = vcvt.s32.f32 %v864_v32  ;;  %v716_v27 = vunpack.c.2.s8 %v388_v42  ;;  %v1826_v4 = vmul.f32 %v3704_v46, %v1304_v10  ;;  %v720_v33 = vunpack.c.3.s8 %v388_v42  ;;  %v353_v32 = vld [vmem:[#allocation8 + $0xf0] sm:$0xff] }
  0xf8   :  { %v1894_v12 = vmul.f32 %v3704_v46, %v1372_v19  ;;  %v1436_v28 = vcvt.s32.f32 %v924_v60  ;;  %2424 = vmatpush.bf16.msrb.mxu0 %v2134_v23  ;;  %v1440_v20 = vcvt.s32.f32 %v928_v8  ;;  %v780_v47 = vunpack.c.2.s8 %v4054_v26  ;;  %v420_v23 = vld [vmem:[#allocation8 + $0x308] sm:$0xff] }
  0xf9   :  { %v1898_v56 = vmul.f32 %v3704_v46, %v1376_v0  ;;  %v1228_v45 = vcvt.s32.f32 %v716_v27  ;;  %v2166_v30 = vpack.c.bf16 %v1826_v4, %v1822_v11  ;;  %v1232_v50 = vcvt.s32.f32 %v720_v33  ;;  %v3280_v4 = vld [vmem:[#allocation10] sm:$0xf] }
  0xfa   :  { %v1958_v41 = vmul.f32 %v3704_v46, %v1436_v28  ;;  %v784_v34 = vunpack.c.3.s8 %v4054_v26  ;;  %v1962_v36 = vmul.f32 %v3704_v46, %v1440_v20  ;;  %v1292_v53 = vcvt.s32.f32 %v780_v47 }
  0xfb   :  { %v2202_v51 = vpack.c.bf16 %v1898_v56, %v1894_v12  ;;  %v1750_v38 = vmul.f32 %v3704_v46, %v1228_v45  ;;  %2437 = vmatpush.bf16.msrb.mxu1 %v2166_v30  ;;  %v1754_v54 = vmul.f32 %v3704_v46, %v1232_v50  ;;  %v852_v62 = vunpack.c.0.s8 %v424_v24 }
  0xfc   :  { %v1296_v35 = vcvt.s32.f32 %v784_v34  ;;  %v856_v55 = vunpack.c.1.s8 %v424_v24  ;;  %v2234_v7 = vpack.c.bf16 %v1962_v36, %v1958_v41  ;;  %v1814_v16 = vmul.f32 %v3704_v46, %v1292_v53 }
  0xfd   :  { %2449 = vmatpush.bf16.msrb.mxu2 %v2202_v51  ;;  %v916_v25 = vunpack.c.0.s8 %v440_v2  ;;  %v920_v17 = vunpack.c.1.s8 %v440_v2  ;;  %v2130_v21 = vpack.c.bf16 %v1754_v54, %v1750_v38  ;;  %v1364_v37 = vcvt.s32.f32 %v852_v62 }
  0xfe   :  { %v1818_v59 = vmul.f32 %v3704_v46, %v1296_v35  ;;  %v1368_v61 = vcvt.s32.f32 %v856_v55  ;;  %2462 = vmatpush.bf16.msrb.mxu3 %v2234_v7  ;;  %v708_v40 = vunpack.c.0.s8 %v388_v42  ;;  %v712_v39 = vunpack.c.1.s8 %v388_v42 }
  0xff   :  { %v1428_v3 = vcvt.s32.f32 %v916_v25  ;;  %v1432_v63 = vcvt.s32.f32 %v920_v17  ;;  %2425 = vmatpush.bf16.msrb.mxu0 %v2130_v21  ;;  %v1886_v49 = vmul.f32 %v3704_v46, %v1364_v37  ;;  %v772_v2 = vunpack.c.0.s8 %v4054_v26 }
 0x100   :  { %v2162_v24 = vpack.c.bf16 %v1818_v59, %v1814_v16  ;;  %v1890_v29 = vmul.f32 %v3704_v46, %v1368_v61  ;;  %v1220_v31 = vcvt.s32.f32 %v708_v40  ;;  %v1224_v18 = vcvt.s32.f32 %v712_v39 }
 0x101   :  { %v1950_v6 = vmul.f32 %v3704_v46, %v1428_v3  ;;  %v1954_v1 = vmul.f32 %v3704_v46, %v1432_v63  ;;  %v776_v42 = vunpack.c.1.s8 %v4054_v26  ;;  %v1284_v57 = vcvt.s32.f32 %v772_v2  ;;  %v4082_v26 = vld [vmem:[#allocation8 + $0x388] sm:$0xff] }
 0x102   :  { %2438 = vmatpush.bf16.msrb.mxu1 %v2162_v24  ;;  %v2198_v9 = vpack.c.bf16 %v1890_v29, %v1886_v49  ;;  %v509_v58 = vunpack.c.2.s8 %v4067_v43  ;;  %v1742_v11 = vmul.f32 %v3704_v46, %v1220_v31  ;;  %v1746_v19 = vmul.f32 %v3704_v46, %v1224_v18  ;;  %v4098_v31 = vld [vmem:[#allocation8 + $0x170] sm:$0xff] }
 0x103   :  { %v2230_v10 = vpack.c.bf16 %v1954_v1, %v1950_v6  ;;  %v513_v60 = vunpack.c.3.s8 %v4067_v43  ;;  %v1288_v0 = vcvt.s32.f32 %v776_v42  ;;  %v1806_v8 = vmul.f32 %v3704_v46, %v1284_v57 }
 0x104   :  { %2450 = vmatpush.bf16.msrb.mxu2 %v2198_v9  ;;  %v1021_v27 = vcvt.s32.f32 %v509_v58  ;;  %v4080_v12 = vperm.slane %v3280_v4, 2  ;;  %v2126_v28 = vpack.c.bf16 %v1746_v19, %v1742_v11  ;;  %v573_v56 = vunpack.c.2.s8 %v353_v32 }
 0x105   :  { %2463 = vmatpush.bf16.msrb.mxu3 %v2230_v10  ;;  %v1025_v33 = vcvt.s32.f32 %v513_v60  ;;  %v577_v20 = vunpack.c.3.s8 %v353_v32  ;;  %v1810_v45 = vmul.f32 %v3704_v46, %v1288_v0  ;;  %v844_v30 = vunpack.c.2.s8 %v420_v23  ;;  %v385_v0 = vld [vmem:[#allocation8 + $0x1f0] sm:$0xff] }
 0x106   :  { %v1543_v47 = vmul.f32 %v4080_v12, %v1021_v27  ;;  %v848_v41 = vunpack.c.3.s8 %v420_v23  ;;  %2426 = vmatpush.bf16.msrb.mxu0 %v2126_v28  ;;  %v1085_v34 = vcvt.s32.f32 %v573_v56  ;;  %v908_v36 = vunpack.c.2.s8 %v4082_v26 }
 0x107   :  { %v1547_v50 = vmul.f32 %v4080_v12, %v1025_v33  ;;  %v1089_v51 = vcvt.s32.f32 %v577_v20  ;;  %v2158_v38 = vpack.c.bf16 %v1810_v45, %v1806_v8  ;;  %v1356_v53 = vcvt.s32.f32 %v844_v30  ;;  %v333_v33 = vld [vmem:[#allocation8 + $0x50] sm:$0xff] }
 0x108   :  { %v1360_v54 = vcvt.s32.f32 %v848_v41  ;;  %v912_v35 = vunpack.c.3.s8 %v4082_v26  ;;  %v1607_v55 = vmul.f32 %v4080_v12, %v1085_v34  ;;  %v1420_v16 = vcvt.s32.f32 %v908_v36  ;;  %v4112_v30 = vld [vmem:[#allocation8 + $0xd0] sm:$0xff] }
 0x109   :  { %v2027_v62 = vpack.c.bf16 %v1547_v50, %v1543_v47  ;;  %v1611_v7 = vmul.f32 %v4080_v12, %v1089_v51  ;;  %2439 = vmatpush.bf16.msrb.mxu1 %v2158_v38  ;;  %v1878_v25 = vmul.f32 %v3704_v46, %v1356_v53  ;;  %2427 = vmatmul.bf16.vlgmr.msrb.gmra.mxu0 %v3898_v22  ;;  %v501_v59 = vunpack.c.0.s8 %v4067_v43 }
 0x10a   :  { %v1882_v17 = vmul.f32 %v3704_v46, %v1360_v54  ;;  %v1424_v21 = vcvt.s32.f32 %v912_v35  ;;  %v1942_v61 = vmul.f32 %v3704_v46, %v1420_v16  ;;  %v505_v3 = vunpack.c.1.s8 %v4067_v43 }
 0x10b   :  { %2471 = vmatpush.bf16.msra.mxu0 %v2027_v62  ;;  %v2059_v37 = vpack.c.bf16 %v1611_v7, %v1607_v55  ;;  %v565_v63 = vunpack.c.0.s8 %v353_v32  ;;  %v1013_v24 = vcvt.s32.f32 %v501_v59  ;;  %v569_v49 = vunpack.c.1.s8 %v353_v32 }
 0x10c   :  { %v2194_v40 = vpack.c.bf16 %v1882_v17, %v1878_v25  ;;  %v1946_v39 = vmul.f32 %v3704_v46, %v1424_v21  ;;  %v1017_v29 = vcvt.s32.f32 %v505_v3  ;;  %v836_v6 = vunpack.c.0.s8 %v420_v23  ;;  %2440 = vmatmul.bf16.vlgmr.msrb.gmra.mxu1 %v3903_v15 }
 0x10d   :  { %2484 = vmatpush.bf16.msra.mxu1 %v2059_v37  ;;  %v1077_v2 = vcvt.s32.f32 %v565_v63  ;;  %v840_v1 = vunpack.c.1.s8 %v420_v23  ;;  %v1535_v9 = vmul.f32 %v4080_v12, %v1013_v24  ;;  %v1081_v43 = vcvt.s32.f32 %v569_v49 }
 0x10e   :  { %2451 = vmatpush.bf16.msrb.mxu2 %v2194_v40  ;;  %v2226_v18 = vpack.c.bf16 %v1946_v39, %v1942_v61  ;;  %v900_v42 = vunpack.c.0.s8 %v4082_v26  ;;  %v1539_v57 = vmul.f32 %v4080_v12, %v1017_v29  ;;  %v1348_v32 = vcvt.s32.f32 %v836_v6 }
 0x10f   :  { %v1599_v58 = vmul.f32 %v4080_v12, %v1077_v2  ;;  %v1352_v10 = vcvt.s32.f32 %v840_v1  ;;  %v1603_v11 = vmul.f32 %v4080_v12, %v1081_v43  ;;  %v904_v19 = vunpack.c.1.s8 %v4082_v26 }
 0x110   :  { %2464 = vmatpush.bf16.msrb.mxu3 %v2226_v18  ;;  %v1412_v60 = vcvt.s32.f32 %v900_v42  ;;  %v637_v23 = vunpack.c.2.s8 %v4098_v31  ;;  %v2023_v8 = vpack.c.bf16 %v1539_v57, %v1535_v9  ;;  %v1870_v27 = vmul.f32 %v3704_v46, %v1348_v32 }
 0x111   :  { %v1874_v4 = vmul.f32 %v3704_v46, %v1352_v10  ;;  %v641_v28 = vunpack.c.3.s8 %v4098_v31  ;;  %v2055_v56 = vpack.c.bf16 %v1603_v11, %v1599_v58  ;;  %v1416_v20 = vcvt.s32.f32 %v904_v19  ;;  %v4128_v58 = vld [vmem:[#allocation8 + $0x150] sm:$0xff] }
 0x112   :  { %v1934_v45 = vmul.f32 %v3704_v46, %v1412_v60  ;;  %v1149_v47 = vcvt.s32.f32 %v637_v23  ;;  %2472 = vmatpush.bf16.msra.mxu0 %v2023_v8  ;;  %v701_v50 = vunpack.c.2.s8 %v385_v0  ;;  %v705_v34 = vunpack.c.3.s8 %v385_v0 }
 0x113   :  { %v2190_v26 = vpack.c.bf16 %v1874_v4, %v1870_v27  ;;  %v1153_v41 = vcvt.s32.f32 %v641_v28  ;;  %2485 = vmatpush.bf16.msra.mxu1 %v2055_v56  ;;  %v1938_v51 = vmul.f32 %v3704_v46, %v1416_v20  ;;  %v493_v38 = vunpack.c.2.s8 %v333_v33 }
 0x114   :  { %v1671_v36 = vmul.f32 %v4080_v12, %v1149_v47  ;;  %v497_v53 = vunpack.c.3.s8 %v333_v33  ;;  %v1213_v35 = vcvt.s32.f32 %v701_v50  ;;  %v1217_v62 = vcvt.s32.f32 %v705_v34 }
 0x115   :  { %2452 = vmatpush.bf16.msrb.mxu2 %v2190_v26  ;;  %v1675_v54 = vmul.f32 %v4080_v12, %v1153_v41  ;;  %v557_v55 = vunpack.c.2.s8 %v4112_v30  ;;  %v2222_v7 = vpack.c.bf16 %v1938_v51, %v1934_v45  ;;  %v1005_v16 = vcvt.s32.f32 %v493_v38  ;;  %v329_v26 = vld [vmem:[#allocation8 + $0x30] sm:$0xff] }
 0x116   :  { %v1009_v25 = vcvt.s32.f32 %v497_v53  ;;  %v561_v17 = vunpack.c.3.s8 %v4112_v30  ;;  %v1735_v59 = vmul.f32 %v4080_v12, %v1213_v35  ;;  %v1739_v46 = vmul.f32 %v4080_v12, %v1217_v62 }
 0x117   :  { %v2091_v21 = vpack.c.bf16 %v1675_v54, %v1671_v36  ;;  %v1069_v37 = vcvt.s32.f32 %v557_v55  ;;  %2465 = vmatpush.bf16.msrb.mxu3 %v2222_v7  ;;  %v1527_v61 = vmul.f32 %v4080_v12, %v1005_v16  ;;  %v629_v40 = vunpack.c.0.s8 %v4098_v31  ;;  %v4142_v36 = vld [vmem:[#allocation8 + $0xb0] sm:$0xff] }
 0x118   :  { %2453 = vmatmul.bf16.vlgmr.msrb.gmra.mxu2 %v3917_v13  ;;  %v1531_v3 = vmul.f32 %v4080_v12, %v1009_v25  ;;  %v1073_v63 = vcvt.s32.f32 %v561_v17  ;;  %v2123_v39 = vpack.c.bf16 %v1739_v46, %v1735_v59  ;;  %v633_v49 = vunpack.c.1.s8 %v4098_v31 }
 0x119   :  { %2497 = vmatpush.bf16.msra.mxu2 %v2091_v21  ;;  %v1591_v24 = vmul.f32 %v4080_v12, %v1069_v37  ;;  %v693_v29 = vunpack.c.0.s8 %v385_v0  ;;  %v1141_v1 = vcvt.s32.f32 %v629_v40  ;;  %v697_v18 = vunpack.c.1.s8 %v385_v0 }
 0x11a   :  { %v2019_v2 = vpack.c.bf16 %v1531_v3, %v1527_v61  ;;  %v1595_v6 = vmul.f32 %v4080_v12, %v1073_v63  ;;  %v1145_v9 = vcvt.s32.f32 %v633_v49  ;;  %v485_v42 = vunpack.c.0.s8 %v333_v33  ;;  %2466 = vmatmul.bf16.vlgmr.msrb.gmra.mxu3 %v3923_v14 }
 0x11b   :  { %2510 = vmatpush.bf16.msra.mxu3 %v2123_v39  ;;  %v1205_v43 = vcvt.s32.f32 %v693_v29  ;;  %v489_v57 = vunpack.c.1.s8 %v333_v33  ;;  %v1663_v10 = vmul.f32 %v4080_v12, %v1141_v1  ;;  %v1209_v31 = vcvt.s32.f32 %v697_v18  ;;  %v381_v33 = vld [vmem:[#allocation8 + $0x1d0] sm:$0xff] }
 0x11c   :  { %2473 = vmatpush.bf16.msra.mxu0 %v2019_v2  ;;  %v2051_v32 = vpack.c.bf16 %v1595_v6, %v1591_v24  ;;  %v549_v11 = vunpack.c.0.s8 %v4112_v30  ;;  %v1667_v19 = vmul.f32 %v4080_v12, %v1145_v9  ;;  %v997_v23 = vcvt.s32.f32 %v485_v42 }
 0x11d   :  { %v1727_v60 = vmul.f32 %v4080_v12, %v1205_v43  ;;  %v1001_v0 = vcvt.s32.f32 %v489_v57  ;;  %v1731_v8 = vmul.f32 %v4080_v12, %v1209_v31  ;;  %v553_v27 = vunpack.c.1.s8 %v4112_v30 }
 0x11e   :  { %2486 = vmatpush.bf16.msra.mxu1 %v2051_v32  ;;  %v1061_v4 = vcvt.s32.f32 %v549_v11  ;;  %v621_v28 = vunpack.c.2.s8 %v4128_v58  ;;  %v2087_v56 = vpack.c.bf16 %v1667_v19, %v1663_v10  ;;  %v1519_v20 = vmul.f32 %v4080_v12, %v997_v23 }
 0x11f   :  { %v1523_v45 = vmul.f32 %v4080_v12, %v1001_v0  ;;  %v625_v47 = vunpack.c.3.s8 %v4128_v58  ;;  %v2119_v41 = vpack.c.bf16 %v1731_v8, %v1727_v60  ;;  %v1065_v50 = vcvt.s32.f32 %v553_v27  ;;  %v4157_v60 = vld [vmem:[#allocation8 + $0x130] sm:$0xff] }
 0x120   :  { %v1583_v34 = vmul.f32 %v4080_v12, %v1061_v4  ;;  %v1133_v51 = vcvt.s32.f32 %v621_v28  ;;  %2498 = vmatpush.bf16.msra.mxu2 %v2087_v56  ;;  %v685_v53 = vunpack.c.2.s8 %v381_v33  ;;  %v689_v54 = vunpack.c.3.s8 %v381_v33 }
 0x121   :  { %v2015_v30 = vpack.c.bf16 %v1523_v45, %v1519_v20  ;;  %v1137_v38 = vcvt.s32.f32 %v625_v47  ;;  %2511 = vmatpush.bf16.msra.mxu3 %v2119_v41  ;;  %v1587_v35 = vmul.f32 %v4080_v12, %v1065_v50  ;;  %v477_v55 = vunpack.c.2.s8 %v329_v26 }
 0x122   :  { %v1655_v62 = vmul.f32 %v4080_v12, %v1133_v51  ;;  %v481_v7 = vunpack.c.3.s8 %v329_v26  ;;  %v1197_v25 = vcvt.s32.f32 %v685_v53  ;;  %v1201_v17 = vcvt.s32.f32 %v689_v54 }
 0x123   :  { %2474 = vmatpush.bf16.msra.mxu0 %v2015_v30  ;;  %v1659_v16 = vmul.f32 %v4080_v12, %v1137_v38  ;;  %v541_v21 = vunpack.c.2.s8 %v4142_v36  ;;  %v2047_v59 = vpack.c.bf16 %v1587_v35, %v1583_v34  ;;  %v989_v46 = vcvt.s32.f32 %v477_v55  ;;  %v325_v30 = vld [vmem:[#allocation8 + $0x10] sm:$0xff] }
 0x124   :  { %v993_v37 = vcvt.s32.f32 %v481_v7  ;;  %v545_v61 = vunpack.c.3.s8 %v4142_v36  ;;  %v1719_v63 = vmul.f32 %v4080_v12, %v1197_v25  ;;  %v1723_v40 = vmul.f32 %v4080_v12, %v1201_v17 }
 0x125   :  { %v2083_v3 = vpack.c.bf16 %v1659_v16, %v1655_v62  ;;  %v1053_v39 = vcvt.s32.f32 %v541_v21  ;;  %2487 = vmatpush.bf16.msra.mxu1 %v2047_v59  ;;  %v1511_v24 = vmul.f32 %v4080_v12, %v989_v46  ;;  %v613_v2 = vunpack.c.0.s8 %v4128_v58  ;;  %v4170_v62 = vld [vmem:[#allocation8 + $0x90] sm:$0xff] }
 0x126   :  { %v1515_v49 = vmul.f32 %v4080_v12, %v993_v37  ;;  %v1057_v29 = vcvt.s32.f32 %v545_v61  ;;  %v2115_v6 = vpack.c.bf16 %v1723_v40, %v1719_v63  ;;  %v617_v18 = vunpack.c.1.s8 %v4128_v58 }
 0x127   :  { %2499 = vmatpush.bf16.msra.mxu2 %v2083_v3  ;;  %v1575_v1 = vmul.f32 %v4080_v12, %v1053_v39  ;;  %v677_v9 = vunpack.c.0.s8 %v381_v33  ;;  %v1125_v57 = vcvt.s32.f32 %v613_v2  ;;  %v681_v32 = vunpack.c.1.s8 %v381_v33 }
 0x128   :  { %v2011_v43 = vpack.c.bf16 %v1515_v49, %v1511_v24  ;;  %v1579_v42 = vmul.f32 %v4080_v12, %v1057_v29  ;;  %2512 = vmatpush.bf16.msra.mxu3 %v2115_v6  ;;  %v1129_v10 = vcvt.s32.f32 %v617_v18  ;;  %v469_v11 = vunpack.c.0.s8 %v329_v26 }
 0x129   :  { %v1189_v31 = vcvt.s32.f32 %v677_v9  ;;  %v473_v19 = vunpack.c.1.s8 %v329_v26  ;;  %v1647_v0 = vmul.f32 %v4080_v12, %v1125_v57  ;;  %v1193_v8 = vcvt.s32.f32 %v681_v32  ;;  %v377_v26 = vld [vmem:[#allocation8 + $0x1b0] sm:$0xff] }
 0x12a   :  { %2475 = vmatpush.bf16.msra.mxu0 %v2011_v43  ;;  %v2043_v23 = vpack.c.bf16 %v1579_v42, %v1575_v1  ;;  %v533_v58 = vunpack.c.0.s8 %v4142_v36  ;;  %v1651_v27 = vmul.f32 %v4080_v12, %v1129_v10  ;;  %v981_v28 = vcvt.s32.f32 %v469_v11 }
 0x12b   :  { %v1711_v4 = vmul.f32 %v4080_v12, %v1189_v31  ;;  %v985_v33 = vcvt.s32.f32 %v473_v19  ;;  %v1715_v56 = vmul.f32 %v4080_v12, %v1193_v8  ;;  %v537_v20 = vunpack.c.1.s8 %v4142_v36 }
 0x12c   :  { %2488 = vmatpush.bf16.msra.mxu1 %v2043_v23  ;;  %v1045_v45 = vcvt.s32.f32 %v533_v58  ;;  %v605_v47 = vunpack.c.2.s8 %v4157_v60  ;;  %v2079_v41 = vpack.c.bf16 %v1651_v27, %v1647_v0  ;;  %v1503_v50 = vmul.f32 %v4080_v12, %v981_v28 }
 0x12d   :  { %v1507_v34 = vmul.f32 %v4080_v12, %v985_v33  ;;  %v609_v51 = vunpack.c.3.s8 %v4157_v60  ;;  %v2111_v38 = vpack.c.bf16 %v1715_v56, %v1711_v4  ;;  %v1049_v53 = vcvt.s32.f32 %v537_v20  ;;  %v4185_v4 = vld [vmem:[#allocation8 + $0x270] sm:$0xff] }
 0x12e   :  { %v1567_v54 = vmul.f32 %v4080_v12, %v1045_v45  ;;  %v1117_v35 = vcvt.s32.f32 %v605_v47  ;;  %2500 = vmatpush.bf16.msra.mxu2 %v2079_v41  ;;  %v669_v7 = vunpack.c.2.s8 %v377_v26  ;;  %v673_v16 = vunpack.c.3.s8 %v377_v26 }
 0x12f   :  { %v2007_v36 = vpack.c.bf16 %v1507_v34, %v1503_v50  ;;  %v1121_v55 = vcvt.s32.f32 %v609_v51  ;;  %2513 = vmatpush.bf16.msra.mxu3 %v2111_v38  ;;  %v1571_v25 = vmul.f32 %v4080_v12, %v1049_v53  ;;  %v461_v21 = vunpack.c.2.s8 %v325_v30 }
 0x130   :  { %v1639_v17 = vmul.f32 %v4080_v12, %v1117_v35  ;;  %v465_v59 = vunpack.c.3.s8 %v325_v30  ;;  %v1181_v37 = vcvt.s32.f32 %v669_v7  ;;  %v1185_v61 = vcvt.s32.f32 %v673_v16 }
 0x131   :  { %2476 = vmatpush.bf16.msra.mxu0 %v2007_v36  ;;  %v1643_v46 = vmul.f32 %v4080_v12, %v1121_v55  ;;  %v525_v3 = vunpack.c.2.s8 %v4170_v62  ;;  %v2039_v63 = vpack.c.bf16 %v1571_v25, %v1567_v54  ;;  %v973_v40 = vcvt.s32.f32 %v461_v21  ;;  %v357_v36 = vld [vmem:[#allocation8 + $0x110] sm:$0xff] }
 0x132   :  { %v977_v39 = vcvt.s32.f32 %v465_v59  ;;  %v529_v24 = vunpack.c.3.s8 %v4170_v62  ;;  %v1703_v29 = vmul.f32 %v4080_v12, %v1181_v37  ;;  %v1707_v2 = vmul.f32 %v4080_v12, %v1185_v61 }
 0x133   :  { %v2075_v49 = vpack.c.bf16 %v1643_v46, %v1639_v17  ;;  %v1037_v6 = vcvt.s32.f32 %v525_v3  ;;  %2489 = vmatpush.bf16.msra.mxu1 %v2039_v63  ;;  %v1495_v1 = vmul.f32 %v4080_v12, %v973_v40  ;;  %v597_v43 = vunpack.c.0.s8 %v4157_v60  ;;  %v4198_v17 = vld [vmem:[#allocation8 + $0x190] sm:$0xff] }
 0x134   :  { %v1499_v18 = vmul.f32 %v4080_v12, %v977_v39  ;;  %v1041_v9 = vcvt.s32.f32 %v529_v24  ;;  %v2107_v42 = vpack.c.bf16 %v1707_v2, %v1703_v29  ;;  %v601_v32 = vunpack.c.1.s8 %v4157_v60 }
 0x135   :  { %2501 = vmatpush.bf16.msra.mxu2 %v2075_v49  ;;  %v1559_v57 = vmul.f32 %v4080_v12, %v1037_v6  ;;  %v661_v10 = vunpack.c.0.s8 %v377_v26  ;;  %v1109_v19 = vcvt.s32.f32 %v597_v43  ;;  %v665_v23 = vunpack.c.1.s8 %v377_v26 }
 0x136   :  { %v2003_v31 = vpack.c.bf16 %v1499_v18, %v1495_v1  ;;  %v1563_v11 = vmul.f32 %v4080_v12, %v1041_v9  ;;  %2514 = vmatpush.bf16.msra.mxu3 %v2107_v42  ;;  %v1113_v0 = vcvt.s32.f32 %v601_v32  ;;  %v453_v58 = vunpack.c.0.s8 %v325_v30 }
 0x137   :  { %v1173_v8 = vcvt.s32.f32 %v661_v10  ;;  %v457_v27 = vunpack.c.1.s8 %v325_v30  ;;  %v1631_v33 = vmul.f32 %v4080_v12, %v1109_v19  ;;  %v1177_v56 = vcvt.s32.f32 %v665_v23  ;;  %v417_v30 = vld [vmem:[#allocation8 + $0x2f0] sm:$0xff] }
 0x138   :  { %2477 = vmatpush.bf16.msra.mxu0 %v2003_v31  ;;  %v2035_v28 = vpack.c.bf16 %v1563_v11, %v1559_v57  ;;  %v517_v60 = vunpack.c.0.s8 %v4170_v62  ;;  %v1635_v20 = vmul.f32 %v4080_v12, %v1113_v0  ;;  %v965_v47 = vcvt.s32.f32 %v453_v58 }
 0x139   :  { %v1695_v45 = vmul.f32 %v4080_v12, %v1173_v8  ;;  %v969_v26 = vcvt.s32.f32 %v457_v27  ;;  %v1699_v41 = vmul.f32 %v4080_v12, %v1177_v56  ;;  %v521_v50 = vunpack.c.1.s8 %v4170_v62 }
 0x13a   :  { %2490 = vmatpush.bf16.msra.mxu1 %v2035_v28  ;;  %v1029_v34 = vcvt.s32.f32 %v517_v60  ;;  %v765_v51 = vunpack.c.2.s8 %v4185_v4  ;;  %v2071_v38 = vpack.c.bf16 %v1635_v20, %v1631_v33  ;;  %v1487_v53 = vmul.f32 %v4080_v12, %v965_v47 }
 0x13b   :  { %v1491_v54 = vmul.f32 %v4080_v12, %v969_v26  ;;  %v769_v35 = vunpack.c.3.s8 %v4185_v4  ;;  %v2103_v55 = vpack.c.bf16 %v1699_v41, %v1695_v45  ;;  %v1033_v7 = vcvt.s32.f32 %v521_v50  ;;  %v4214_v45 = vld [vmem:[#allocation8 + $0x370] sm:$0xff] }
 0x13c   :  { %v1551_v16 = vmul.f32 %v4080_v12, %v1029_v34  ;;  %v1277_v25 = vcvt.s32.f32 %v765_v51  ;;  %2502 = vmatpush.bf16.msra.mxu2 %v2071_v38  ;;  %v829_v59 = vunpack.c.2.s8 %v417_v30  ;;  %v833_v46 = vunpack.c.3.s8 %v417_v30 }
 0x13d   :  { %v1999_v62 = vpack.c.bf16 %v1491_v54, %v1487_v53  ;;  %v1281_v21 = vcvt.s32.f32 %v769_v35  ;;  %2515 = vmatpush.bf16.msra.mxu3 %v2103_v55  ;;  %v1555_v37 = vmul.f32 %v4080_v12, %v1033_v7  ;;  %v589_v3 = vunpack.c.2.s8 %v357_v36 }
 0x13e   :  { %v1799_v61 = vmul.f32 %v4080_v12, %v1277_v25  ;;  %v593_v63 = vunpack.c.3.s8 %v357_v36  ;;  %v1341_v39 = vcvt.s32.f32 %v829_v59  ;;  %v1345_v24 = vcvt.s32.f32 %v833_v46 }
 0x13f   :  { %2478 = vmatpush.bf16.msra.mxu0 %v1999_v62  ;;  %v1803_v40 = vmul.f32 %v4080_v12, %v1281_v21  ;;  %v653_v49 = vunpack.c.2.s8 %v4198_v17  ;;  %v2031_v29 = vpack.c.bf16 %v1555_v37, %v1551_v16  ;;  %v1101_v2 = vcvt.s32.f32 %v589_v3  ;;  %v397_v62 = vld [vmem:[#allocation8 + $0x250] sm:$0xff] }
 0x140   :  { %v1105_v6 = vcvt.s32.f32 %v593_v63  ;;  %v657_v1 = vunpack.c.3.s8 %v4198_v17  ;;  %v1863_v9 = vmul.f32 %v4080_v12, %v1341_v39  ;;  %v1867_v43 = vmul.f32 %v4080_v12, %v1345_v24 }
 0x141   :  { %v2155_v18 = vpack.c.bf16 %v1803_v40, %v1799_v61  ;;  %v1165_v42 = vcvt.s32.f32 %v653_v49  ;;  %2491 = vmatpush.bf16.msra.mxu1 %v2031_v29  ;;  %v1623_v57 = vmul.f32 %v4080_v12, %v1101_v2  ;;  %v757_v31 = vunpack.c.0.s8 %v4185_v4  ;;  %v4228_v61 = vld [vmem:[#allocation8 + $0x2d0] sm:$0xff] }
 0x142   :  { %v1627_v32 = vmul.f32 %v4080_v12, %v1105_v6  ;;  %v1169_v10 = vcvt.s32.f32 %v657_v1  ;;  %2479 = vmatmul.bf16.vlgmr.msra.gmra.mxu0 %v3808_v48  ;;  %v2187_v11 = vpack.c.bf16 %v1867_v43, %v1863_v9  ;;  %v761_v23 = vunpack.c.1.s8 %v4185_v4 }
 0x143   :  { %2523 = vmatpush.bf16.msrb.mxu0 %v2155_v18  ;;  %v1687_v19 = vmul.f32 %v4080_v12, %v1165_v42  ;;  %v821_v0 = vunpack.c.0.s8 %v417_v30  ;;  %v1269_v27 = vcvt.s32.f32 %v757_v31  ;;  %v825_v28 = vunpack.c.1.s8 %v417_v30 }
 0x144   :  { %v2067_v8 = vpack.c.bf16 %v1627_v32, %v1623_v57  ;;  %v1691_v58 = vmul.f32 %v4080_v12, %v1169_v10  ;;  %v1273_v33 = vcvt.s32.f32 %v761_v23  ;;  %v581_v60 = vunpack.c.0.s8 %v357_v36  ;;  %2492 = vmatmul.bf16.vlgmr.msra.gmra.mxu1 %v3814_v52 }
 0x145   :  { %2536 = vmatpush.bf16.msrb.mxu1 %v2187_v11  ;;  %v1333_v56 = vcvt.s32.f32 %v821_v0  ;;  %v585_v20 = vunpack.c.1.s8 %v357_v36  ;;  %v1791_v26 = vmul.f32 %v4080_v12, %v1269_v27  ;;  %v1337_v4 = vcvt.s32.f32 %v825_v28  ;;  %v449_v36 = vld [vmem:[#allocation8 + $0x3f0] sm:$0xff] }
 0x146   :  { %2503 = vmatpush.bf16.msra.mxu2 %v2067_v8  ;;  %v2099_v47 = vpack.c.bf16 %v1691_v58, %v1687_v19  ;;  %v645_v41 = vunpack.c.0.s8 %v4198_v17  ;;  %v1795_v50 = vmul.f32 %v4080_v12, %v1273_v33  ;;  %v1093_v51 = vcvt.s32.f32 %v581_v60 }
 0x147   :  { %v1855_v34 = vmul.f32 %v4080_v12, %v1333_v56  ;;  %v1097_v30 = vcvt.s32.f32 %v585_v20  ;;  %v1859_v38 = vmul.f32 %v4080_v12, %v1337_v4  ;;  %v649_v53 = vunpack.c.1.s8 %v4198_v17 }
 0x148   :  { %2516 = vmatpush.bf16.msra.mxu3 %v2099_v47  ;;  %v1157_v54 = vcvt.s32.f32 %v645_v41  ;;  %v893_v35 = vunpack.c.2.s8 %v4214_v45  ;;  %v2151_v55 = vpack.c.bf16 %v1795_v50, %v1791_v26  ;;  %v1615_v7 = vmul.f32 %v4080_v12, %v1093_v51 }
 0x149   :  { %v1619_v16 = vmul.f32 %v4080_v12, %v1097_v30  ;;  %v897_v25 = vunpack.c.3.s8 %v4214_v45  ;;  %v2183_v21 = vpack.c.bf16 %v1859_v38, %v1855_v34  ;;  %v1161_v59 = vcvt.s32.f32 %v649_v53  ;;  %v4244_v34 = vld [vmem:[#allocation8 + $0x350] sm:$0xff] }
 0x14a   :  { %v1679_v46 = vmul.f32 %v4080_v12, %v1157_v54  ;;  %v1405_v37 = vcvt.s32.f32 %v893_v35  ;;  %2524 = vmatpush.bf16.msrb.mxu0 %v2151_v55  ;;  %v957_v63 = vunpack.c.2.s8 %v449_v36  ;;  %v961_v40 = vunpack.c.3.s8 %v449_v36 }
 0x14b   :  { %v2063_v17 = vpack.c.bf16 %v1619_v16, %v1615_v7  ;;  %v1409_v3 = vcvt.s32.f32 %v897_v25  ;;  %2537 = vmatpush.bf16.msrb.mxu1 %v2183_v21  ;;  %v1683_v39 = vmul.f32 %v4080_v12, %v1161_v59  ;;  %v749_v49 = vunpack.c.2.s8 %v397_v62 }
 0x14c   :  { %v1927_v24 = vmul.f32 %v4080_v12, %v1405_v37  ;;  %v753_v29 = vunpack.c.3.s8 %v397_v62  ;;  %v1469_v6 = vcvt.s32.f32 %v957_v63  ;;  %v1473_v1 = vcvt.s32.f32 %v961_v40 }
 0x14d   :  { %2504 = vmatpush.bf16.msra.mxu2 %v2063_v17  ;;  %v1931_v2 = vmul.f32 %v4080_v12, %v1409_v3  ;;  %v813_v18 = vunpack.c.2.s8 %v4228_v61  ;;  %v2095_v9 = vpack.c.bf16 %v1683_v39, %v1679_v46  ;;  %v1261_v43 = vcvt.s32.f32 %v749_v49  ;;  %v393_v17 = vld [vmem:[#allocation8 + $0x230] sm:$0xff] }
 0x14e   :  { %v1265_v42 = vcvt.s32.f32 %v753_v29  ;;  %v817_v57 = vunpack.c.3.s8 %v4228_v61  ;;  %v1991_v10 = vmul.f32 %v4080_v12, %v1469_v6  ;;  %v1995_v31 = vmul.f32 %v4080_v12, %v1473_v1 }
 0x14f   :  { %v2219_v32 = vpack.c.bf16 %v1931_v2, %v1927_v24  ;;  %v1325_v11 = vcvt.s32.f32 %v813_v18  ;;  %2517 = vmatpush.bf16.msra.mxu3 %v2095_v9  ;;  %v1783_v19 = vmul.f32 %v4080_v12, %v1261_v43  ;;  %v885_v8 = vunpack.c.0.s8 %v4214_v45  ;;  %v4258_v24 = vld [vmem:[#allocation8 + $0x2b0] sm:$0xff] }
 0x150   :  { %2505 = vmatmul.bf16.vlgmr.msra.gmra.mxu2 %v3848_v5  ;;  %v1787_v23 = vmul.f32 %v4080_v12, %v1265_v42  ;;  %v1329_v0 = vcvt.s32.f32 %v817_v57  ;;  %v2251_v58 = vpack.c.bf16 %v1995_v31, %v1991_v10  ;;  %v889_v28 = vunpack.c.1.s8 %v4214_v45 }
 0x151   :  { %2549 = vmatpush.bf16.msrb.mxu2 %v2219_v32  ;;  %v1847_v27 = vmul.f32 %v4080_v12, %v1325_v11  ;;  %v949_v33 = vunpack.c.0.s8 %v449_v36  ;;  %v1397_v20 = vcvt.s32.f32 %v885_v8  ;;  %v953_v47 = vunpack.c.1.s8 %v449_v36 }
 0x152   :  { %v2147_v56 = vpack.c.bf16 %v1787_v23, %v1783_v19  ;;  %v1851_v60 = vmul.f32 %v4080_v12, %v1329_v0  ;;  %v1401_v26 = vcvt.s32.f32 %v889_v28  ;;  %v741_v41 = vunpack.c.0.s8 %v397_v62  ;;  %2518 = vmatmul.bf16.vlgmr.msra.gmra.mxu3 %v3858_v44 }
 0x153   :  { %2562 = vmatpush.bf16.msrb.mxu3 %v2251_v58  ;;  %v1461_v4 = vcvt.s32.f32 %v949_v33  ;;  %v745_v50 = vunpack.c.1.s8 %v397_v62  ;;  %v1919_v30 = vmul.f32 %v4080_v12, %v1397_v20  ;;  %v1465_v45 = vcvt.s32.f32 %v953_v47  ;;  %v445_v62 = vld [vmem:[#allocation8 + $0x3d0] sm:$0xff] }
 0x154   :  { %2525 = vmatpush.bf16.msrb.mxu0 %v2147_v56  ;;  %v2179_v51 = vpack.c.bf16 %v1851_v60, %v1847_v27  ;;  %v805_v38 = vunpack.c.0.s8 %v4228_v61  ;;  %v1923_v53 = vmul.f32 %v4080_v12, %v1401_v26  ;;  %v1253_v35 = vcvt.s32.f32 %v741_v41 }
 0x155   :  { %v1983_v54 = vmul.f32 %v4080_v12, %v1461_v4  ;;  %v1257_v36 = vcvt.s32.f32 %v745_v50  ;;  %v1987_v55 = vmul.f32 %v4080_v12, %v1465_v45  ;;  %v809_v7 = vunpack.c.1.s8 %v4228_v61 }
 0x156   :  { %2538 = vmatpush.bf16.msrb.mxu1 %v2179_v51  ;;  %v1317_v16 = vcvt.s32.f32 %v805_v38  ;;  %v877_v25 = vunpack.c.2.s8 %v4244_v34  ;;  %v2215_v21 = vpack.c.bf16 %v1923_v53, %v1919_v30  ;;  %v1775_v59 = vmul.f32 %v4080_v12, %v1253_v35 }
 0x157   :  { %v1779_v46 = vmul.f32 %v4080_v12, %v1257_v36  ;;  %v881_v37 = vunpack.c.3.s8 %v4244_v34  ;;  %v2247_v3 = vpack.c.bf16 %v1987_v55, %v1983_v54  ;;  %v1321_v63 = vcvt.s32.f32 %v809_v7  ;;  %v4273_v54 = vld [vmem:[#allocation8 + $0x330] sm:$0xff] }
 0x158   :  { %v1839_v40 = vmul.f32 %v4080_v12, %v1317_v16  ;;  %v1389_v39 = vcvt.s32.f32 %v877_v25  ;;  %2550 = vmatpush.bf16.msrb.mxu2 %v2215_v21  ;;  %v941_v29 = vunpack.c.2.s8 %v445_v62  ;;  %v945_v2 = vunpack.c.3.s8 %v445_v62 }
 0x159   :  { %v2143_v61 = vpack.c.bf16 %v1779_v46, %v1775_v59  ;;  %v1393_v49 = vcvt.s32.f32 %v881_v37  ;;  %2563 = vmatpush.bf16.msrb.mxu3 %v2247_v3  ;;  %v1843_v6 = vmul.f32 %v4080_v12, %v1321_v63  ;;  %v733_v18 = vunpack.c.2.s8 %v393_v17 }
 0x15a   :  { %v1911_v1 = vmul.f32 %v4080_v12, %v1389_v39  ;;  %v737_v9 = vunpack.c.3.s8 %v393_v17  ;;  %v1453_v42 = vcvt.s32.f32 %v941_v29  ;;  %v1457_v57 = vcvt.s32.f32 %v945_v2 }
 0x15b   :  { %2526 = vmatpush.bf16.msrb.mxu0 %v2143_v61  ;;  %v1915_v43 = vmul.f32 %v4080_v12, %v1393_v49  ;;  %v797_v32 = vunpack.c.2.s8 %v4258_v24  ;;  %v2175_v10 = vpack.c.bf16 %v1843_v6, %v1839_v40  ;;  %v1245_v31 = vcvt.s32.f32 %v733_v18  ;;  %v389_v61 = vld [vmem:[#allocation8 + $0x210] sm:$0xff] }
 0x15c   :  { %v1249_v11 = vcvt.s32.f32 %v737_v9  ;;  %v801_v19 = vunpack.c.3.s8 %v4258_v24  ;;  %v1975_v0 = vmul.f32 %v4080_v12, %v1453_v42  ;;  %v1979_v8 = vmul.f32 %v4080_v12, %v1457_v57 }
 0x15d   :  { %v2211_v23 = vpack.c.bf16 %v1915_v43, %v1911_v1  ;;  %v1309_v58 = vcvt.s32.f32 %v797_v32  ;;  %2539 = vmatpush.bf16.msrb.mxu1 %v2175_v10  ;;  %v1767_v27 = vmul.f32 %v4080_v12, %v1245_v31  ;;  %v869_v56 = vunpack.c.0.s8 %v4244_v34  ;;  %v4286_v1 = vld [vmem:[#allocation8 + $0x290] sm:$0xff] }
 0x15e   :  { %v1771_v28 = vmul.f32 %v4080_v12, %v1249_v11  ;;  %v1313_v33 = vcvt.s32.f32 %v801_v19  ;;  %v2243_v60 = vpack.c.bf16 %v1979_v8, %v1975_v0  ;;  %v873_v47 = vunpack.c.1.s8 %v4244_v34 }
 0x15f   :  { %2551 = vmatpush.bf16.msrb.mxu2 %v2211_v23  ;;  %v1831_v20 = vmul.f32 %v4080_v12, %v1309_v58  ;;  %v933_v26 = vunpack.c.0.s8 %v445_v62  ;;  %v1381_v50 = vcvt.s32.f32 %v869_v56  ;;  %v937_v51 = vunpack.c.1.s8 %v445_v62 }
 0x160   :  { %v2139_v4 = vpack.c.bf16 %v1771_v28, %v1767_v27  ;;  %v1835_v41 = vmul.f32 %v4080_v12, %v1313_v33  ;;  %2564 = vmatpush.bf16.msrb.mxu3 %v2243_v60  ;;  %v1385_v30 = vcvt.s32.f32 %v873_v47  ;;  %v725_v38 = vunpack.c.0.s8 %v393_v17 }
 0x161   :  { %v1445_v45 = vcvt.s32.f32 %v933_v26  ;;  %v729_v53 = vunpack.c.1.s8 %v393_v17  ;;  %v1903_v36 = vmul.f32 %v4080_v12, %v1381_v50  ;;  %v1449_v55 = vcvt.s32.f32 %v937_v51  ;;  %v441_v17 = vld [vmem:[#allocation8 + $0x3b0] sm:$0xff] }
 0x162   :  { %2527 = vmatpush.bf16.msrb.mxu0 %v2139_v4  ;;  %v2171_v35 = vpack.c.bf16 %v1835_v41, %v1831_v20  ;;  %v789_v34 = vunpack.c.0.s8 %v4258_v24  ;;  %v1907_v7 = vmul.f32 %v4080_v12, %v1385_v30  ;;  %v1237_v25 = vcvt.s32.f32 %v725_v38 }
 0x163   :  { %v1967_v16 = vmul.f32 %v4080_v12, %v1445_v45  ;;  %v1241_v62 = vcvt.s32.f32 %v729_v53  ;;  %v1971_v21 = vmul.f32 %v4080_v12, %v1449_v55  ;;  %v793_v59 = vunpack.c.1.s8 %v4258_v24 }
 0x164   :  { %2540 = vmatpush.bf16.msrb.mxu1 %v2171_v35  ;;  %v1301_v46 = vcvt.s32.f32 %v789_v34  ;;  %v861_v37 = vunpack.c.2.s8 %v4273_v54  ;;  %v2207_v3 = vpack.c.bf16 %v1907_v7, %v1903_v36  ;;  %v1759_v63 = vmul.f32 %v4080_v12, %v1237_v25  ;;  %v4303_v25 = vpop.f32.mrf.mxu0 }
 0x165   :  { %v1763_v40 = vmul.f32 %v4080_v12, %v1241_v62  ;;  %v865_v39 = vunpack.c.3.s8 %v4273_v54  ;;  %v2239_v49 = vpack.c.bf16 %v1971_v21, %v1967_v16  ;;  %v1305_v29 = vcvt.s32.f32 %v793_v59  ;;  %v4301_v16 = vld [vmem:[#allocation8 + $0x78] sm:$0xff]  ;;  %v4305_v62 = vpop.f32.mrf.mxu1 }
 0x166   :  { %v1823_v2 = vmul.f32 %v4080_v12, %v1301_v46  ;;  %v1373_v6 = vcvt.s32.f32 %v861_v37  ;;  %2552 = vmatpush.bf16.msrb.mxu2 %v2207_v3  ;;  %v925_v9 = vunpack.c.2.s8 %v441_v17  ;;  %v929_v43 = vunpack.c.3.s8 %v441_v17 }
 0x167   :  { %v2135_v24 = vpack.c.bf16 %v1763_v40, %v1759_v63  ;;  %v1377_v18 = vcvt.s32.f32 %v865_v39  ;;  %2565 = vmatpush.bf16.msrb.mxu3 %v2239_v49  ;;  %v1827_v42 = vmul.f32 %v4080_v12, %v1305_v29  ;;  %v717_v32 = vunpack.c.2.s8 %v389_v61  ;;  %v354_v29 = vld [vmem:[#allocation8 + $0xf8] sm:$0xff] }
 0x168   :  { %v1895_v57 = vmul.f32 %v4080_v12, %v1373_v6  ;;  %v721_v10 = vunpack.c.3.s8 %v389_v61  ;;  %v1437_v11 = vcvt.s32.f32 %v925_v9  ;;  %v1441_v19 = vcvt.s32.f32 %v929_v43  ;;  %v4317_v9 = vld [vmem:[#allocation8 + $0x310] sm:$0xff] }
 0x169   :  { %2528 = vmatpush.bf16.msrb.mxu0 %v2135_v24  ;;  %v1899_v31 = vmul.f32 %v4080_v12, %v1377_v18  ;;  %v781_v23 = vunpack.c.2.s8 %v4286_v1  ;;  %v2167_v0 = vpack.c.bf16 %v1827_v42, %v1823_v2  ;;  %v1229_v8 = vcvt.s32.f32 %v717_v32 }
 0x16a   :  { %v1233_v58 = vcvt.s32.f32 %v721_v10  ;;  %v785_v27 = vunpack.c.3.s8 %v4286_v1  ;;  %v1959_v33 = vmul.f32 %v4080_v12, %v1437_v11  ;;  %v1963_v56 = vmul.f32 %v4080_v12, %v1441_v19  ;;  %v4320_v10 = vld [vmem:[#allocation8 + $0x390] sm:$0xff]  ;;  %v3281_v11 = vld [vmem:[#allocation10] sm:$0xf] }
 0x16b   :  { %v2203_v28 = vpack.c.bf16 %v1899_v31, %v1895_v57  ;;  %v1293_v60 = vcvt.s32.f32 %v781_v23  ;;  %2541 = vmatpush.bf16.msrb.mxu1 %v2167_v0  ;;  %v1751_v20 = vmul.f32 %v4080_v12, %v1229_v8  ;;  %v853_v4 = vunpack.c.0.s8 %v4273_v54 }
 0x16c   :  { %v1755_v47 = vmul.f32 %v4080_v12, %v1233_v58  ;;  %v1297_v26 = vcvt.s32.f32 %v785_v27  ;;  %v2235_v41 = vpack.c.bf16 %v1963_v56, %v1959_v33  ;;  %v857_v51 = vunpack.c.1.s8 %v4273_v54 }
 0x16d   :  { %2553 = vmatpush.bf16.msrb.mxu2 %v2203_v28  ;;  %v1815_v50 = vmul.f32 %v4080_v12, %v1293_v60  ;;  %v917_v30 = vunpack.c.0.s8 %v441_v17  ;;  %v1365_v53 = vcvt.s32.f32 %v853_v4  ;;  %v921_v35 = vunpack.c.1.s8 %v441_v17 }
 0x16e   :  { %v2131_v45 = vpack.c.bf16 %v1755_v47, %v1751_v20  ;;  %v1819_v38 = vmul.f32 %v4080_v12, %v1297_v26  ;;  %2566 = vmatpush.bf16.msrb.mxu3 %v2235_v41  ;;  %v1369_v36 = vcvt.s32.f32 %v857_v51  ;;  %v709_v34 = vunpack.c.0.s8 %v389_v61  ;;  %v2274_v20 = vpop.f32.mrf.mxu0  ;;  %v2287_v47 = vpop.f32.mrf.mxu1 }
 0x16f   :  { %v1429_v55 = vcvt.s32.f32 %v917_v30  ;;  %v713_v7 = vunpack.c.1.s8 %v389_v61  ;;  %v1887_v54 = vmul.f32 %v4080_v12, %v1365_v53  ;;  %v1433_v59 = vcvt.s32.f32 %v921_v35  ;;  %v4362_v47 = vld [vmem:[#allocation8 + $0xd8] sm:$0xff] }
 0x170   :  { %2529 = vmatpush.bf16.msrb.mxu0 %v2131_v45  ;;  %v2163_v21 = vpack.c.bf16 %v1819_v38, %v1815_v50  ;;  %v773_v46 = vunpack.c.0.s8 %v4286_v1  ;;  %v1891_v37 = vmul.f32 %v4080_v12, %v1369_v36  ;;  %v1221_v3 = vcvt.s32.f32 %v709_v34 }
 0x171   :  { %v1951_v17 = vmul.f32 %v4080_v12, %v1429_v55  ;;  %v1225_v63 = vcvt.s32.f32 %v713_v7  ;;  %v1955_v40 = vmul.f32 %v4080_v12, %v1433_v59  ;;  %v777_v39 = vunpack.c.1.s8 %v4286_v1 }
 0x172   :  { %2542 = vmatpush.bf16.msrb.mxu1 %v2163_v21  ;;  %v1285_v61 = vcvt.s32.f32 %v773_v46  ;;  %v510_v49 = vunpack.c.2.s8 %v4301_v16  ;;  %v2199_v2 = vpack.c.bf16 %v1891_v37, %v1887_v54  ;;  %v1743_v6 = vmul.f32 %v4080_v12, %v1221_v3 }
 0x173   :  { %v1747_v24 = vmul.f32 %v4080_v12, %v1225_v63  ;;  %v514_v18 = vunpack.c.3.s8 %v4301_v16  ;;  %v2231_v43 = vpack.c.bf16 %v1955_v40, %v1951_v17  ;;  %v1289_v42 = vcvt.s32.f32 %v777_v39 }
 0x174   :  { %v1807_v57 = vmul.f32 %v4080_v12, %v1285_v61  ;;  %v1022_v32 = vcvt.s32.f32 %v510_v49  ;;  %2554 = vmatpush.bf16.msrb.mxu2 %v2199_v2  ;;  %v4322_v19 = vperm.slane %v3281_v11, 3  ;;  %v574_v23 = vunpack.c.2.s8 %v354_v29 }
 0x175   :  { %v2127_v1 = vpack.c.bf16 %v1747_v24, %v1743_v6  ;;  %v1026_v31 = vcvt.s32.f32 %v514_v18  ;;  %2567 = vmatpush.bf16.msrb.mxu3 %v2231_v43  ;;  %v1811_v0 = vmul.f32 %v4080_v12, %v1289_v42  ;;  %v578_v8 = vunpack.c.3.s8 %v354_v29  ;;  %v4345_v6 = vld [vmem:[#allocation8 + $0x178] sm:$0xff] }
 0x176   :  { %v845_v58 = vunpack.c.2.s8 %v4317_v9  ;;  %v849_v27 = vunpack.c.3.s8 %v4317_v9  ;;  %v1544_v28 = vmul.f32 %v4322_v19, %v1022_v32  ;;  %v1086_v56 = vcvt.s32.f32 %v574_v23 }
 0x177   :  { %2530 = vmatpush.bf16.msrb.mxu0 %v2127_v1  ;;  %v1548_v33 = vmul.f32 %v4322_v19, %v1026_v31  ;;  %v909_v60 = vunpack.c.2.s8 %v4320_v10  ;;  %v2159_v26 = vpack.c.bf16 %v1811_v0, %v1807_v57  ;;  %v1090_v4 = vcvt.s32.f32 %v578_v8  ;;  %v4351_v31 = vld [vmem:[#allocation8 + $0x1f8] sm:$0xff] }
 0x178   :  { %v1357_v41 = vcvt.s32.f32 %v845_v58  ;;  %v1361_v50 = vcvt.s32.f32 %v849_v27  ;;  %v1608_v30 = vmul.f32 %v4322_v19, %v1086_v56  ;;  %v913_v45 = vunpack.c.3.s8 %v4320_v10  ;;  %v4356_v8 = vld [vmem:[#allocation8 + $0x58] sm:$0xff] }
 0x179   :  { %v2028_v51 = vpack.c.bf16 %v1548_v33, %v1544_v28  ;;  %v1421_v38 = vcvt.s32.f32 %v909_v60  ;;  %2543 = vmatpush.bf16.msrb.mxu1 %v2159_v26  ;;  %v1612_v53 = vmul.f32 %v4322_v19, %v1090_v4  ;;  %v502_v55 = vunpack.c.0.s8 %v4301_v16 }
 0x17a   :  { %v1879_v35 = vmul.f32 %v4080_v12, %v1357_v41  ;;  %v1883_v36 = vmul.f32 %v4080_v12, %v1361_v50  ;;  %2531 = vmatmul.bf16.vlgmr.msrb.gmra.mxu0 %v3898_v22  ;;  %v1425_v34 = vcvt.s32.f32 %v913_v45  ;;  %v506_v21 = vunpack.c.1.s8 %v4301_v16 }
 0x17b   :  { %2575 = vmatpush.bf16.msra.mxu0 %v2028_v51  ;;  %v1943_v7 = vmul.f32 %v4080_v12, %v1421_v38  ;;  %v566_v54 = vunpack.c.0.s8 %v354_v29  ;;  %v2060_v59 = vpack.c.bf16 %v1612_v53, %v1608_v30  ;;  %v1014_v37 = vcvt.s32.f32 %v502_v55  ;;  %v4372_v53 = vld [vmem:[%s4704_s5] sm:$0xf] }
 0x17c   :  { %v2195_v46 = vpack.c.bf16 %v1883_v36, %v1879_v35  ;;  %v570_v17 = vunpack.c.1.s8 %v354_v29  ;;  %v1947_v3 = vmul.f32 %v4080_v12, %v1425_v34  ;;  %2544 = vmatmul.bf16.vlgmr.msrb.gmra.mxu1 %v3903_v15  ;;  %v1018_v63 = vcvt.s32.f32 %v506_v21  ;;  %v4374_v35 = vpop.f32.mrf.mxu2  ;;  %v4376_v36 = vpop.f32.mrf.mxu3 }
 0x17d   :  { %v1078_v40 = vcvt.s32.f32 %v566_v54  ;;  %v837_v39 = vunpack.c.0.s8 %v4317_v9  ;;  %2588 = vmatpush.bf16.msra.mxu1 %v2060_v59  ;;  %v1536_v61 = vmul.f32 %v4322_v19, %v1014_v37  ;;  %v841_v16 = vunpack.c.1.s8 %v4317_v9 }
 0x17e   :  { %2555 = vmatpush.bf16.msrb.mxu2 %v2195_v46  ;;  %v1082_v49 = vcvt.s32.f32 %v570_v17  ;;  %v901_v2 = vunpack.c.0.s8 %v4320_v10  ;;  %v2227_v29 = vpack.c.bf16 %v1947_v3, %v1943_v7  ;;  %v1540_v24 = vmul.f32 %v4322_v19, %v1018_v63 }
 0x17f   :  { %v1600_v18 = vmul.f32 %v4322_v19, %v1078_v40  ;;  %v1349_v43 = vcvt.s32.f32 %v837_v39  ;;  %v1353_v57 = vcvt.s32.f32 %v841_v16  ;;  %v905_v32 = vunpack.c.1.s8 %v4320_v10 }
 0x180   :  { %v1604_v42 = vmul.f32 %v4322_v19, %v1082_v49  ;;  %v1413_v1 = vcvt.s32.f32 %v901_v2  ;;  %2568 = vmatpush.bf16.msrb.mxu3 %v2227_v29  ;;  %v2024_v9 = vpack.c.bf16 %v1540_v24, %v1536_v61  ;;  %v638_v23 = vunpack.c.2.s8 %v4345_v6 }
 0x181   :  { %v1871_v11 = vmul.f32 %v4080_v12, %v1349_v43  ;;  %v642_v0 = vunpack.c.3.s8 %v4345_v6  ;;  %v1875_v27 = vmul.f32 %v4080_v12, %v1353_v57  ;;  %v1417_v28 = vcvt.s32.f32 %v905_v32 }
 0x182   :  { %v2056_v58 = vpack.c.bf16 %v1604_v42, %v1600_v18  ;;  %v1935_v33 = vmul.f32 %v4080_v12, %v1413_v1  ;;  %2576 = vmatpush.bf16.msra.mxu0 %v2024_v9  ;;  %v1150_v10 = vcvt.s32.f32 %v638_v23  ;;  %v702_v60 = vunpack.c.2.s8 %v4351_v31  ;;  %v4399_v9 = vld [vmem:[#allocation8 + $0x158] sm:$0xff]  ;;  %v4403_v23 = vpop.f32.mrf.mxu1 }
 0x183   :  { %v1154_v56 = vcvt.s32.f32 %v642_v0  ;;  %v706_v20 = vunpack.c.3.s8 %v4351_v31  ;;  %v2191_v26 = vpack.c.bf16 %v1875_v27, %v1871_v11  ;;  %v1939_v4 = vmul.f32 %v4080_v12, %v1417_v28  ;;  %v4401_v11 = vpop.f32.mrf.mxu0 }
 0x184   :  { %2589 = vmatpush.bf16.msra.mxu1 %v2056_v58  ;;  %v494_v41 = vunpack.c.2.s8 %v4356_v8  ;;  %v498_v50 = vunpack.c.3.s8 %v4356_v8  ;;  %v1672_v51 = vmul.f32 %v4322_v19, %v1150_v10  ;;  %v1214_v45 = vcvt.s32.f32 %v702_v60  ;;  %v2300_v28 = vpop.f32.mrf.mxu2  ;;  %v4409_v60 = vld [vmem:[#allocation8 + $0x1d8] sm:$0xff] }
 0x185   :  { %v1676_v30 = vmul.f32 %v4322_v19, %v1154_v56  ;;  %v1218_v38 = vcvt.s32.f32 %v706_v20  ;;  %2556 = vmatpush.bf16.msrb.mxu2 %v2191_v26  ;;  %v2223_v12 = vpack.c.bf16 %v1939_v4, %v1935_v33  ;;  %v558_v7 = vunpack.c.2.s8 %v4362_v47 }
 0x186   :  { %v1006_v55 = vcvt.s32.f32 %v494_v41  ;;  %v1010_v34 = vcvt.s32.f32 %v498_v50  ;;  %v1736_v54 = vmul.f32 %v4322_v19, %v1214_v45  ;;  %v562_v46 = vunpack.c.3.s8 %v4362_v47 }
 0x187   :  { %v2092_v21 = vpack.c.bf16 %v1676_v30, %v1672_v51  ;;  %v1740_v59 = vmul.f32 %v4322_v19, %v1218_v38  ;;  %2569 = vmatpush.bf16.msrb.mxu3 %v2223_v12  ;;  %v1070_v3 = vcvt.s32.f32 %v558_v7  ;;  %v2255_v63 = vperm.slane %v4372_v53, 0  ;;  %v330_v38 = vld [vmem:[#allocation8 + $0x38] sm:$0xff] }
 0x188   :  { %v1528_v37 = vmul.f32 %v4322_v19, %v1006_v55  ;;  %v1532_v17 = vmul.f32 %v4322_v19, %v1010_v34  ;;  %v1074_v39 = vcvt.s32.f32 %v562_v46  ;;  %v630_v61 = vunpack.c.0.s8 %v4345_v6  ;;  %2557 = vmatmul.bf16.vlgmr.msrb.gmra.mxu2 %v3917_v13 }
 0x189   :  { %2601 = vmatpush.bf16.msra.mxu2 %v2092_v21  ;;  %v2124_v40 = vpack.c.bf16 %v1740_v59, %v1736_v54  ;;  %v634_v49 = vunpack.c.1.s8 %v4345_v6  ;;  %v1592_v2 = vmul.f32 %v4322_v19, %v1070_v3  ;;  %v2273_v29 = vadd.f32 %v4303_v25, %v2255_v63  ;;  %v4418_v21 = vld [vmem:[#allocation8 + $0xb8] sm:$0xff] }
 0x18a   :  { %v2020_v16 = vpack.c.bf16 %v1532_v17, %v1528_v37  ;;  %v694_v24 = vunpack.c.0.s8 %v4351_v31  ;;  %v1596_v18 = vmul.f32 %v4322_v19, %v1074_v39  ;;  %v1142_v43 = vcvt.s32.f32 %v630_v61  ;;  %2570 = vmatmul.bf16.vlgmr.msrb.gmra.mxu3 %v3923_v14 }
 0x18b   :  { %2614 = vmatpush.bf16.msra.mxu3 %v2124_v40  ;;  %v1146_v42 = vcvt.s32.f32 %v634_v49  ;;  %v698_v57 = vunpack.c.1.s8 %v4351_v31  ;;  %v4395_v6 = vadd.f32 %v4305_v62, %v2273_v29  ;;  %v486_v1 = vunpack.c.0.s8 %v4356_v8  ;;  %v2313_v62 = vpop.f32.mrf.mxu3 }
 0x18c   :  { %2577 = vmatpush.bf16.msra.mxu0 %v2020_v16  ;;  %v1206_v32 = vcvt.s32.f32 %v694_v24  ;;  %v490_v25 = vunpack.c.1.s8 %v4356_v8  ;;  %v2052_v0 = vpack.c.bf16 %v1596_v18, %v1592_v2  ;;  %v1664_v31 = vmul.f32 %v4322_v19, %v1142_v43  ;;  %v2326_v16 = vpop.f32.mrf.mxu0  ;;  %v2339_v2 = vpop.f32.mrf.mxu1 }
 0x18d   :  { %v1668_v58 = vmul.f32 %v4322_v19, %v1146_v42  ;;  %v1210_v27 = vcvt.s32.f32 %v698_v57  ;;  %v998_v10 = vcvt.s32.f32 %v486_v1  ;;  %v550_v8 = vunpack.c.0.s8 %v4362_v47  ;;  %v4456_v16 = vld [vmem:[#allocation8 + $0x98] sm:$0xff] }
 0x18e   :  { %v1728_v33 = vmul.f32 %v4322_v19, %v1206_v32  ;;  %v1002_v56 = vcvt.s32.f32 %v490_v25  ;;  %2590 = vmatpush.bf16.msra.mxu1 %v2052_v0  ;;  %v554_v4 = vunpack.c.1.s8 %v4362_v47  ;;  %v622_v41 = vunpack.c.2.s8 %v4399_v9 }
 0x18f   :  { %v2088_v20 = vpack.c.bf16 %v1668_v58, %v1664_v31  ;;  %v1732_v26 = vmul.f32 %v4322_v19, %v1210_v27  ;;  %v1520_v50 = vmul.f32 %v4322_v19, %v998_v10  ;;  %v1062_v30 = vcvt.s32.f32 %v550_v8 }
 0x190   :  { %v1524_v51 = vmul.f32 %v4322_v19, %v1002_v56  ;;  %v626_v45 = vunpack.c.3.s8 %v4399_v9  ;;  %v1066_v55 = vcvt.s32.f32 %v554_v4  ;;  %v1134_v34 = vcvt.s32.f32 %v622_v41 }
 0x191   :  { %2602 = vmatpush.bf16.msra.mxu2 %v2088_v20  ;;  %v2120_v12 = vpack.c.bf16 %v1732_v26, %v1728_v33  ;;  %v686_v7 = vunpack.c.2.s8 %v4409_v60  ;;  %v1584_v47 = vmul.f32 %v4322_v19, %v1062_v30  ;;  %v690_v46 = vunpack.c.3.s8 %v4409_v60 }
 0x192   :  { %v2016_v54 = vpack.c.bf16 %v1524_v51, %v1520_v50  ;;  %v1138_v59 = vcvt.s32.f32 %v626_v45  ;;  %v1588_v37 = vmul.f32 %v4322_v19, %v1066_v55  ;;  %v1656_v17 = vmul.f32 %v4322_v19, %v1134_v34 }
 0x193   :  { %2615 = vmatpush.bf16.msra.mxu3 %v2120_v12  ;;  %v1198_v3 = vcvt.s32.f32 %v686_v7  ;;  %v478_v63 = vunpack.c.2.s8 %v330_v38  ;;  %v1202_v39 = vcvt.s32.f32 %v690_v46  ;;  %v482_v61 = vunpack.c.3.s8 %v330_v38  ;;  %v4439_v12 = vld [vmem:[#allocation8 + $0x138] sm:$0xff] }
 0x194   :  { %2578 = vmatpush.bf16.msra.mxu0 %v2016_v54  ;;  %v1660_v40 = vmul.f32 %v4322_v19, %v1138_v59  ;;  %v542_v49 = vunpack.c.2.s8 %v4418_v21  ;;  %v2048_v29 = vpack.c.bf16 %v1588_v37, %v1584_v47  ;;  %v546_v43 = vunpack.c.3.s8 %v4418_v21  ;;  %v4447_v46 = vld [vmem:[#allocation8 + $0x1b8] sm:$0xff] }
 0x195   :  { %v1720_v24 = vmul.f32 %v4322_v19, %v1198_v3  ;;  %v990_v18 = vcvt.s32.f32 %v478_v63  ;;  %v1724_v57 = vmul.f32 %v4322_v19, %v1202_v39  ;;  %v994_v32 = vcvt.s32.f32 %v482_v61 }
 0x196   :  { %v2084_v42 = vpack.c.bf16 %v1660_v40, %v1656_v17  ;;  %v1054_v1 = vcvt.s32.f32 %v542_v49  ;;  %2591 = vmatpush.bf16.msra.mxu1 %v2048_v29  ;;  %v1058_v0 = vcvt.s32.f32 %v546_v43  ;;  %v614_v31 = vunpack.c.0.s8 %v4399_v9  ;;  %v4452_v40 = vld [vmem:[#allocation8 + $0x18] sm:$0xff] }
 0x197   :  { %v1512_v25 = vmul.f32 %v4322_v19, %v990_v18  ;;  %v618_v58 = vunpack.c.1.s8 %v4399_v9  ;;  %v2116_v27 = vpack.c.bf16 %v1724_v57, %v1720_v24  ;;  %v1516_v28 = vmul.f32 %v4322_v19, %v994_v32 }
 0x198   :  { %2603 = vmatpush.bf16.msra.mxu2 %v2084_v42  ;;  %v1576_v62 = vmul.f32 %v4322_v19, %v1054_v1  ;;  %v678_v33 = vunpack.c.0.s8 %v4409_v60  ;;  %v1580_v10 = vmul.f32 %v4322_v19, %v1058_v0  ;;  %v1126_v56 = vcvt.s32.f32 %v614_v31 }
 0x199   :  { %v1130_v8 = vcvt.s32.f32 %v618_v58  ;;  %v682_v20 = vunpack.c.1.s8 %v4409_v60  ;;  %2616 = vmatpush.bf16.msra.mxu3 %v2116_v27  ;;  %v2012_v26 = vpack.c.bf16 %v1516_v28, %v1512_v25  ;;  %v470_v41 = vunpack.c.0.s8 %v330_v38 }
 0x19a   :  { %v1190_v4 = vcvt.s32.f32 %v678_v33  ;;  %v474_v50 = vunpack.c.1.s8 %v330_v38  ;;  %v2044_v9 = vpack.c.bf16 %v1580_v10, %v1576_v62  ;;  %v1648_v51 = vmul.f32 %v4322_v19, %v1126_v56 }
 0x19b   :  { %v1652_v30 = vmul.f32 %v4322_v19, %v1130_v8  ;;  %v1194_v45 = vcvt.s32.f32 %v682_v20  ;;  %2579 = vmatpush.bf16.msra.mxu0 %v2012_v26  ;;  %v982_v34 = vcvt.s32.f32 %v470_v41  ;;  %v534_v60 = vunpack.c.0.s8 %v4418_v21  ;;  %v4472_v26 = vpop.f32.mrf.mxu2 }
 0x19c   :  { %v1712_v55 = vmul.f32 %v4322_v19, %v1190_v4  ;;  %v986_v7 = vcvt.s32.f32 %v474_v50  ;;  %2592 = vmatpush.bf16.msra.mxu1 %v2044_v9  ;;  %v538_v38 = vunpack.c.1.s8 %v4418_v21  ;;  %v2299_v59 = vadd.f32 %v4374_v35, %v4395_v6  ;;  %v4474_v4 = vpop.f32.mrf.mxu3 }
 0x19d   :  { %v2080_v54 = vpack.c.bf16 %v1652_v30, %v1648_v51  ;;  %v1716_v47 = vmul.f32 %v4322_v19, %v1194_v45  ;;  %v1504_v37 = vmul.f32 %v4322_v19, %v982_v34  ;;  %v1046_v3 = vcvt.s32.f32 %v534_v60 }
 0x19e   :  { %v1508_v17 = vmul.f32 %v4322_v19, %v986_v7  ;;  %v606_v63 = vunpack.c.2.s8 %v4439_v12  ;;  %v1050_v61 = vcvt.s32.f32 %v538_v38  ;;  %v2312_v49 = vadd.f32 %v4376_v36, %v2299_v59 }
 0x19f   :  { %2604 = vmatpush.bf16.msra.mxu2 %v2080_v54  ;;  %v2112_v39 = vpack.c.bf16 %v1716_v47, %v1712_v55  ;;  %v610_v21 = vunpack.c.3.s8 %v4439_v12  ;;  %v1568_v6 = vmul.f32 %v4322_v19, %v1046_v3  ;;  %v670_v29 = vunpack.c.2.s8 %v4447_v46 }
 0x1a0   :  { %v2008_v35 = vpack.c.bf16 %v1508_v17, %v1504_v37  ;;  %v1118_v2 = vcvt.s32.f32 %v606_v63  ;;  %v1572_v24 = vmul.f32 %v4322_v19, %v1050_v61  ;;  %v674_v43 = vunpack.c.3.s8 %v4447_v46  ;;  %v4488_v17 = vld [vmem:[#allocation8 + $0x278] sm:$0xff] }
 0x1a1   :  { %2617 = vmatpush.bf16.msra.mxu3 %v2112_v39  ;;  %v1122_v18 = vcvt.s32.f32 %v610_v21  ;;  %v462_v42 = vunpack.c.2.s8 %v4452_v40  ;;  %v1182_v57 = vcvt.s32.f32 %v670_v29  ;;  %v466_v32 = vunpack.c.3.s8 %v4452_v40 }
 0x1a2   :  { %2580 = vmatpush.bf16.msra.mxu0 %v2008_v35  ;;  %v1640_v36 = vmul.f32 %v4322_v19, %v1118_v2  ;;  %v526_v1 = vunpack.c.2.s8 %v4456_v16  ;;  %v2040_v25 = vpack.c.bf16 %v1572_v24, %v1568_v6  ;;  %v1186_v31 = vcvt.s32.f32 %v674_v43  ;;  %v4497_v2 = vld [vmem:[#allocation8 + $0x2f8] sm:$0xff] }
 0x1a3   :  { %v1644_v0 = vmul.f32 %v4322_v19, %v1122_v18  ;;  %v974_v58 = vcvt.s32.f32 %v462_v42  ;;  %v1704_v27 = vmul.f32 %v4322_v19, %v1182_v57  ;;  %v978_v28 = vcvt.s32.f32 %v466_v32  ;;  %v4502_v42 = vld [vmem:[#allocation8 + $0x118] sm:$0xff]  ;;  %v4506_v57 = vpop.f32.mrf.mxu1 }
 0x1a4   :  { %v530_v62 = vunpack.c.3.s8 %v4456_v16  ;;  %v1038_v33 = vcvt.s32.f32 %v526_v1  ;;  %2593 = vmatpush.bf16.msra.mxu1 %v2040_v25  ;;  %v1708_v56 = vmul.f32 %v4322_v19, %v1186_v31  ;;  %v2325_v20 = vadd.f32 %v4401_v11, %v2312_v49  ;;  %v2352_v31 = vpop.f32.mrf.mxu2 }
 0x1a5   :  { %v2076_v10 = vpack.c.bf16 %v1644_v0, %v1640_v36  ;;  %v1496_v8 = vmul.f32 %v4322_v19, %v974_v58  ;;  %v1500_v41 = vmul.f32 %v4322_v19, %v978_v28  ;;  %v598_v51 = vunpack.c.0.s8 %v4439_v12  ;;  %v4504_v36 = vpop.f32.mrf.mxu0  ;;  %v4509_v0 = vld [vmem:[#allocation8 + $0x198] sm:$0xff]  ;;  %v2365_v58 = vpop.f32.mrf.mxu3 }
 0x1a6   :  { %v1042_v50 = vcvt.s32.f32 %v530_v62  ;;  %v1560_v9 = vmul.f32 %v4322_v19, %v1038_v33  ;;  %v2108_v30 = vpack.c.bf16 %v1708_v56, %v1704_v27  ;;  %v4480_v45 = vadd.f32 %v4403_v23, %v2325_v20 }
 0x1a7   :  { %2605 = vmatpush.bf16.msra.mxu2 %v2076_v10  ;;  %v602_v55 = vunpack.c.1.s8 %v4439_v12  ;;  %v662_v11 = vunpack.c.0.s8 %v4447_v46  ;;  %v2004_v34 = vpack.c.bf16 %v1500_v41, %v1496_v8  ;;  %v1110_v60 = vcvt.s32.f32 %v598_v51 }
 0x1a8   :  { %v1564_v7 = vmul.f32 %v4322_v19, %v1042_v50  ;;  %v666_v54 = vunpack.c.1.s8 %v4447_v46  ;;  %2618 = vmatpush.bf16.msra.mxu3 %v2108_v30  ;;  %v454_v59 = vunpack.c.0.s8 %v4452_v40  ;;  %v458_v37 = vunpack.c.1.s8 %v4452_v40 }
 0x1a9   :  { %v1114_v47 = vcvt.s32.f32 %v602_v55  ;;  %v1174_v38 = vcvt.s32.f32 %v662_v11  ;;  %2581 = vmatpush.bf16.msra.mxu0 %v2004_v34  ;;  %v1632_v12 = vmul.f32 %v4322_v19, %v1110_v60  ;;  %v518_v63 = vunpack.c.0.s8 %v4456_v16 }
 0x1aa   :  { %v2036_v23 = vpack.c.bf16 %v1564_v7, %v1560_v9  ;;  %v1178_v3 = vcvt.s32.f32 %v666_v54  ;;  %v966_v61 = vcvt.s32.f32 %v454_v59  ;;  %v970_v49 = vcvt.s32.f32 %v458_v37 }
 0x1ab   :  { %v1636_v39 = vmul.f32 %v4322_v19, %v1114_v47  ;;  %v1696_v46 = vmul.f32 %v4322_v19, %v1174_v38  ;;  %v522_v40 = vunpack.c.1.s8 %v4456_v16  ;;  %v1030_v35 = vcvt.s32.f32 %v518_v63 }
 0x1ac   :  { %2594 = vmatpush.bf16.msra.mxu1 %v2036_v23  ;;  %v1700_v21 = vmul.f32 %v4322_v19, %v1178_v3  ;;  %v766_v6 = vunpack.c.2.s8 %v4488_v17  ;;  %v1488_v24 = vmul.f32 %v4322_v19, %v966_v61  ;;  %v1492_v18 = vmul.f32 %v4322_v19, %v970_v49  ;;  %v2391_v61 = vpop.f32.mrf.mxu1 }
 0x1ad   :  { %v2072_v29 = vpack.c.bf16 %v1636_v39, %v1632_v12  ;;  %v770_v43 = vunpack.c.3.s8 %v4488_v17  ;;  %v1034_v16 = vcvt.s32.f32 %v522_v40  ;;  %v1552_v1 = vmul.f32 %v4322_v19, %v1030_v35 }
 0x1ae   :  { %v2104_v32 = vpack.c.bf16 %v1700_v21, %v1696_v46  ;;  %v1278_v25 = vcvt.s32.f32 %v766_v6  ;;  %v2000_v27 = vpack.c.bf16 %v1492_v18, %v1488_v24  ;;  %v830_v62 = vunpack.c.2.s8 %v4497_v2  ;;  %v2378_v46 = vpop.f32.mrf.mxu0  ;;  %v4533_v18 = vld [vmem:[#allocation8 + $0x378] sm:$0xff] }
 0x1af   :  { %2606 = vmatpush.bf16.msra.mxu2 %v2072_v29  ;;  %v1282_v28 = vcvt.s32.f32 %v770_v43  ;;  %v834_v33 = vunpack.c.3.s8 %v4497_v2  ;;  %v1556_v10 = vmul.f32 %v4322_v19, %v1034_v16  ;;  %v590_v8 = vunpack.c.2.s8 %v4502_v42 }
 0x1b0   :  { %2619 = vmatpush.bf16.msra.mxu3 %v2104_v32  ;;  %v1800_v56 = vmul.f32 %v4322_v19, %v1278_v25  ;;  %v594_v20 = vunpack.c.3.s8 %v4502_v42  ;;  %2582 = vmatpush.bf16.msra.mxu0 %v2000_v27  ;;  %v1342_v50 = vcvt.s32.f32 %v830_v62  ;;  %v654_v51 = vunpack.c.2.s8 %v4509_v0 }
 0x1b1   :  { %v1804_v41 = vmul.f32 %v4322_v19, %v1282_v28  ;;  %v1346_v9 = vcvt.s32.f32 %v834_v33  ;;  %v2032_v30 = vpack.c.bf16 %v1556_v10, %v1552_v1  ;;  %v1102_v55 = vcvt.s32.f32 %v590_v8  ;;  %v4546_v8 = vld [vmem:[#allocation8 + $0x258] sm:$0xff] }
 0x1b2   :  { %v1106_v11 = vcvt.s32.f32 %v594_v20  ;;  %v658_v34 = vunpack.c.3.s8 %v4509_v0  ;;  %v1864_v60 = vmul.f32 %v4322_v19, %v1342_v50  ;;  %v1166_v47 = vcvt.s32.f32 %v654_v51 }
 0x1b3   :  { %v2156_v7 = vpack.c.bf16 %v1804_v41, %v1800_v56  ;;  %v1868_v54 = vmul.f32 %v4322_v19, %v1346_v9  ;;  %2595 = vmatpush.bf16.msra.mxu1 %v2032_v30  ;;  %v1624_v38 = vmul.f32 %v4322_v19, %v1102_v55  ;;  %2583 = vmatmul.bf16.vlgmr.msra.gmra.mxu0 %v3808_v48  ;;  %v758_v23 = vunpack.c.0.s8 %v4488_v17 }
 0x1b4   :  { %v1628_v59 = vmul.f32 %v4322_v19, %v1106_v11  ;;  %v1170_v37 = vcvt.s32.f32 %v658_v34  ;;  %v1688_v3 = vmul.f32 %v4322_v19, %v1166_v47  ;;  %v762_v63 = vunpack.c.1.s8 %v4488_v17  ;;  %v4549_v11 = vld [vmem:[#allocation8 + $0x2d8] sm:$0xff] }
 0x1b5   :  { %2627 = vmatpush.bf16.msrb.mxu0 %v2156_v7  ;;  %v2188_v12 = vpack.c.bf16 %v1868_v54, %v1864_v60  ;;  %v822_v39 = vunpack.c.0.s8 %v4497_v2  ;;  %v1270_v40 = vcvt.s32.f32 %v758_v23  ;;  %v826_v35 = vunpack.c.1.s8 %v4497_v2 }
 0x1b6   :  { %v2068_v49 = vpack.c.bf16 %v1628_v59, %v1624_v38  ;;  %v1692_v21 = vmul.f32 %v4322_v19, %v1170_v37  ;;  %v1274_v48 = vcvt.s32.f32 %v762_v63  ;;  %v582_v29 = vunpack.c.0.s8 %v4502_v42  ;;  %2596 = vmatmul.bf16.vlgmr.msra.gmra.mxu1 %v3814_v52  ;;  %v450_v52 = vld [vmem:[#allocation8 + $0x3f8] sm:$0xff] }
 0x1b7   :  { %2640 = vmatpush.bf16.msrb.mxu1 %v2188_v12  ;;  %v1334_v6 = vcvt.s32.f32 %v822_v39  ;;  %v586_v24 = vunpack.c.1.s8 %v4502_v42  ;;  %v1792_v43 = vmul.f32 %v4322_v19, %v1270_v40  ;;  %v1338_v32 = vcvt.s32.f32 %v826_v35  ;;  %v4567_v40 = vpop.f32.mrf.mxu2 }
 0x1b8   :  { %2607 = vmatpush.bf16.msra.mxu2 %v2068_v49  ;;  %v2100_v17 = vpack.c.bf16 %v1692_v21, %v1688_v3  ;;  %v646_v16 = vunpack.c.0.s8 %v4509_v0  ;;  %v1796_v2 = vmul.f32 %v4322_v19, %v1274_v48  ;;  %v1094_v25 = vcvt.s32.f32 %v582_v29 }
 0x1b9   :  { %v1856_v1 = vmul.f32 %v4322_v19, %v1334_v6  ;;  %v1098_v31 = vcvt.s32.f32 %v586_v24  ;;  %v1860_v42 = vmul.f32 %v4322_v19, %v1338_v32  ;;  %v650_v58 = vunpack.c.1.s8 %v4509_v0 }
 0x1ba   :  { %2620 = vmatpush.bf16.msra.mxu3 %v2100_v17  ;;  %v1158_v27 = vcvt.s32.f32 %v646_v16  ;;  %v894_v28 = vunpack.c.2.s8 %v4533_v18  ;;  %v2152_v62 = vpack.c.bf16 %v1796_v2, %v1792_v43  ;;  %v1616_v33 = vmul.f32 %v4322_v19, %v1094_v25 }
 0x1bb   :  { %v1620_v10 = vmul.f32 %v4322_v19, %v1098_v31  ;;  %v898_v56 = vunpack.c.3.s8 %v4533_v18  ;;  %v2184_v20 = vpack.c.bf16 %v1860_v42, %v1856_v1  ;;  %v1162_v41 = vcvt.s32.f32 %v650_v58 }
 0x1bc   :  { %v1680_v50 = vmul.f32 %v4322_v19, %v1158_v27  ;;  %v1406_v9 = vcvt.s32.f32 %v894_v28  ;;  %2628 = vmatpush.bf16.msrb.mxu0 %v2152_v62  ;;  %v958_v30 = vunpack.c.2.s8 %v450_v52  ;;  %v962_v55 = vunpack.c.3.s8 %v450_v52  ;;  %v4582_v62 = vld [vmem:[#allocation8 + $0x358] sm:$0xff] }
 0x1bd   :  { %v2064_v0 = vpack.c.bf16 %v1620_v10, %v1616_v33  ;;  %v1410_v51 = vcvt.s32.f32 %v898_v56  ;;  %2641 = vmatpush.bf16.msrb.mxu1 %v2184_v20  ;;  %v1684_v34 = vmul.f32 %v4322_v19, %v1162_v41  ;;  %v2351_v60 = vadd.f32 %v4472_v26, %v4480_v45 }
 0x1be   :  { %v1928_v7 = vmul.f32 %v4322_v19, %v1406_v9  ;;  %v750_v54 = vunpack.c.2.s8 %v4546_v8  ;;  %v1470_v38 = vcvt.s32.f32 %v958_v30  ;;  %v1474_v59 = vcvt.s32.f32 %v962_v55  ;;  %v394_v30 = vld [vmem:[#allocation8 + $0x238] sm:$0xff] }
 0x1bf   :  { %2608 = vmatpush.bf16.msra.mxu2 %v2064_v0  ;;  %v1932_v47 = vmul.f32 %v4322_v19, %v1410_v51  ;;  %v754_v37 = vunpack.c.3.s8 %v4546_v8  ;;  %v2096_v23 = vpack.c.bf16 %v1684_v34, %v1680_v50  ;;  %v4559_v12 = vadd.f32 %v4474_v4, %v2351_v60  ;;  %v4569_v4 = vpop.f32.mrf.mxu3  ;;  %v446_v50 = vld [vmem:[#allocation8 + $0x3d8] sm:$0xff] }
 0x1c0   :  { %v1262_v3 = vcvt.s32.f32 %v750_v54  ;;  %v814_v63 = vunpack.c.2.s8 %v4549_v11  ;;  %v1992_v46 = vmul.f32 %v4322_v19, %v1470_v38  ;;  %v1996_v26 = vmul.f32 %v4322_v19, %v1474_v59 }
 0x1c1   :  { %v2220_v39 = vpack.c.bf16 %v1932_v47, %v1928_v7  ;;  %v1266_v45 = vcvt.s32.f32 %v754_v37  ;;  %2621 = vmatpush.bf16.msra.mxu3 %v2096_v23  ;;  %v818_v49 = vunpack.c.3.s8 %v4549_v11  ;;  %v886_v6 = vunpack.c.0.s8 %v4533_v18  ;;  %v4596_v37 = vld [vmem:[#allocation8 + $0x2b8] sm:$0xff] }
 0x1c2   :  { %2609 = vmatmul.bf16.vlgmr.msra.gmra.mxu2 %v3848_v5  ;;  %v1784_v61 = vmul.f32 %v4322_v19, %v1262_v3  ;;  %v1326_v21 = vcvt.s32.f32 %v814_v63  ;;  %v2252_v35 = vpack.c.bf16 %v1996_v26, %v1992_v46  ;;  %v890_v29 = vunpack.c.1.s8 %v4533_v18 }
 0x1c3   :  { %2653 = vmatpush.bf16.msrb.mxu2 %v2220_v39  ;;  %v1788_v48 = vmul.f32 %v4322_v19, %v1266_v45  ;;  %v1330_v24 = vcvt.s32.f32 %v818_v49  ;;  %v950_v17 = vunpack.c.0.s8 %v450_v52  ;;  %v1398_v32 = vcvt.s32.f32 %v886_v6 }
 0x1c4   :  { %v1848_v5 = vmul.f32 %v4322_v19, %v1326_v21  ;;  %v1402_v16 = vcvt.s32.f32 %v890_v29  ;;  %v954_v2 = vunpack.c.1.s8 %v450_v52  ;;  %2622 = vmatmul.bf16.vlgmr.msra.gmra.mxu3 %v3858_v44  ;;  %v2256_v31 = vperm.slane %v4372_v53, 1 }
 0x1c5   :  { %2666 = vmatpush.bf16.msrb.mxu3 %v2252_v35  ;;  %v2148_v43 = vpack.c.bf16 %v1788_v48, %v1784_v61  ;;  %v1852_v1 = vmul.f32 %v4322_v19, %v1330_v24  ;;  %v1462_v25 = vcvt.s32.f32 %v950_v17  ;;  %v742_v42 = vunpack.c.0.s8 %v4546_v8 }
 0x1c6   :  { %v1920_v18 = vmul.f32 %v4322_v19, %v1398_v32  ;;  %v1924_v58 = vmul.f32 %v4322_v19, %v1402_v16  ;;  %v1466_v27 = vcvt.s32.f32 %v954_v2  ;;  %v746_v28 = vunpack.c.1.s8 %v4546_v8 }
 0x1c7   :  { %2629 = vmatpush.bf16.msrb.mxu0 %v2148_v43  ;;  %v2180_v52 = vpack.c.bf16 %v1852_v1, %v1848_v5  ;;  %v1984_v44 = vmul.f32 %v4322_v19, %v1462_v25  ;;  %v2377_v33 = vadd.f32 %v4504_v36, %v2256_v31  ;;  %v1254_v10 = vcvt.s32.f32 %v742_v42  ;;  %v2404_v36 = vpop.f32.mrf.mxu2  ;;  %v2417_v55 = vpop.f32.mrf.mxu3 }
 0x1c8   :  { %v2216_v56 = vpack.c.bf16 %v1924_v58, %v1920_v18  ;;  %v1988_v53 = vmul.f32 %v4322_v19, %v1466_v27  ;;  %v1258_v20 = vcvt.s32.f32 %v746_v28  ;;  %v806_v41 = vunpack.c.0.s8 %v4549_v11 }
 0x1c9   :  { %2642 = vmatpush.bf16.msrb.mxu1 %v2180_v52  ;;  %v4589_v9 = vadd.f32 %v4506_v57, %v2377_v33  ;;  %v1776_v8 = vmul.f32 %v4322_v19, %v1254_v10  ;;  %v810_v0 = vunpack.c.1.s8 %v4549_v11  ;;  %v878_v51 = vunpack.c.2.s8 %v4582_v62 }
 0x1ca   :  { %2654 = vmatpush.bf16.msrb.mxu2 %v2216_v56  ;;  %v2248_v34 = vpack.c.bf16 %v1988_v53, %v1984_v44  ;;  %v1780_v7 = vmul.f32 %v4322_v19, %v1258_v20  ;;  %v1318_v60 = vcvt.s32.f32 %v806_v41  ;;  %v882_v54 = vunpack.c.3.s8 %v4582_v62  ;;  %v4612_v20 = vld [vmem:[#allocation8 + $0x338] sm:$0xff] }
 0x1cb   :  { %v1322_v47 = vcvt.s32.f32 %v810_v0  ;;  %v1390_v38 = vcvt.s32.f32 %v878_v51  ;;  %v942_v57 = vunpack.c.2.s8 %v446_v50  ;;  %v946_v59 = vunpack.c.3.s8 %v446_v50 }
 0x1cc   :  { %2667 = vmatpush.bf16.msrb.mxu3 %v2248_v34  ;;  %v2144_v11 = vpack.c.bf16 %v1780_v7, %v1776_v8  ;;  %v1840_v23 = vmul.f32 %v4322_v19, %v1318_v60  ;;  %v1394_v3 = vcvt.s32.f32 %v882_v54  ;;  %v734_v63 = vunpack.c.2.s8 %v394_v30  ;;  %v4619_v34 = vld [vmem:[#allocation8 + $0x3b8] sm:$0xff] }
 0x1cd   :  { %v1844_v39 = vmul.f32 %v4322_v19, %v1322_v47  ;;  %v1912_v46 = vmul.f32 %v4322_v19, %v1390_v38  ;;  %v1454_v26 = vcvt.s32.f32 %v942_v57  ;;  %v1458_v45 = vcvt.s32.f32 %v946_v59  ;;  %v4624_v47 = vpop.f32.mrf.mxu0  ;;  %v4626_v38 = vpop.f32.mrf.mxu1 }
 0x1ce   :  { %2630 = vmatpush.bf16.msrb.mxu0 %v2144_v11  ;;  %v1916_v61 = vmul.f32 %v4322_v19, %v1394_v3  ;;  %v738_v49 = vunpack.c.3.s8 %v394_v30  ;;  %v1246_v21 = vcvt.s32.f32 %v734_v63  ;;  %v798_v35 = vunpack.c.2.s8 %v4596_v37 }
 0x1cf   :  { %v2176_v48 = vpack.c.bf16 %v1844_v39, %v1840_v23  ;;  %v1976_v6 = vmul.f32 %v4322_v19, %v1454_v26  ;;  %v1980_v29 = vmul.f32 %v4322_v19, %v1458_v45  ;;  %v802_v24 = vunpack.c.3.s8 %v4596_v37 }
 0x1d0   :  { %v2212_v5 = vpack.c.bf16 %v1916_v61, %v1912_v46  ;;  %v1250_v17 = vcvt.s32.f32 %v738_v49  ;;  %v1768_v43 = vmul.f32 %v4322_v19, %v1246_v21  ;;  %v1310_v32 = vcvt.s32.f32 %v798_v35  ;;  %v4633_v49 = vld [vmem:[#allocation8 + $0x298] sm:$0xff] }
 0x1d1   :  { %2643 = vmatpush.bf16.msrb.mxu1 %v2176_v48  ;;  %v2244_v16 = vpack.c.bf16 %v1980_v29, %v1976_v6  ;;  %v1314_v2 = vcvt.s32.f32 %v802_v24  ;;  %v870_v1 = vunpack.c.0.s8 %v4582_v62  ;;  %v874_v25 = vunpack.c.1.s8 %v4582_v62 }
 0x1d2   :  { %2655 = vmatpush.bf16.msrb.mxu2 %v2212_v5  ;;  %v1772_v31 = vmul.f32 %v4322_v19, %v1250_v17  ;;  %v1832_v42 = vmul.f32 %v4322_v19, %v1310_v32  ;;  %v934_v18 = vunpack.c.0.s8 %v446_v50  ;;  %v938_v58 = vunpack.c.1.s8 %v446_v50 }
 0x1d3   :  { %2668 = vmatpush.bf16.msrb.mxu3 %v2244_v16  ;;  %v1836_v27 = vmul.f32 %v4322_v19, %v1314_v2  ;;  %v1382_v28 = vcvt.s32.f32 %v870_v1  ;;  %v1386_v52 = vcvt.s32.f32 %v874_v25  ;;  %v726_v44 = vunpack.c.0.s8 %v394_v30 }
 0x1d4   :  { %v2140_v33 = vpack.c.bf16 %v1772_v31, %v1768_v43  ;;  %v1446_v10 = vcvt.s32.f32 %v934_v18  ;;  %v1450_v56 = vcvt.s32.f32 %v938_v58  ;;  %v730_v53 = vunpack.c.1.s8 %v394_v30 }
 0x1d5   :  { %v2172_v62 = vpack.c.bf16 %v1836_v27, %v1832_v42  ;;  %v1904_v41 = vmul.f32 %v4322_v19, %v1382_v28  ;;  %v1908_v8 = vmul.f32 %v4322_v19, %v1386_v52  ;;  %v1238_v0 = vcvt.s32.f32 %v726_v44  ;;  %v2430_v28 = vpop.f32.mrf.mxu0  ;;  %v2443_v52 = vpop.f32.mrf.mxu1 }
 0x1d6   :  { %2631 = vmatpush.bf16.msrb.mxu0 %v2140_v33  ;;  %v1968_v50 = vmul.f32 %v4322_v19, %v1446_v10  ;;  %v1972_v51 = vmul.f32 %v4322_v19, %v1450_v56  ;;  %v1242_v36 = vcvt.s32.f32 %v730_v53  ;;  %v790_v55 = vunpack.c.0.s8 %v4596_v37 }
 0x1d7   :  { %2644 = vmatpush.bf16.msrb.mxu1 %v2172_v62  ;;  %v2208_v30 = vpack.c.bf16 %v1908_v8, %v1904_v41  ;;  %v1760_v7 = vmul.f32 %v4322_v19, %v1238_v0  ;;  %v794_v60 = vunpack.c.1.s8 %v4596_v37  ;;  %v862_v54 = vunpack.c.2.s8 %v4612_v20  ;;  %v390_v37 = vld [vmem:[#allocation8 + $0x218] sm:$0xff] }
 0x1d8   :  { %v2240_v57 = vpack.c.bf16 %v1972_v51, %v1968_v50  ;;  %v1764_v59 = vmul.f32 %v4322_v19, %v1242_v36  ;;  %v1302_v11 = vcvt.s32.f32 %v790_v55  ;;  %v866_v23 = vunpack.c.3.s8 %v4612_v20  ;;  %v4650_v36 = vpop.f32.mrf.mxu2  ;;  %v4652_v55 = vpop.f32.mrf.mxu3 }
 0x1d9   :  { %2656 = vmatpush.bf16.msrb.mxu2 %v2208_v30  ;;  %v1306_v3 = vcvt.s32.f32 %v794_v60  ;;  %v1374_v63 = vcvt.s32.f32 %v862_v54  ;;  %v926_v39 = vunpack.c.2.s8 %v4619_v34  ;;  %v930_v46 = vunpack.c.3.s8 %v4619_v34 }
 0x1da   :  { %2669 = vmatpush.bf16.msrb.mxu3 %v2240_v57  ;;  %v2136_v26 = vpack.c.bf16 %v1764_v59, %v1760_v7  ;;  %v1824_v45 = vmul.f32 %v4322_v19, %v1302_v11  ;;  %v1378_v61 = vcvt.s32.f32 %v866_v23  ;;  %v718_v24 = vunpack.c.2.s8 %v390_v37  ;;  %v422_v57 = vld [vmem:[#allocation8 + $0x318] sm:$0xff] }
 0x1db   :  { %v1828_v21 = vmul.f32 %v4322_v19, %v1306_v3  ;;  %v1896_v35 = vmul.f32 %v4322_v19, %v1374_v63  ;;  %v1438_v48 = vcvt.s32.f32 %v926_v39  ;;  %v1442_v6 = vcvt.s32.f32 %v930_v46  ;;  %v438_v3 = vld [vmem:[#allocation8 + $0x398] sm:$0xff] }
 0x1dc   :  { %2632 = vmatpush.bf16.msrb.mxu0 %v2136_v26  ;;  %v1900_v29 = vmul.f32 %v4322_v19, %v1378_v61  ;;  %v722_v5 = vunpack.c.3.s8 %v390_v37  ;;  %v782_v16 = vunpack.c.2.s8 %v4633_v49  ;;  %v1230_v1 = vcvt.s32.f32 %v718_v24 }
 0x1dd   :  { %v2168_v17 = vpack.c.bf16 %v1828_v21, %v1824_v45  ;;  %v1960_v43 = vmul.f32 %v4322_v19, %v1438_v48  ;;  %v1964_v32 = vmul.f32 %v4322_v19, %v1442_v6  ;;  %v786_v31 = vunpack.c.3.s8 %v4633_v49 }
 0x1de   :  { %v2204_v2 = vpack.c.bf16 %v1900_v29, %v1896_v35  ;;  %v1234_v25 = vcvt.s32.f32 %v722_v5  ;;  %v1294_v18 = vcvt.s32.f32 %v782_v16  ;;  %v854_v58 = vunpack.c.0.s8 %v4612_v20  ;;  %v3238_v5 = vld [vmem:[#allocation11 + $0x38] sm:$0xff] }
 0x1df   :  { %2645 = vmatpush.bf16.msrb.mxu1 %v2168_v17  ;;  %v2236_v42 = vpack.c.bf16 %v1964_v32, %v1960_v43  ;;  %v858_v27 = vunpack.c.1.s8 %v4612_v20  ;;  %v1752_v44 = vmul.f32 %v4322_v19, %v1230_v1  ;;  %v1298_v10 = vcvt.s32.f32 %v786_v31 }
 0x1e0   :  { %2657 = vmatpush.bf16.msrb.mxu2 %v2204_v2  ;;  %v1756_v33 = vmul.f32 %v4322_v19, %v1234_v25  ;;  %v918_v56 = vunpack.c.0.s8 %v4619_v34  ;;  %v1816_v53 = vmul.f32 %v4322_v19, %v1294_v18  ;;  %v1366_v62 = vcvt.s32.f32 %v854_v58  ;;  %v3246_v18 = vld [vmem:[#allocation11 + $0x78] sm:$0xff]  ;;  %v2469_v28 = vpop.f32.mrf.mxu3 }
 0x1e1   :  { %2670 = vmatpush.bf16.msrb.mxu3 %v2236_v42  ;;  %v1370_v41 = vcvt.s32.f32 %v858_v27  ;;  %v922_v8 = vunpack.c.1.s8 %v4619_v34  ;;  %v1820_v20 = vmul.f32 %v4322_v19, %v1298_v10  ;;  %v710_v51 = vunpack.c.0.s8 %v390_v37  ;;  %v2456_v27 = vpop.f32.mrf.mxu2 }
 0x1e2   :  { %v2132_v0 = vpack.c.bf16 %v1756_v33, %v1752_v44  ;;  %v1430_v50 = vcvt.s32.f32 %v918_v56  ;;  %v1888_v30 = vmul.f32 %v4322_v19, %v1366_v62  ;;  %v714_v54 = vunpack.c.1.s8 %v390_v37 }
 0x1e3   :  { %v1892_v7 = vmul.f32 %v4322_v19, %v1370_v41  ;;  %v1434_v60 = vcvt.s32.f32 %v922_v8  ;;  %v2164_v59 = vpack.c.bf16 %v1820_v20, %v1816_v53  ;;  %v1222_v11 = vcvt.s32.f32 %v710_v51  ;;  %v3237_v8 = vld [vmem:[#allocation11 + $0x30] sm:$0xff]  ;;  %v2493_v51 = vpop.f32.mrf.mxu1 }
 0x1e4   :  { %2633 = vmatpush.bf16.msrb.mxu0 %v2132_v0  ;;  %v1952_v34 = vmul.f32 %v4322_v19, %v1430_v50  ;;  %v774_v23 = vunpack.c.0.s8 %v4633_v49  ;;  %v1226_v46 = vcvt.s32.f32 %v714_v54  ;;  %v778_v26 = vunpack.c.1.s8 %v4633_v49  ;;  %v2480_v50 = vpop.f32.mrf.mxu0  ;;  %v3245_v54 = vld [vmem:[#allocation11 + $0x70] sm:$0xff] }
 0x1e5   :  { %v2200_v63 = vpack.c.bf16 %v1892_v7, %v1888_v30  ;;  %v1956_v39 = vmul.f32 %v4322_v19, %v1434_v60  ;;  %2646 = vmatpush.bf16.msrb.mxu1 %v2164_v59  ;;  %v1744_v45 = vmul.f32 %v4322_v19, %v1222_v11  ;;  %v846_v37 = vunpack.c.2.s8 %v422_v57  ;;  %v3254_v59 = vld [vmem:[#allocation11 + $0xb8] sm:$0xff] }
 0x1e6   :  { %v1286_v61 = vcvt.s32.f32 %v774_v23  ;;  %v850_v21 = vunpack.c.3.s8 %v422_v57  ;;  %v1748_v48 = vmul.f32 %v4322_v19, %v1226_v46  ;;  %v1290_v6 = vcvt.s32.f32 %v778_v26  ;;  %v3253_v26 = vld [vmem:[#allocation11 + $0xb0] sm:$0xff] }
 0x1e7   :  { %2658 = vmatpush.bf16.msrb.mxu2 %v2200_v63  ;;  %v2232_v35 = vpack.c.bf16 %v1956_v39, %v1952_v34  ;;  %v910_v29 = vunpack.c.2.s8 %v438_v3  ;;  %v1358_v17 = vcvt.s32.f32 %v846_v37  ;;  %v914_v32 = vunpack.c.3.s8 %v438_v3  ;;  %v3244_v39 = vld [vmem:[#allocation11 + $0x68] sm:$0xff] }
 0x1e8   :  { %v1808_v24 = vmul.f32 %v4322_v19, %v1286_v61  ;;  %v1362_v43 = vcvt.s32.f32 %v850_v21  ;;  %v2128_v49 = vpack.c.bf16 %v1748_v48, %v1744_v45  ;;  %v1812_v16 = vmul.f32 %v4322_v19, %v1290_v6  ;;  %v4683_v37 = vld [vmem:[%s4704_s5] sm:$0xf] }
 0x1e9   :  { %2671 = vmatpush.bf16.msrb.mxu3 %v2232_v35  ;;  %v1422_v2 = vcvt.s32.f32 %v910_v29  ;;  %v838_v1 = vunpack.c.0.s8 %v422_v57  ;;  %v1880_v25 = vmul.f32 %v4322_v19, %v1358_v17  ;;  %v1426_v42 = vcvt.s32.f32 %v914_v32  ;;  %v2506_v46 = vpop.f32.mrf.mxu2  ;;  %v3242_v35 = vld [vmem:[#allocation11 + $0x58] sm:$0xff]  ;;  %v3241_v32 = vld [vmem:[#allocation11 + $0x50] sm:$0xff] }
 0x1ea   :  { %v1884_v31 = vmul.f32 %v4322_v19, %v1362_v43  ;;  %v842_v58 = vunpack.c.1.s8 %v422_v57  ;;  %2634 = vmatpush.bf16.msrb.mxu0 %v2128_v49  ;;  %v2160_v52 = vpack.c.bf16 %v1812_v16, %v1808_v24  ;;  %v902_v10 = vunpack.c.0.s8 %v438_v3  ;;  %v3233_v24 = vld [vmem:[#allocation11 + $0x10] sm:$0xff]  ;;  %v3250_v16 = vld [vmem:[#allocation11 + $0x98] sm:$0xff] }
 0x1eb   :  { %v1944_v44 = vmul.f32 %v4322_v19, %v1422_v2  ;;  %v1350_v33 = vcvt.s32.f32 %v838_v1  ;;  %v1948_v53 = vmul.f32 %v4322_v19, %v1426_v42  ;;  %v906_v41 = vunpack.c.1.s8 %v438_v3  ;;  %v3236_v3 = vld [vmem:[#allocation11 + $0x28] sm:$0xff]  ;;  %v2495_v61 = vpop.f32.mrf.mxu1 }
 0x1ec   :  { %v2196_v56 = vpack.c.bf16 %v1884_v31, %v1880_v25  ;;  %v1354_v62 = vcvt.s32.f32 %v842_v58  ;;  %2647 = vmatpush.bf16.msrb.mxu1 %v2160_v52  ;;  %v1414_v20 = vcvt.s32.f32 %v902_v10  ;;  %v2403_v23 = vadd.f32 %v4567_v40, %v4589_v9  ;;  %v3243_v40 = vld [vmem:[#allocation11 + $0x60] sm:$0xff]  ;;  %v3232_v1 = vld [vmem:[#allocation11 + $0x8] sm:$0xff]  ;;  %v3249_v31 = vld [vmem:[#allocation11 + $0x90] sm:$0xff] }
 0x1ed   :  { %v1872_v0 = vmul.f32 %v4322_v19, %v1350_v33  ;;  %v2228_v30 = vpack.c.bf16 %v1948_v53, %v1944_v44  ;;  %v1418_v60 = vcvt.s32.f32 %v906_v41  ;;  %2635 = vmatmul.bf16.vlgmr.msrb.gmra.mxu0 %v3898_v22  ;;  %v2519_v22 = vpop.f32.mrf.mxu3  ;;  %v2257_v21 = vperm.slane %v4683_v37, 2  ;;  %v3239_v52 = vld [vmem:[#allocation11 + $0x40] sm:$0xff]  ;;  %v3248_v33 = vld [vmem:[#allocation11 + $0x88] sm:$0xff] }
 0x1ee   :  { %2953 = vmatpush.bf16.msra.mxu0 %v3238_v5  ;;  %2659 = vmatpush.bf16.msrb.mxu2 %v2196_v56  ;;  %v1876_v7 = vmul.f32 %v4322_v19, %v1354_v62  ;;  %v1936_v57 = vmul.f32 %v4322_v19, %v1414_v20  ;;  %v2416_v45 = vadd.f32 %v4569_v4, %v2403_v23  ;;  %v3252_v4 = vld [vmem:[#allocation11 + $0xa8] sm:$0xff]  ;;  %v2685_v28 = vmax.f32 %v4559_v12, 0.0  ;;  %v3247_v53 = vld [vmem:[#allocation11 + $0x80] sm:$0xff] }
 0x1ef   :  { %2672 = vmatpush.bf16.msrb.mxu3 %v2228_v30  ;;  %2648 = vmatmul.bf16.vlgmr.msrb.gmra.mxu1 %v3903_v15  ;;  %v1940_v11 = vmul.f32 %v4322_v19, %v1418_v60  ;;  %v3235_v15 = vld [vmem:[#allocation11 + $0x20] sm:$0xff]  ;;  %v2482_v19 = vpop.f32.mrf.mxu0  ;;  %v3262_v30 = vld [vmem:[#allocation11 + $0xf8] sm:$0xff]  ;;  %v3261_v60 = vld [vmem:[#allocation11 + $0xf0] sm:$0xff] }
 0x1f0   :  { %2966 = vmatpush.bf16.msra.mxu1 %v3246_v18  ;;  %v2192_v34 = vpack.c.bf16 %v1876_v7, %v1872_v0  ;;  %v2429_v9 = vadd.f32 %v4624_v47, %v2416_v45  ;;  %v3251_v47 = vld [vmem:[#allocation11 + $0xa0] sm:$0xff]  ;;  %v2689_v10 = vpack.c.bf16 %v2685_v28, %v2685_v28 }
 0x1f1   :  { %v2224_v63 = vpack.c.bf16 %v1940_v11, %v1936_v57  ;;  %v2508_v48 = vpop.f32.mrf.mxu2  ;;  %v3231_v18 = vld [vmem:[#allocation11] sm:$0xff] }
 0x1f2   :  { %2954 = vmatpush.bf16.msra.mxu0 %v3237_v8  ;;  %2660 = vmatpush.bf16.msrb.mxu2 %v2192_v34  ;;  %v2442_v29 = vadd.f32 %v4626_v38, %v2429_v9  ;;  %v3240_v38 = vld [vmem:[#allocation11 + $0x48] sm:$0xff]  ;;  %v3255_v45 = vld [vmem:[#allocation11 + $0xc0] sm:$0xff] }
 0x1f3   :  { %2673 = vmatpush.bf16.msrb.mxu3 %v2224_v63  ;;  %v3259_v63 = vld [vmem:[#allocation11 + $0xe0] sm:$0xff] }
 0x1f4   :  { %2967 = vmatpush.bf16.msra.mxu1 %v3245_v54  ;;  %v2455_v5 = vadd.f32 %v4650_v36, %v2442_v29  ;;  %v3260_v54 = vld [vmem:[#allocation11 + $0xe8] sm:$0xff] }
 0x1f5   :  { %2661 = vmatmul.bf16.vlgmr.msrb.gmra.mxu2 %v3917_v13  ;;  %v3234_v13 = vld [vmem:[#allocation11 + $0x18] sm:$0xff]  ;;  %v2521_v6 = vpop.f32.mrf.mxu3 }
 0x1f6   :  { %2979 = vmatpush.bf16.msra.mxu2 %v3254_v59  ;;  %2955 = vmatpush.bf16.msra.mxu0 %v3236_v3  ;;  %v2468_v2 = vadd.f32 %v4652_v55, %v2455_v5 }
 0x1f7   :  { %2674 = vmatmul.bf16.vlgmr.msrb.gmra.mxu3 %v3923_v14  ;;  %v2481_v14 = vadd.f32 %v2480_v50, %v2257_v21  ;;  %v2532_v17 = vpop.f32.mrf.mxu0 }
 0x1f8   :  { %2968 = vmatpush.bf16.msra.mxu1 %v3244_v39  ;;  %v2686_v42 = vmax.f32 %v2468_v2, 0.0  ;;  %2992 = vmatpush.bf16.msra.mxu3 %v3262_v30 }
 0x1f9   :  { %v2545_v43 = vpop.f32.mrf.mxu1  ;;  %v2494_v49 = vadd.f32 %v2493_v51, %v2481_v14 }
 0x1fa   :  { %2980 = vmatpush.bf16.msra.mxu2 %v3253_v26  ;;  %2956 = vmatpush.bf16.msra.mxu0 %v3235_v15  ;;  %v2690_v55 = vpack.c.bf16 %v2686_v42, %v2686_v42  ;;  %v3256_v26 = vld [vmem:[#allocation11 + $0xc8] sm:$0xff]  ;;  %v2258_v15 = vperm.slane %v4683_v37, 3 }
 0x1fb   :  { %v2507_v25 = vadd.f32 %v2506_v46, %v2494_v49  ;;  %v3258_v46 = vld [vmem:[#allocation11 + $0xd8] sm:$0xff]  ;;  %v3274_v37 = vld [vmem:[%s4706_s7] ss:$0 sm:$0xff]  ;;  %s3471_s7 = smov [#allocation13]  }
 0x1fc   :  { %2969 = vmatpush.bf16.msra.mxu1 %v3243_v40  ;;  %2993 = vmatpush.bf16.msra.mxu3 %v3261_v60  ;;  %s3040_s16 = sshll.u32 %s3471_s7, 4  ;;  %s3041_s16 = int_to_ptr.vmem [resolvable:$true] %s3040_s16 }
 0x1fd   :  { %v2520_v36 = vadd.f32 %v2519_v22, %v2507_v25  ;;  %v3257_v22 = vld [vmem:[#allocation11 + $0xd0] sm:$0xff] }
 0x1fe   :  { %2981 = vmatpush.bf16.msra.mxu2 %v3252_v4  ;;  %2957 = vmatpush.bf16.msra.mxu0 %v3234_v13 }
 0x1ff   :  { %v2534_v58 = vpop.f32.mrf.mxu0  ;;  %v2533_v44 = vadd.f32 %v2532_v17, %v2520_v36  ;;  %v3005_v36 = vlaneseq }
 0x200   :  { %2970 = vmatpush.bf16.msra.mxu1 %v3242_v35  ;;  %2994 = vmatpush.bf16.msra.mxu3 %v3260_v54 }
 0x201   :  { %v2547_v27 = vpop.f32.mrf.mxu1  ;;  %v2546_v56 = vadd.f32 %v2545_v43, %v2533_v44  ;;  %v3006_v58 = vand.u32 127, %v3005_v36 }
 0x202   :  { %2982 = vmatpush.bf16.msra.mxu2 %v3251_v47  ;;  %2958 = vmatpush.bf16.msra.mxu0 %v3233_v24 }
 0x203   :  { %vm3008_vm1 = vcmp.eq.s32.totalorder %v3006_v58, 6  ;;  %vm3007_vm2 = vcmp.lt.s32.totalorder %v3006_v58, 6 }
 0x204   :  { %2971 = vmatpush.bf16.msra.mxu1 %v3241_v32  ;;  %2995 = vmatpush.bf16.msra.mxu3 %v3259_v63 }
 0x206   :  { %2983 = vmatpush.bf16.msra.mxu2 %v3250_v16  ;;  %2959 = vmatpush.bf16.msra.mxu0 %v3232_v1 }
 0x208   :  { %2972 = vmatpush.bf16.msra.mxu1 %v3240_v38  ;;  %2996 = vmatpush.bf16.msra.mxu3 %v3258_v46 }
 0x20a   :  { %2984 = vmatpush.bf16.msra.mxu2 %v3249_v31  ;;  %2960 = vmatpush.bf16.msra.mxu0 %v3231_v18 }
 0x20b   :  { %v2558_v62 = vpop.f32.mrf.mxu2 }
 0x20c   :  { %2973 = vmatpush.bf16.msra.mxu1 %v3239_v52  ;;  %v2559_v41 = vadd.f32 %v2558_v62, %v2546_v56  ;;  %2997 = vmatpush.bf16.msra.mxu3 %v3257_v22 }
 0x20d   :  { %2961 = vmatmul.bf16.vlgmr.msra.gmra.mxu0 %v2689_v10  ;;  %v2571_v8 = vpop.f32.mrf.mxu3 }
 0x20e   :  { %2985 = vmatpush.bf16.msra.mxu2 %v3248_v33  ;;  %v2572_v0 = vadd.f32 %v2571_v8, %v2559_v41 }
 0x20f   :  { %2974 = vmatmul.bf16.vlgmr.msra.gmra.mxu1 %v2690_v55 }
 0x210   :  { %v2687_v12 = vmax.f32 %v2572_v0, 0.0  ;;  %2998 = vmatpush.bf16.msra.mxu3 %v3256_v26 }
 0x212   :  { %2986 = vmatpush.bf16.msra.mxu2 %v3247_v53  ;;  %v2691_v20 = vpack.c.bf16 %v2687_v12, %v2687_v12 }
 0x213   :  { %v2560_v50 = vpop.f32.mrf.mxu2 }
 0x214   :  { %2999 = vmatpush.bf16.msra.mxu3 %v3255_v45 }
 0x215   :  { %2987 = vmatmul.bf16.vlgmr.msra.gmra.mxu2 %v2691_v20  ;;  %v2573_v51 = vpop.f32.mrf.mxu3 }
 0x230   :  { %v2584_v7 = vpop.f32.mrf.mxu0 }
 0x231   :  { %v2585_v19 = vadd.f32 %v2584_v7, %v2258_v15 }
 0x233   :  { %v2597_v57 = vpop.f32.mrf.mxu1 }
 0x234   :  { %v2598_v61 = vadd.f32 %v2597_v57, %v2585_v19 }
 0x238   :  { %v2586_v59 = vpop.f32.mrf.mxu0 }
 0x23b   :  { %v2599_v34 = vpop.f32.mrf.mxu1 }
 0x245   :  { %v2610_v11 = vpop.f32.mrf.mxu2 }
 0x246   :  { %v2611_v9 = vadd.f32 %v2610_v11, %v2598_v61 }
 0x247   :  { %v2623_v23 = vpop.f32.mrf.mxu3 }
 0x248   :  { %v2624_v4 = vadd.f32 %v2623_v23, %v2611_v9 }
 0x24d   :  { %v2612_v3 = vpop.f32.mrf.mxu2 }
 0x24f   :  { %v2625_v39 = vpop.f32.mrf.mxu3 }
 0x26a   :  { %v2636_v40 = vpop.f32.mrf.mxu0 }
 0x26b   :  { %v2637_v13 = vadd.f32 %v2636_v40, %v2624_v4 }
 0x26c   :  { %v2649_v21 = vpop.f32.mrf.mxu1 }
 0x26d   :  { %v2650_v6 = vadd.f32 %v2649_v21, %v2637_v13 }
 0x272   :  { %v2638_v35 = vpop.f32.mrf.mxu0 }
 0x274   :  { %v2651_v48 = vpop.f32.mrf.mxu1 }
 0x278   :  { %v2662_v29 = vpop.f32.mrf.mxu2 }
 0x279   :  { %v2663_v14 = vadd.f32 %v2662_v29, %v2650_v6 }
 0x27a   :  { %v2675_v47 = vpop.f32.mrf.mxu3 }
 0x27b   :  { %v2676_v24 = vadd.f32 %v2675_v47, %v2663_v14 }
 0x27d   :  { %v2688_v5 = vmax.f32 %v2676_v24, 0.0 }
 0x27f   :  { %v2692_v17 = vpack.c.bf16 %v2688_v5, %v2688_v5 }
 0x280   :  { %v2664_v43 = vpop.f32.mrf.mxu2 }
 0x281   :  { %3000 = vmatmul.bf16.vlgmr.msra.gmra.mxu3 %v2692_v17 }
 0x282   :  { %v2677_v32 = vpop.f32.mrf.mxu3 }
 0x28a   :  { %v2962_v49 = vpop.f32.mrf.mxu0 }
 0x28b   :  { %v2963_v16 = vadd.f32 %v3274_v37, %v2962_v49 }
 0x28c   :  { %v2975_v2 = vpop.f32.mrf.mxu1 }
 0x28d   :  { %v2976_v1 = vadd.f32 %v2975_v2, %v2963_v16 }
 0x292   :  { %v2964_v25 = vpop.f32.mrf.mxu0 }
 0x294   :  { %v2977_v38 = vpop.f32.mrf.mxu1 }
 0x298   :  { %v2988_v31 = vpop.f32.mrf.mxu2 }
 0x299   :  { %v2989_v42 = vadd.f32 %v2988_v31, %v2976_v1 }
 0x2a0   :  { %v2990_v18 = vpop.f32.mrf.mxu2 }
 0x304   :  { %v3001_v27 = vpop.f32.mrf.mxu3 }
 0x305   :  { %v3002_v28 = vadd.f32 %v3001_v27, %v2989_v42 }
 0x307   :  { %v3032_v52 = vsel %vm3008_vm1, %v3002_v28, 0.0  ;;  %v3009_v44 = vsel %vm3007_vm2, %v3002_v28, -1e+30 }
 0x308   :  { %3010 = vmax.xlane.f32.xlu0 %v3009_v44 }
 0x30c   :  { %v3003_v33 = vpop.f32.mrf.mxu3 }
 0x37b   :  { %v3011_v55 = vpop.xlane.xlu0 %3010 }
 0x37c   :  { %v3012_v10 = vsub.f32 %v3009_v44, %v3011_v55 }
 0x37e   :  { %v3013_v56 = vmul.f32 1.442695, %v3012_v10 }
 0x380   :  { %3275 = vpow2.f32 %v3013_v56 }
 0x386   :  { %v3276_v53 = vpop.eup %3275 }
 0x387   :  { %3015 = vadd.xlane.f32.xlu0 %v3276_v53 }
 0x3fa   :  { %v3016_v62 = vpop.xlane.xlu0 %3015 }
 0x3fb   :  { %3277 = vrcp.f32 %v3016_v62  ;;  %v3028_v12 = vand.u32 2147483648, %v3016_v62  ;;  %v3026_v50 = vand.u32 2147483647, %v3016_v62  ;;  %vm3022_vm4 = vweird.f32 %v3016_v62 }
 0x3fd   :  { %v3029_v30 = vor.u32 1.1754944e-38, %v3028_v12  ;;  %vm3027_vm6 = vcmp.eq.f32.partialorder %v3026_v50, 8.507059e+37 }
 0x401   :  { %v3278_v41 = vpop.eup %3277 }
 0x402   :  { %v3018_v8 = vmul.f32 %v3278_v41, %v3016_v62  ;;  %vm3023_vm3 = vweird.f32 %v3278_v41 }
 0x403   :  { %vm3024_vm5 = vmor %vm3022_vm4, %vm3023_vm3 }
 0x404   :  { %v3019_v0 = vsub.f32 1.0, %v3018_v8 }
 0x406   :  { %v3020_v20 = vmul.f32 %v3278_v41, %v3019_v0 }
 0x408   :  { %v3021_v51 = vadd.f32 %v3278_v41, %v3020_v20 }
 0x40a   :  { %v3025_v7 = vsel %vm3024_vm5, %v3278_v41, %v3021_v51 }
 0x40b   :  { %v3030_v60 = vsel %vm3027_vm6, %v3029_v30, %v3025_v7 }
 0x40c   :  { %v3031_v54 = vmul.f32 %v3276_v53, %v3030_v60 }
 0x40e   :  { %v3033_v57 = vsel %vm3007_vm2, %v3031_v54, %v3032_v52 }
 0x40f   :  { %3034 = vst [vmem:[#allocation13] sm:$0xff] %v3033_v57 }
 0x410   :  { %3045 = dma.vmem_to_hbm [thread:$0]  %s3041_s16, 128, %s3043_s19, [#allocation4]  }
 0x411   :  { %3459 = dma.done.wait [#allocation4], 128  }
 0x412   :  { %3460 = vsyncadd [#allocation4], 4294967168 }
 0x413   :  { %3050 = vsyncpa [#allocation3], 1 }
 0x414   :  { %3051 = vsyncpa [#allocation6], 1 }
 0x415   :  { %3052 = vsyncpa [#allocation9], 1 }
 0x416   :  { %3053 = vsyncpa [#allocation12], 1 }
 0x417   :  { %3054 = vsyncpa [#allocation4], 1 }

</bundles_post_ra>
